<compile_context>
chip_gen: v5e
topology: v5e:2x2
jax: 0.10.0
libtpu: 0.0.40
codegen_flags: <defaults>
</compile_context>

<pallas_src>
import jax
import jax.numpy as jnp
import numpy as np
from jax.experimental import pallas as pl
from jax.experimental.pallas import tpu as pltpu

EPS = 1e-8        # module eps (PSD denom / diag loading / stabilization / trace)
PSD_EPS = 1e-5    # estimate_psd eps added to the imaginary part


def _cmul(ar, ai, br, bi):
    """Complex multiply on (real, imag) pairs."""
    return ar * br - ai * bi, ar * bi + ai * br


def _round_up(x, m):
    return (x + m - 1) // m * m


def _cdiv(a, b):
    return -(-a // b)


def _mvdr_kernel(y_r_ref, y_i_ref, smr_ref, smi_ref, nmr_ref, nmi_ref,
                 out_r_ref, out_i_ref):
    C = y_r_ref.shape[1]
    f32 = jnp.float32

    # Per-channel [F, T] planes (leading-axis views; no sublane-cutting slices).
    yr = [y_r_ref[0, c] for c in range(C)]
    yi = [y_i_ref[0, c] for c in range(C)]
    sm_r = smr_ref[0]
    sm_i = smi_ref[0]
    nm_r = nmr_ref[0]
    nm_i = nmi_ref[0]
    F = sm_r.shape[0]

    # ------- mask powers + PSD denominators (per-frequency, lane-major) ------
    ws2 = sm_r * sm_r + sm_i * sm_i            # |speech mask|^2  [F, T]
    wn2 = nm_r * nm_r + nm_i * nm_i            # |noise  mask|^2  [F, T]
    den_s = jnp.sum(ws2, axis=-1) + EPS        # [F]
    den_n = jnp.sum(wn2, axis=-1) + EPS
    inv_s = pl.reciprocal(den_s, approx=True)  # EUP; error cancels in the ratio
    inv_n = pl.reciprocal(den_n, approx=True)

    # ------- PSDs via shared channel cross products (Hermitian) --------------
    #   s_c * conj(s_d) = |m|^2 * y_c * conj(y_d)   (same mask on every channel)
    Rs_r = [[None] * C for _ in range(C)]
    Rs_i = [[None] * C for _ in range(C)]
    Rn_r = [[None] * C for _ in range(C)]
    Rn_i = [[None] * C for _ in range(C)]
    psd_eps = jnp.full((F,), PSD_EPS, f32)

    for c in range(C):
        for d in range(c, C):
            prr = yr[c] * yr[d] + yi[c] * yi[d]            # Re(y_c conj(y_d))
            s_rr = jnp.sum(ws2 * prr, axis=-1) * inv_s     # [F]
            n_rr = jnp.sum(wn2 * prr, axis=-1) * inv_n
            Rs_r[c][d] = s_rr
            Rs_r[d][c] = s_rr
            Rn_r[c][d] = n_rr
            Rn_r[d][c] = n_rr
            if d == c:
                Rs_i[c][c] = psd_eps                       # diag imag == 0
                Rn_i[c][c] = psd_eps
                Rn_r[c][c] = n_rr + EPS                    # + eps * I
            else:
                pri = yi[c] * yr[d] - yr[c] * yi[d]        # Im(y_c conj(y_d))
                s_ri = jnp.sum(ws2 * pri, axis=-1) * inv_s
                n_ri = jnp.sum(wn2 * pri, axis=-1) * inv_n
                Rs_i[c][d] = s_ri + PSD_EPS
                Rs_i[d][c] = PSD_EPS - s_ri
                Rn_i[c][d] = n_ri + PSD_EPS
                Rn_i[d][c] = PSD_EPS - n_ri

    # ------- complex inverse of Rn: unrolled Gauss-Jordan on [F]-lane vectors -
    Mr = [[Rn_r[i][j] for j in range(C)] for i in range(C)]
    Mi = [[Rn_i[i][j] for j in range(C)] for i in range(C)]
    one = jnp.ones((F,), f32)
    zero = jnp.zeros((F,), f32)
    Vr = [[one if i == j else zero for j in range(C)] for i in range(C)]
    Vi = [[zero for _ in range(C)] for _ in range(C)]

    for k in range(C):
        pr = Mr[k][k]
        pi = Mi[k][k]
        ipd = 1.0 / (pr * pr + pi * pi)        # exact (inverse accuracy)
        ipr = pr * ipd
        ipi = -pi * ipd
        for j in range(k, C):                  # columns < k are never read again
            Mr[k][j], Mi[k][j] = _cmul(Mr[k][j], Mi[k][j], ipr, ipi)
        for j in range(C):
            Vr[k][j], Vi[k][j] = _cmul(Vr[k][j], Vi[k][j], ipr, ipi)
        for i in range(C):
            if i == k:
                continue
            fr = Mr[i][k]
            fi = Mi[i][k]
            for j in range(k, C):
                dr, di = _cmul(fr, fi, Mr[k][j], Mi[k][j])
                Mr[i][j] = Mr[i][j] - dr
                Mi[i][j] = Mi[i][j] - di
            for j in range(C):
                er, ei = _cmul(fr, fi, Vr[k][j], Vi[k][j])
                Vr[i][j] = Vr[i][j] - er
                Vi[i][j] = Vi[i][j] - ei

    # stabilize_complex_number: add eps to the imaginary part of Rn^-1
    for i in range(C):
        for j in range(C):
            Vi[i][j] = Vi[i][j] + EPS

    # ------- P = Rn^-1 @ Rs: only the steering column (col 0) and the trace --
    p0_r = []
    p0_i = []
    for i in range(C):
        ar, ai = _cmul(Vr[i][0], Vi[i][0], Rs_r[0][0], Rs_i[0][0])
        for kk in range(1, C):
            dr, di = _cmul(Vr[i][kk], Vi[i][kk], Rs_r[kk][0], Rs_i[kk][0])
            ar = ar + dr
            ai = ai + di
        p0_r.append(ar)
        p0_i.append(ai)

    tr_r = p0_r[0]                             # P[0][0] shared with column 0
    tr_i = p0_i[0]
    for i in range(1, C):
        for kk in range(C):
            dr, di = _cmul(Vr[i][kk], Vi[i][kk], Rs_r[kk][i], Rs_i[kk][i])
            tr_r = tr_r + dr
            tr_i = tr_i + di
    tr_r = tr_r + EPS
    itd = 1.0 / (tr_r * tr_r + tr_i * tr_i)    # exact

    # ------- weights + beamforming:  es = sum_c conj(w_c) * Y_c ---------------
    es_r = None
    es_i = None
    for c in range(C):
        w_r = (p0_r[c] * tr_r + p0_i[c] * tr_i) * itd      # w = P[:,0] / tr(P)
        w_i = (p0_i[c] * tr_r - p0_r[c] * tr_i) * itd
        wb_r = w_r[:, None]                                # [F, 1] over T
        wb_i = w_i[:, None]
        cr = wb_r * yr[c] + wb_i * yi[c]                   # conj(w) * Y
        ci = wb_r * yi[c] - wb_i * yr[c]
        if es_r is None:
            es_r, es_i = cr, ci
        else:
            es_r = es_r + cr
            es_i = es_i + ci

    out_r_ref[0] = es_r
    out_i_ref[0] = es_i


@jax.jit
def mvdr_beamformer(cm_r, cm_i, sm_r, sm_i, nm_r, nm_i):
    """complex_matrix: [B, C, F, T] (real/imag planes), masks: [B, F, T].

    Returns the enhanced complex spectrogram as real/imag planes, each [B, F, T].
    """
    B, C, F, T = cm_r.shape
    f32 = jnp.float32

    # Lane-dense padding: T -> multiple of 128 (lanes), F -> multiple of the
    # frequency tile (multiple of 8).  Zero padding contributes nothing to the
    # T-sums; padded F rows are discarded below.
    Tp = _round_up(T, 128)

    # Frequency tile sized against a conservative VMEM budget so the
    # double-buffered blocks + temporaries fit v7x's 64 MiB VMEM as well as
    # v5e/v6e's 128 MiB (scoped limit raised below).
    vmem_budget = 24 * 1024 * 1024
    per_f_row_bytes = (6 * C + 24) * Tp * 4
    cap = max(8, min(256, (vmem_budget // per_f_row_bytes) // 8 * 8))
    n_f_tiles = _cdiv(F, cap)
    f_tile = _round_up(_cdiv(F, n_f_tiles), 8)
    Fp = f_tile * n_f_tiles

    def pad_y(x):
        return jnp.pad(x.astype(f32), ((0, 0), (0, 0), (0, Fp - F), (0, Tp - T)))

    def pad_m(x):
        return jnp.pad(x.astype(f32), ((0, 0), (0, Fp - F), (0, Tp - T)))

    y_r = pad_y(cm_r)                          # native [B, C, F, T] layout kept
    y_i = pad_y(cm_i)
    smr = pad_m(sm_r)
    smi = pad_m(sm_i)
    nmr = pad_m(nm_r)
    nmi = pad_m(nm_i)

    spec_y = pl.BlockSpec((1, C, f_tile, Tp), lambda b, f: (b, 0, f, 0))
    spec_m = pl.BlockSpec((1, f_tile, Tp), lambda b, f: (b, f, 0))

    out_r, out_i = pl.pallas_call(
        _mvdr_kernel,
        grid=(B, n_f_tiles),
        in_specs=[spec_y, spec_y, spec_m, spec_m, spec_m, spec_m],
        out_specs=(spec_m, spec_m),
        out_shape=(jax.ShapeDtypeStruct((B, Fp, Tp), f32),
                   jax.ShapeDtypeStruct((B, Fp, Tp), f32)),
        compiler_params=pltpu.CompilerParams(
            dimension_semantics=("parallel", "parallel"),
            vmem_limit_bytes=64 * 1024 * 1024),
    )(y_r, y_i, smr, smi, nmr, nmi)
    return out_r[:, :F, :T], out_i[:, :F, :T]


def _reference_np(cm_r, cm_i, sm_r, sm_i, nm_r, nm_i):
    """Pure numpy mirror of the PyTorch / torch_complex semantics."""
    Y = (np.asarray(cm_r) + 1j * np.asarray(cm_i)).transpose(0, 2, 1, 3)
    C = Y.shape[2]

    def psd(mr, mi):
        m = np.asarray(mr) + 1j * np.asarray(mi)            # [B, F, T]
        sig = Y * m[:, :, None, :]
        nom = sig @ np.conj(sig).swapaxes(-1, -2)
        den = np.conj(m)[:, :, None, :] @ m[:, :, :, None]  # [B, F, 1, 1]
        return nom / (den + EPS) + 1j * PSD_EPS

    Rs = psd(sm_r, sm_i)
    Rn = psd(nm_r, nm_i) + np.eye(C, dtype=np.float32) * EPS
    Rni = np.linalg.inv(Rn) + 1j * EPS
    P = Rni @ Rs
    tr = np.trace(P, axis1=-2, axis2=-1) + EPS
    w = P[..., 0] / tr[..., None]                            # [B, F, C]
    es = np.einsum('bfc,bfct->bft', np.conj(w), Y)
    return es


if __name__ == "__main__":
    B, C, F, T = 2, 4, 8, 16
    key = jax.random.PRNGKey(0)
    ks = jax.random.split(key, 6)
    cm_r = jax.random.normal(ks[0], (B, C, F, T), jnp.float32)
    cm_i = jax.random.normal(ks[1], (B, C, F, T), jnp.float32)
    sm_r = jax.random.normal(ks[2], (B, F, T), jnp.float32)
    sm_i = jax.random.normal(ks[3], (B, F, T), jnp.float32)
    nm_r = jax.random.normal(ks[4], (B, F, T), jnp.float32)
    nm_i = jax.random.normal(ks[5], (B, F, T), jnp.float32)

    out_r, out_i = mvdr_beamformer(cm_r, cm_i, sm_r, sm_i, nm_r, nm_i)
    jax.block_until_ready((out_r, out_i))

    got = np.asarray(out_r) + 1j * np.asarray(out_i)
    ref = _reference_np(cm_r, cm_i, sm_r, sm_i, nm_r, nm_i)
    np.testing.assert_allclose(got, ref, rtol=1e-2, atol=1e-2)
    print("KERNEL_OK")
</pallas_src>

<mosaic_0001>
module attributes {stable_mosaic.version = 11 : i64} {
  func.func @_mvdr_kernel(%arg0: i32, %arg1: i32, %arg2: memref<1x4x8x128xf32, #tpu.memory_space<vmem>>, %arg3: memref<1x4x8x128xf32, #tpu.memory_space<vmem>>, %arg4: memref<1x8x128xf32, #tpu.memory_space<vmem>>, %arg5: memref<1x8x128xf32, #tpu.memory_space<vmem>>, %arg6: memref<1x8x128xf32, #tpu.memory_space<vmem>>, %arg7: memref<1x8x128xf32, #tpu.memory_space<vmem>>, %arg8: memref<1x8x128xf32, #tpu.memory_space<vmem>>, %arg9: memref<1x8x128xf32, #tpu.memory_space<vmem>>) attributes {dimension_semantics = [#tpu.dimension_semantics<parallel>, #tpu.dimension_semantics<parallel>], iteration_bounds = array<i64: 2, 1>, scalar_prefetch = 0 : i64, scratch_operands = 0 : i64, tpu.core_type = #tpu.core_type<tc>, window_params = [{transform_indices = @transform_0, window_bounds = array<i64: 1, 4, 8, 128>}, {transform_indices = @transform_1, window_bounds = array<i64: 1, 4, 8, 128>}, {transform_indices = @transform_2, window_bounds = array<i64: 1, 8, 128>}, {transform_indices = @transform_3, window_bounds = array<i64: 1, 8, 128>}, {transform_indices = @transform_4, window_bounds = array<i64: 1, 8, 128>}, {transform_indices = @transform_5, window_bounds = array<i64: 1, 8, 128>}, {transform_indices = @transform_6, window_bounds = array<i64: 1, 8, 128>}, {transform_indices = @transform_7, window_bounds = array<i64: 1, 8, 128>}]} {
    %c0 = arith.constant 0 : index
    %c0_0 = arith.constant 0 : index
    %c0_1 = arith.constant 0 : index
    %c0_2 = arith.constant 0 : index
    %0 = vector.load %arg2[%c0, %c0_0, %c0_1, %c0_2] : memref<1x4x8x128xf32, #tpu.memory_space<vmem>>, vector<1x1x8x128xf32>
    %1 = vector.shape_cast %0 : vector<1x1x8x128xf32> to vector<8x128xf32>
    %c0_3 = arith.constant 0 : index
    %c1 = arith.constant 1 : index
    %c0_4 = arith.constant 0 : index
    %c0_5 = arith.constant 0 : index
    %2 = vector.load %arg2[%c0_3, %c1, %c0_4, %c0_5] : memref<1x4x8x128xf32, #tpu.memory_space<vmem>>, vector<1x1x8x128xf32>
    %3 = vector.shape_cast %2 : vector<1x1x8x128xf32> to vector<8x128xf32>
    %c0_6 = arith.constant 0 : index
    %c2 = arith.constant 2 : index
    %c0_7 = arith.constant 0 : index
    %c0_8 = arith.constant 0 : index
    %4 = vector.load %arg2[%c0_6, %c2, %c0_7, %c0_8] : memref<1x4x8x128xf32, #tpu.memory_space<vmem>>, vector<1x1x8x128xf32>
    %5 = vector.shape_cast %4 : vector<1x1x8x128xf32> to vector<8x128xf32>
    %c0_9 = arith.constant 0 : index
    %c3 = arith.constant 3 : index
    %c0_10 = arith.constant 0 : index
    %c0_11 = arith.constant 0 : index
    %6 = vector.load %arg2[%c0_9, %c3, %c0_10, %c0_11] : memref<1x4x8x128xf32, #tpu.memory_space<vmem>>, vector<1x1x8x128xf32>
    %7 = vector.shape_cast %6 : vector<1x1x8x128xf32> to vector<8x128xf32>
    %c0_12 = arith.constant 0 : index
    %c0_13 = arith.constant 0 : index
    %c0_14 = arith.constant 0 : index
    %c0_15 = arith.constant 0 : index
    %8 = vector.load %arg3[%c0_12, %c0_13, %c0_14, %c0_15] : memref<1x4x8x128xf32, #tpu.memory_space<vmem>>, vector<1x1x8x128xf32>
    %9 = vector.shape_cast %8 : vector<1x1x8x128xf32> to vector<8x128xf32>
    %c0_16 = arith.constant 0 : index
    %c1_17 = arith.constant 1 : index
    %c0_18 = arith.constant 0 : index
    %c0_19 = arith.constant 0 : index
    %10 = vector.load %arg3[%c0_16, %c1_17, %c0_18, %c0_19] : memref<1x4x8x128xf32, #tpu.memory_space<vmem>>, vector<1x1x8x128xf32>
    %11 = vector.shape_cast %10 : vector<1x1x8x128xf32> to vector<8x128xf32>
    %c0_20 = arith.constant 0 : index
    %c2_21 = arith.constant 2 : index
    %c0_22 = arith.constant 0 : index
    %c0_23 = arith.constant 0 : index
    %12 = vector.load %arg3[%c0_20, %c2_21, %c0_22, %c0_23] : memref<1x4x8x128xf32, #tpu.memory_space<vmem>>, vector<1x1x8x128xf32>
    %13 = vector.shape_cast %12 : vector<1x1x8x128xf32> to vector<8x128xf32>
    %c0_24 = arith.constant 0 : index
    %c3_25 = arith.constant 3 : index
    %c0_26 = arith.constant 0 : index
    %c0_27 = arith.constant 0 : index
    %14 = vector.load %arg3[%c0_24, %c3_25, %c0_26, %c0_27] : memref<1x4x8x128xf32, #tpu.memory_space<vmem>>, vector<1x1x8x128xf32>
    %15 = vector.shape_cast %14 : vector<1x1x8x128xf32> to vector<8x128xf32>
    %c0_28 = arith.constant 0 : index
    %c0_29 = arith.constant 0 : index
    %c0_30 = arith.constant 0 : index
    %16 = vector.load %arg4[%c0_28, %c0_29, %c0_30] : memref<1x8x128xf32, #tpu.memory_space<vmem>>, vector<1x8x128xf32>
    %17 = vector.shape_cast %16 : vector<1x8x128xf32> to vector<8x128xf32>
    %c0_31 = arith.constant 0 : index
    %c0_32 = arith.constant 0 : index
    %c0_33 = arith.constant 0 : index
    %18 = vector.load %arg5[%c0_31, %c0_32, %c0_33] : memref<1x8x128xf32, #tpu.memory_space<vmem>>, vector<1x8x128xf32>
    %19 = vector.shape_cast %18 : vector<1x8x128xf32> to vector<8x128xf32>
    %c0_34 = arith.constant 0 : index
    %c0_35 = arith.constant 0 : index
    %c0_36 = arith.constant 0 : index
    %20 = vector.load %arg6[%c0_34, %c0_35, %c0_36] : memref<1x8x128xf32, #tpu.memory_space<vmem>>, vector<1x8x128xf32>
    %21 = vector.shape_cast %20 : vector<1x8x128xf32> to vector<8x128xf32>
    %c0_37 = arith.constant 0 : index
    %c0_38 = arith.constant 0 : index
    %c0_39 = arith.constant 0 : index
    %22 = vector.load %arg7[%c0_37, %c0_38, %c0_39] : memref<1x8x128xf32, #tpu.memory_space<vmem>>, vector<1x8x128xf32>
    %23 = vector.shape_cast %22 : vector<1x8x128xf32> to vector<8x128xf32>
    %24 = arith.mulf %17, %17 : vector<8x128xf32>
    %25 = arith.mulf %19, %19 : vector<8x128xf32>
    %26 = arith.addf %24, %25 : vector<8x128xf32>
    %27 = arith.mulf %21, %21 : vector<8x128xf32>
    %28 = arith.mulf %23, %23 : vector<8x128xf32>
    %29 = arith.addf %27, %28 : vector<8x128xf32>
    %cst = arith.constant dense<0.000000e+00> : vector<8xf32>
    %30 = vector.multi_reduction <add>, %26, %cst [1] : vector<8x128xf32> to vector<8xf32>
    %cst_40 = arith.constant 9.99999993E-9 : f32
    %31 = vector.broadcast %cst_40 : f32 to vector<8xf32>
    %32 = arith.addf %30, %31 : vector<8xf32>
    %cst_41 = arith.constant dense<0.000000e+00> : vector<8xf32>
    %33 = vector.multi_reduction <add>, %29, %cst_41 [1] : vector<8x128xf32> to vector<8xf32>
    %cst_42 = arith.constant 9.99999993E-9 : f32
    %34 = vector.broadcast %cst_42 : f32 to vector<8xf32>
    %35 = arith.addf %33, %34 : vector<8xf32>
    %36 = tpu.reciprocal %32 {approx = true} : vector<8xf32> -> vector<8xf32>
    %37 = tpu.reciprocal %35 {approx = true} : vector<8xf32> -> vector<8xf32>
    %cst_43 = arith.constant 9.99999974E-6 : f32
    %38 = vector.broadcast %cst_43 : f32 to vector<8xf32>
    %39 = arith.mulf %1, %1 : vector<8x128xf32>
    %40 = arith.mulf %9, %9 : vector<8x128xf32>
    %41 = arith.addf %39, %40 : vector<8x128xf32>
    %42 = arith.mulf %26, %41 : vector<8x128xf32>
    %cst_44 = arith.constant dense<0.000000e+00> : vector<8xf32>
    %43 = vector.multi_reduction <add>, %42, %cst_44 [1] : vector<8x128xf32> to vector<8xf32>
    %44 = arith.mulf %43, %36 : vector<8xf32>
    %45 = arith.mulf %29, %41 : vector<8x128xf32>
    %cst_45 = arith.constant dense<0.000000e+00> : vector<8xf32>
    %46 = vector.multi_reduction <add>, %45, %cst_45 [1] : vector<8x128xf32> to vector<8xf32>
    %47 = arith.mulf %46, %37 : vector<8xf32>
    %cst_46 = arith.constant 9.99999993E-9 : f32
    %48 = vector.broadcast %cst_46 : f32 to vector<8xf32>
    %49 = arith.addf %47, %48 : vector<8xf32>
    %50 = arith.mulf %1, %3 : vector<8x128xf32>
    %51 = arith.mulf %9, %11 : vector<8x128xf32>
    %52 = arith.addf %50, %51 : vector<8x128xf32>
    %53 = arith.mulf %26, %52 : vector<8x128xf32>
    %cst_47 = arith.constant dense<0.000000e+00> : vector<8xf32>
    %54 = vector.multi_reduction <add>, %53, %cst_47 [1] : vector<8x128xf32> to vector<8xf32>
    %55 = arith.mulf %54, %36 : vector<8xf32>
    %56 = arith.mulf %29, %52 : vector<8x128xf32>
    %cst_48 = arith.constant dense<0.000000e+00> : vector<8xf32>
    %57 = vector.multi_reduction <add>, %56, %cst_48 [1] : vector<8x128xf32> to vector<8xf32>
    %58 = arith.mulf %57, %37 : vector<8xf32>
    %59 = arith.mulf %9, %3 : vector<8x128xf32>
    %60 = arith.mulf %1, %11 : vector<8x128xf32>
    %61 = arith.subf %59, %60 : vector<8x128xf32>
    %62 = arith.mulf %26, %61 : vector<8x128xf32>
    %cst_49 = arith.constant dense<0.000000e+00> : vector<8xf32>
    %63 = vector.multi_reduction <add>, %62, %cst_49 [1] : vector<8x128xf32> to vector<8xf32>
    %64 = arith.mulf %63, %36 : vector<8xf32>
    %65 = arith.mulf %29, %61 : vector<8x128xf32>
    %cst_50 = arith.constant dense<0.000000e+00> : vector<8xf32>
    %66 = vector.multi_reduction <add>, %65, %cst_50 [1] : vector<8x128xf32> to vector<8xf32>
    %67 = arith.mulf %66, %37 : vector<8xf32>
    %cst_51 = arith.constant 9.99999974E-6 : f32
    %68 = vector.broadcast %cst_51 : f32 to vector<8xf32>
    %69 = arith.addf %64, %68 : vector<8xf32>
    %cst_52 = arith.constant 9.99999974E-6 : f32
    %70 = vector.broadcast %cst_52 : f32 to vector<8xf32>
    %71 = arith.subf %70, %64 : vector<8xf32>
    %cst_53 = arith.constant 9.99999974E-6 : f32
    %72 = vector.broadcast %cst_53 : f32 to vector<8xf32>
    %73 = arith.addf %67, %72 : vector<8xf32>
    %cst_54 = arith.constant 9.99999974E-6 : f32
    %74 = vector.broadcast %cst_54 : f32 to vector<8xf32>
    %75 = arith.subf %74, %67 : vector<8xf32>
    %76 = arith.mulf %1, %5 : vector<8x128xf32>
    %77 = arith.mulf %9, %13 : vector<8x128xf32>
    %78 = arith.addf %76, %77 : vector<8x128xf32>
    %79 = arith.mulf %26, %78 : vector<8x128xf32>
    %cst_55 = arith.constant dense<0.000000e+00> : vector<8xf32>
    %80 = vector.multi_reduction <add>, %79, %cst_55 [1] : vector<8x128xf32> to vector<8xf32>
    %81 = arith.mulf %80, %36 : vector<8xf32>
    %82 = arith.mulf %29, %78 : vector<8x128xf32>
    %cst_56 = arith.constant dense<0.000000e+00> : vector<8xf32>
    %83 = vector.multi_reduction <add>, %82, %cst_56 [1] : vector<8x128xf32> to vector<8xf32>
    %84 = arith.mulf %83, %37 : vector<8xf32>
    %85 = arith.mulf %9, %5 : vector<8x128xf32>
    %86 = arith.mulf %1, %13 : vector<8x128xf32>
    %87 = arith.subf %85, %86 : vector<8x128xf32>
    %88 = arith.mulf %26, %87 : vector<8x128xf32>
    %cst_57 = arith.constant dense<0.000000e+00> : vector<8xf32>
    %89 = vector.multi_reduction <add>, %88, %cst_57 [1] : vector<8x128xf32> to vector<8xf32>
    %90 = arith.mulf %89, %36 : vector<8xf32>
    %91 = arith.mulf %29, %87 : vector<8x128xf32>
    %cst_58 = arith.constant dense<0.000000e+00> : vector<8xf32>
    %92 = vector.multi_reduction <add>, %91, %cst_58 [1] : vector<8x128xf32> to vector<8xf32>
    %93 = arith.mulf %92, %37 : vector<8xf32>
    %cst_59 = arith.constant 9.99999974E-6 : f32
    %94 = vector.broadcast %cst_59 : f32 to vector<8xf32>
    %95 = arith.addf %90, %94 : vector<8xf32>
    %cst_60 = arith.constant 9.99999974E-6 : f32
    %96 = vector.broadcast %cst_60 : f32 to vector<8xf32>
    %97 = arith.subf %96, %90 : vector<8xf32>
    %cst_61 = arith.constant 9.99999974E-6 : f32
    %98 = vector.broadcast %cst_61 : f32 to vector<8xf32>
    %99 = arith.addf %93, %98 : vector<8xf32>
    %cst_62 = arith.constant 9.99999974E-6 : f32
    %100 = vector.broadcast %cst_62 : f32 to vector<8xf32>
    %101 = arith.subf %100, %93 : vector<8xf32>
    %102 = arith.mulf %1, %7 : vector<8x128xf32>
    %103 = arith.mulf %9, %15 : vector<8x128xf32>
    %104 = arith.addf %102, %103 : vector<8x128xf32>
    %105 = arith.mulf %26, %104 : vector<8x128xf32>
    %cst_63 = arith.constant dense<0.000000e+00> : vector<8xf32>
    %106 = vector.multi_reduction <add>, %105, %cst_63 [1] : vector<8x128xf32> to vector<8xf32>
    %107 = arith.mulf %106, %36 : vector<8xf32>
    %108 = arith.mulf %29, %104 : vector<8x128xf32>
    %cst_64 = arith.constant dense<0.000000e+00> : vector<8xf32>
    %109 = vector.multi_reduction <add>, %108, %cst_64 [1] : vector<8x128xf32> to vector<8xf32>
    %110 = arith.mulf %109, %37 : vector<8xf32>
    %111 = arith.mulf %9, %7 : vector<8x128xf32>
    %112 = arith.mulf %1, %15 : vector<8x128xf32>
    %113 = arith.subf %111, %112 : vector<8x128xf32>
    %114 = arith.mulf %26, %113 : vector<8x128xf32>
    %cst_65 = arith.constant dense<0.000000e+00> : vector<8xf32>
    %115 = vector.multi_reduction <add>, %114, %cst_65 [1] : vector<8x128xf32> to vector<8xf32>
    %116 = arith.mulf %115, %36 : vector<8xf32>
    %117 = arith.mulf %29, %113 : vector<8x128xf32>
    %cst_66 = arith.constant dense<0.000000e+00> : vector<8xf32>
    %118 = vector.multi_reduction <add>, %117, %cst_66 [1] : vector<8x128xf32> to vector<8xf32>
    %119 = arith.mulf %118, %37 : vector<8xf32>
    %cst_67 = arith.constant 9.99999974E-6 : f32
    %120 = vector.broadcast %cst_67 : f32 to vector<8xf32>
    %121 = arith.addf %116, %120 : vector<8xf32>
    %cst_68 = arith.constant 9.99999974E-6 : f32
    %122 = vector.broadcast %cst_68 : f32 to vector<8xf32>
    %123 = arith.subf %122, %116 : vector<8xf32>
    %cst_69 = arith.constant 9.99999974E-6 : f32
    %124 = vector.broadcast %cst_69 : f32 to vector<8xf32>
    %125 = arith.addf %119, %124 : vector<8xf32>
    %cst_70 = arith.constant 9.99999974E-6 : f32
    %126 = vector.broadcast %cst_70 : f32 to vector<8xf32>
    %127 = arith.subf %126, %119 : vector<8xf32>
    %128 = arith.mulf %3, %3 : vector<8x128xf32>
    %129 = arith.mulf %11, %11 : vector<8x128xf32>
    %130 = arith.addf %128, %129 : vector<8x128xf32>
    %131 = arith.mulf %26, %130 : vector<8x128xf32>
    %cst_71 = arith.constant dense<0.000000e+00> : vector<8xf32>
    %132 = vector.multi_reduction <add>, %131, %cst_71 [1] : vector<8x128xf32> to vector<8xf32>
    %133 = arith.mulf %132, %36 : vector<8xf32>
    %134 = arith.mulf %29, %130 : vector<8x128xf32>
    %cst_72 = arith.constant dense<0.000000e+00> : vector<8xf32>
    %135 = vector.multi_reduction <add>, %134, %cst_72 [1] : vector<8x128xf32> to vector<8xf32>
    %136 = arith.mulf %135, %37 : vector<8xf32>
    %cst_73 = arith.constant 9.99999993E-9 : f32
    %137 = vector.broadcast %cst_73 : f32 to vector<8xf32>
    %138 = arith.addf %136, %137 : vector<8xf32>
    %139 = arith.mulf %3, %5 : vector<8x128xf32>
    %140 = arith.mulf %11, %13 : vector<8x128xf32>
    %141 = arith.addf %139, %140 : vector<8x128xf32>
    %142 = arith.mulf %26, %141 : vector<8x128xf32>
    %cst_74 = arith.constant dense<0.000000e+00> : vector<8xf32>
    %143 = vector.multi_reduction <add>, %142, %cst_74 [1] : vector<8x128xf32> to vector<8xf32>
    %144 = arith.mulf %143, %36 : vector<8xf32>
    %145 = arith.mulf %29, %141 : vector<8x128xf32>
    %cst_75 = arith.constant dense<0.000000e+00> : vector<8xf32>
    %146 = vector.multi_reduction <add>, %145, %cst_75 [1] : vector<8x128xf32> to vector<8xf32>
    %147 = arith.mulf %146, %37 : vector<8xf32>
    %148 = arith.mulf %11, %5 : vector<8x128xf32>
    %149 = arith.mulf %3, %13 : vector<8x128xf32>
    %150 = arith.subf %148, %149 : vector<8x128xf32>
    %151 = arith.mulf %26, %150 : vector<8x128xf32>
    %cst_76 = arith.constant dense<0.000000e+00> : vector<8xf32>
    %152 = vector.multi_reduction <add>, %151, %cst_76 [1] : vector<8x128xf32> to vector<8xf32>
    %153 = arith.mulf %152, %36 : vector<8xf32>
    %154 = arith.mulf %29, %150 : vector<8x128xf32>
    %cst_77 = arith.constant dense<0.000000e+00> : vector<8xf32>
    %155 = vector.multi_reduction <add>, %154, %cst_77 [1] : vector<8x128xf32> to vector<8xf32>
    %156 = arith.mulf %155, %37 : vector<8xf32>
    %cst_78 = arith.constant 9.99999974E-6 : f32
    %157 = vector.broadcast %cst_78 : f32 to vector<8xf32>
    %158 = arith.addf %153, %157 : vector<8xf32>
    %cst_79 = arith.constant 9.99999974E-6 : f32
    %159 = vector.broadcast %cst_79 : f32 to vector<8xf32>
    %160 = arith.subf %159, %153 : vector<8xf32>
    %cst_80 = arith.constant 9.99999974E-6 : f32
    %161 = vector.broadcast %cst_80 : f32 to vector<8xf32>
    %162 = arith.addf %156, %161 : vector<8xf32>
    %cst_81 = arith.constant 9.99999974E-6 : f32
    %163 = vector.broadcast %cst_81 : f32 to vector<8xf32>
    %164 = arith.subf %163, %156 : vector<8xf32>
    %165 = arith.mulf %3, %7 : vector<8x128xf32>
    %166 = arith.mulf %11, %15 : vector<8x128xf32>
    %167 = arith.addf %165, %166 : vector<8x128xf32>
    %168 = arith.mulf %26, %167 : vector<8x128xf32>
    %cst_82 = arith.constant dense<0.000000e+00> : vector<8xf32>
    %169 = vector.multi_reduction <add>, %168, %cst_82 [1] : vector<8x128xf32> to vector<8xf32>
    %170 = arith.mulf %169, %36 : vector<8xf32>
    %171 = arith.mulf %29, %167 : vector<8x128xf32>
    %cst_83 = arith.constant dense<0.000000e+00> : vector<8xf32>
    %172 = vector.multi_reduction <add>, %171, %cst_83 [1] : vector<8x128xf32> to vector<8xf32>
    %173 = arith.mulf %172, %37 : vector<8xf32>
    %174 = arith.mulf %11, %7 : vector<8x128xf32>
    %175 = arith.mulf %3, %15 : vector<8x128xf32>
    %176 = arith.subf %174, %175 : vector<8x128xf32>
    %177 = arith.mulf %26, %176 : vector<8x128xf32>
    %cst_84 = arith.constant dense<0.000000e+00> : vector<8xf32>
    %178 = vector.multi_reduction <add>, %177, %cst_84 [1] : vector<8x128xf32> to vector<8xf32>
    %179 = arith.mulf %178, %36 : vector<8xf32>
    %180 = arith.mulf %29, %176 : vector<8x128xf32>
    %cst_85 = arith.constant dense<0.000000e+00> : vector<8xf32>
    %181 = vector.multi_reduction <add>, %180, %cst_85 [1] : vector<8x128xf32> to vector<8xf32>
    %182 = arith.mulf %181, %37 : vector<8xf32>
    %cst_86 = arith.constant 9.99999974E-6 : f32
    %183 = vector.broadcast %cst_86 : f32 to vector<8xf32>
    %184 = arith.addf %179, %183 : vector<8xf32>
    %cst_87 = arith.constant 9.99999974E-6 : f32
    %185 = vector.broadcast %cst_87 : f32 to vector<8xf32>
    %186 = arith.subf %185, %179 : vector<8xf32>
    %cst_88 = arith.constant 9.99999974E-6 : f32
    %187 = vector.broadcast %cst_88 : f32 to vector<8xf32>
    %188 = arith.addf %182, %187 : vector<8xf32>
    %cst_89 = arith.constant 9.99999974E-6 : f32
    %189 = vector.broadcast %cst_89 : f32 to vector<8xf32>
    %190 = arith.subf %189, %182 : vector<8xf32>
    %191 = arith.mulf %5, %5 : vector<8x128xf32>
    %192 = arith.mulf %13, %13 : vector<8x128xf32>
    %193 = arith.addf %191, %192 : vector<8x128xf32>
    %194 = arith.mulf %26, %193 : vector<8x128xf32>
    %cst_90 = arith.constant dense<0.000000e+00> : vector<8xf32>
    %195 = vector.multi_reduction <add>, %194, %cst_90 [1] : vector<8x128xf32> to vector<8xf32>
    %196 = arith.mulf %195, %36 : vector<8xf32>
    %197 = arith.mulf %29, %193 : vector<8x128xf32>
    %cst_91 = arith.constant dense<0.000000e+00> : vector<8xf32>
    %198 = vector.multi_reduction <add>, %197, %cst_91 [1] : vector<8x128xf32> to vector<8xf32>
    %199 = arith.mulf %198, %37 : vector<8xf32>
    %cst_92 = arith.constant 9.99999993E-9 : f32
    %200 = vector.broadcast %cst_92 : f32 to vector<8xf32>
    %201 = arith.addf %199, %200 : vector<8xf32>
    %202 = arith.mulf %5, %7 : vector<8x128xf32>
    %203 = arith.mulf %13, %15 : vector<8x128xf32>
    %204 = arith.addf %202, %203 : vector<8x128xf32>
    %205 = arith.mulf %26, %204 : vector<8x128xf32>
    %cst_93 = arith.constant dense<0.000000e+00> : vector<8xf32>
    %206 = vector.multi_reduction <add>, %205, %cst_93 [1] : vector<8x128xf32> to vector<8xf32>
    %207 = arith.mulf %206, %36 : vector<8xf32>
    %208 = arith.mulf %29, %204 : vector<8x128xf32>
    %cst_94 = arith.constant dense<0.000000e+00> : vector<8xf32>
    %209 = vector.multi_reduction <add>, %208, %cst_94 [1] : vector<8x128xf32> to vector<8xf32>
    %210 = arith.mulf %209, %37 : vector<8xf32>
    %211 = arith.mulf %13, %7 : vector<8x128xf32>
    %212 = arith.mulf %5, %15 : vector<8x128xf32>
    %213 = arith.subf %211, %212 : vector<8x128xf32>
    %214 = arith.mulf %26, %213 : vector<8x128xf32>
    %cst_95 = arith.constant dense<0.000000e+00> : vector<8xf32>
    %215 = vector.multi_reduction <add>, %214, %cst_95 [1] : vector<8x128xf32> to vector<8xf32>
    %216 = arith.mulf %215, %36 : vector<8xf32>
    %217 = arith.mulf %29, %213 : vector<8x128xf32>
    %cst_96 = arith.constant dense<0.000000e+00> : vector<8xf32>
    %218 = vector.multi_reduction <add>, %217, %cst_96 [1] : vector<8x128xf32> to vector<8xf32>
    %219 = arith.mulf %218, %37 : vector<8xf32>
    %cst_97 = arith.constant 9.99999974E-6 : f32
    %220 = vector.broadcast %cst_97 : f32 to vector<8xf32>
    %221 = arith.addf %216, %220 : vector<8xf32>
    %cst_98 = arith.constant 9.99999974E-6 : f32
    %222 = vector.broadcast %cst_98 : f32 to vector<8xf32>
    %223 = arith.subf %222, %216 : vector<8xf32>
    %cst_99 = arith.constant 9.99999974E-6 : f32
    %224 = vector.broadcast %cst_99 : f32 to vector<8xf32>
    %225 = arith.addf %219, %224 : vector<8xf32>
    %cst_100 = arith.constant 9.99999974E-6 : f32
    %226 = vector.broadcast %cst_100 : f32 to vector<8xf32>
    %227 = arith.subf %226, %219 : vector<8xf32>
    %228 = arith.mulf %7, %7 : vector<8x128xf32>
    %229 = arith.mulf %15, %15 : vector<8x128xf32>
    %230 = arith.addf %228, %229 : vector<8x128xf32>
    %231 = arith.mulf %26, %230 : vector<8x128xf32>
    %cst_101 = arith.constant dense<0.000000e+00> : vector<8xf32>
    %232 = vector.multi_reduction <add>, %231, %cst_101 [1] : vector<8x128xf32> to vector<8xf32>
    %233 = arith.mulf %232, %36 : vector<8xf32>
    %234 = arith.mulf %29, %230 : vector<8x128xf32>
    %cst_102 = arith.constant dense<0.000000e+00> : vector<8xf32>
    %235 = vector.multi_reduction <add>, %234, %cst_102 [1] : vector<8x128xf32> to vector<8xf32>
    %236 = arith.mulf %235, %37 : vector<8xf32>
    %cst_103 = arith.constant 9.99999993E-9 : f32
    %237 = vector.broadcast %cst_103 : f32 to vector<8xf32>
    %238 = arith.addf %236, %237 : vector<8xf32>
    %cst_104 = arith.constant 1.000000e+00 : f32
    %239 = vector.broadcast %cst_104 : f32 to vector<8xf32>
    %cst_105 = arith.constant 0.000000e+00 : f32
    %240 = vector.broadcast %cst_105 : f32 to vector<8xf32>
    %241 = arith.mulf %49, %49 : vector<8xf32>
    %242 = arith.mulf %38, %38 : vector<8xf32>
    %243 = arith.addf %241, %242 : vector<8xf32>
    %cst_106 = arith.constant 1.000000e+00 : f32
    %244 = vector.broadcast %cst_106 : f32 to vector<8xf32>
    %245 = arith.divf %244, %243 : vector<8xf32>
    %246 = arith.mulf %49, %245 : vector<8xf32>
    %cst_107 = arith.constant 0.000000e+00 : f32
    %247 = vector.broadcast %cst_107 : f32 to vector<8xf32>
    %248 = arith.subf %247, %38 : vector<8xf32>
    %249 = arith.mulf %248, %245 : vector<8xf32>
    %250 = arith.mulf %58, %246 : vector<8xf32>
    %251 = arith.mulf %73, %249 : vector<8xf32>
    %252 = arith.subf %250, %251 : vector<8xf32>
    %253 = arith.mulf %58, %249 : vector<8xf32>
    %254 = arith.mulf %73, %246 : vector<8xf32>
    %255 = arith.addf %253, %254 : vector<8xf32>
    %256 = arith.mulf %84, %246 : vector<8xf32>
    %257 = arith.mulf %99, %249 : vector<8xf32>
    %258 = arith.subf %256, %257 : vector<8xf32>
    %259 = arith.mulf %84, %249 : vector<8xf32>
    %260 = arith.mulf %99, %246 : vector<8xf32>
    %261 = arith.addf %259, %260 : vector<8xf32>
    %262 = arith.mulf %110, %246 : vector<8xf32>
    %263 = arith.mulf %125, %249 : vector<8xf32>
    %264 = arith.subf %262, %263 : vector<8xf32>
    %265 = arith.mulf %110, %249 : vector<8xf32>
    %266 = arith.mulf %125, %246 : vector<8xf32>
    %267 = arith.addf %265, %266 : vector<8xf32>
    %268 = arith.mulf %239, %246 : vector<8xf32>
    %269 = arith.mulf %240, %249 : vector<8xf32>
    %270 = arith.subf %268, %269 : vector<8xf32>
    %271 = arith.mulf %239, %249 : vector<8xf32>
    %272 = arith.mulf %240, %246 : vector<8xf32>
    %273 = arith.addf %271, %272 : vector<8xf32>
    %274 = arith.mulf %240, %246 : vector<8xf32>
    %275 = arith.mulf %240, %249 : vector<8xf32>
    %276 = arith.subf %274, %275 : vector<8xf32>
    %277 = arith.mulf %240, %249 : vector<8xf32>
    %278 = arith.mulf %240, %246 : vector<8xf32>
    %279 = arith.addf %277, %278 : vector<8xf32>
    %280 = arith.mulf %240, %246 : vector<8xf32>
    %281 = arith.mulf %240, %249 : vector<8xf32>
    %282 = arith.subf %280, %281 : vector<8xf32>
    %283 = arith.mulf %240, %249 : vector<8xf32>
    %284 = arith.mulf %240, %246 : vector<8xf32>
    %285 = arith.addf %283, %284 : vector<8xf32>
    %286 = arith.mulf %240, %246 : vector<8xf32>
    %287 = arith.mulf %240, %249 : vector<8xf32>
    %288 = arith.subf %286, %287 : vector<8xf32>
    %289 = arith.mulf %240, %249 : vector<8xf32>
    %290 = arith.mulf %240, %246 : vector<8xf32>
    %291 = arith.addf %289, %290 : vector<8xf32>
    %292 = arith.mulf %58, %252 : vector<8xf32>
    %293 = arith.mulf %75, %255 : vector<8xf32>
    %294 = arith.subf %292, %293 : vector<8xf32>
    %295 = arith.mulf %58, %255 : vector<8xf32>
    %296 = arith.mulf %75, %252 : vector<8xf32>
    %297 = arith.addf %295, %296 : vector<8xf32>
    %298 = arith.subf %138, %294 : vector<8xf32>
    %299 = arith.subf %38, %297 : vector<8xf32>
    %300 = arith.mulf %58, %258 : vector<8xf32>
    %301 = arith.mulf %75, %261 : vector<8xf32>
    %302 = arith.subf %300, %301 : vector<8xf32>
    %303 = arith.mulf %58, %261 : vector<8xf32>
    %304 = arith.mulf %75, %258 : vector<8xf32>
    %305 = arith.addf %303, %304 : vector<8xf32>
    %306 = arith.subf %147, %302 : vector<8xf32>
    %307 = arith.subf %162, %305 : vector<8xf32>
    %308 = arith.mulf %58, %264 : vector<8xf32>
    %309 = arith.mulf %75, %267 : vector<8xf32>
    %310 = arith.subf %308, %309 : vector<8xf32>
    %311 = arith.mulf %58, %267 : vector<8xf32>
    %312 = arith.mulf %75, %264 : vector<8xf32>
    %313 = arith.addf %311, %312 : vector<8xf32>
    %314 = arith.subf %173, %310 : vector<8xf32>
    %315 = arith.subf %188, %313 : vector<8xf32>
    %316 = arith.mulf %58, %270 : vector<8xf32>
    %317 = arith.mulf %75, %273 : vector<8xf32>
    %318 = arith.subf %316, %317 : vector<8xf32>
    %319 = arith.mulf %58, %273 : vector<8xf32>
    %320 = arith.mulf %75, %270 : vector<8xf32>
    %321 = arith.addf %319, %320 : vector<8xf32>
    %322 = arith.subf %240, %318 : vector<8xf32>
    %323 = arith.subf %240, %321 : vector<8xf32>
    %324 = arith.mulf %58, %276 : vector<8xf32>
    %325 = arith.mulf %75, %279 : vector<8xf32>
    %326 = arith.subf %324, %325 : vector<8xf32>
    %327 = arith.mulf %58, %279 : vector<8xf32>
    %328 = arith.mulf %75, %276 : vector<8xf32>
    %329 = arith.addf %327, %328 : vector<8xf32>
    %330 = arith.subf %239, %326 : vector<8xf32>
    %331 = arith.subf %240, %329 : vector<8xf32>
    %332 = arith.mulf %58, %282 : vector<8xf32>
    %333 = arith.mulf %75, %285 : vector<8xf32>
    %334 = arith.subf %332, %333 : vector<8xf32>
    %335 = arith.mulf %58, %285 : vector<8xf32>
    %336 = arith.mulf %75, %282 : vector<8xf32>
    %337 = arith.addf %335, %336 : vector<8xf32>
    %338 = arith.subf %240, %334 : vector<8xf32>
    %339 = arith.subf %240, %337 : vector<8xf32>
    %340 = arith.mulf %58, %288 : vector<8xf32>
    %341 = arith.mulf %75, %291 : vector<8xf32>
    %342 = arith.subf %340, %341 : vector<8xf32>
    %343 = arith.mulf %58, %291 : vector<8xf32>
    %344 = arith.mulf %75, %288 : vector<8xf32>
    %345 = arith.addf %343, %344 : vector<8xf32>
    %346 = arith.subf %240, %342 : vector<8xf32>
    %347 = arith.subf %240, %345 : vector<8xf32>
    %348 = arith.mulf %84, %252 : vector<8xf32>
    %349 = arith.mulf %101, %255 : vector<8xf32>
    %350 = arith.subf %348, %349 : vector<8xf32>
    %351 = arith.mulf %84, %255 : vector<8xf32>
    %352 = arith.mulf %101, %252 : vector<8xf32>
    %353 = arith.addf %351, %352 : vector<8xf32>
    %354 = arith.subf %147, %350 : vector<8xf32>
    %355 = arith.subf %164, %353 : vector<8xf32>
    %356 = arith.mulf %84, %258 : vector<8xf32>
    %357 = arith.mulf %101, %261 : vector<8xf32>
    %358 = arith.subf %356, %357 : vector<8xf32>
    %359 = arith.mulf %84, %261 : vector<8xf32>
    %360 = arith.mulf %101, %258 : vector<8xf32>
    %361 = arith.addf %359, %360 : vector<8xf32>
    %362 = arith.subf %201, %358 : vector<8xf32>
    %363 = arith.subf %38, %361 : vector<8xf32>
    %364 = arith.mulf %84, %264 : vector<8xf32>
    %365 = arith.mulf %101, %267 : vector<8xf32>
    %366 = arith.subf %364, %365 : vector<8xf32>
    %367 = arith.mulf %84, %267 : vector<8xf32>
    %368 = arith.mulf %101, %264 : vector<8xf32>
    %369 = arith.addf %367, %368 : vector<8xf32>
    %370 = arith.subf %210, %366 : vector<8xf32>
    %371 = arith.subf %225, %369 : vector<8xf32>
    %372 = arith.mulf %84, %270 : vector<8xf32>
    %373 = arith.mulf %101, %273 : vector<8xf32>
    %374 = arith.subf %372, %373 : vector<8xf32>
    %375 = arith.mulf %84, %273 : vector<8xf32>
    %376 = arith.mulf %101, %270 : vector<8xf32>
    %377 = arith.addf %375, %376 : vector<8xf32>
    %378 = arith.subf %240, %374 : vector<8xf32>
    %379 = arith.subf %240, %377 : vector<8xf32>
    %380 = arith.mulf %84, %276 : vector<8xf32>
    %381 = arith.mulf %101, %279 : vector<8xf32>
    %382 = arith.subf %380, %381 : vector<8xf32>
    %383 = arith.mulf %84, %279 : vector<8xf32>
    %384 = arith.mulf %101, %276 : vector<8xf32>
    %385 = arith.addf %383, %384 : vector<8xf32>
    %386 = arith.subf %240, %382 : vector<8xf32>
    %387 = arith.subf %240, %385 : vector<8xf32>
    %388 = arith.mulf %84, %282 : vector<8xf32>
    %389 = arith.mulf %101, %285 : vector<8xf32>
    %390 = arith.subf %388, %389 : vector<8xf32>
    %391 = arith.mulf %84, %285 : vector<8xf32>
    %392 = arith.mulf %101, %282 : vector<8xf32>
    %393 = arith.addf %391, %392 : vector<8xf32>
    %394 = arith.subf %239, %390 : vector<8xf32>
    %395 = arith.subf %240, %393 : vector<8xf32>
    %396 = arith.mulf %84, %288 : vector<8xf32>
    %397 = arith.mulf %101, %291 : vector<8xf32>
    %398 = arith.subf %396, %397 : vector<8xf32>
    %399 = arith.mulf %84, %291 : vector<8xf32>
    %400 = arith.mulf %101, %288 : vector<8xf32>
    %401 = arith.addf %399, %400 : vector<8xf32>
    %402 = arith.subf %240, %398 : vector<8xf32>
    %403 = arith.subf %240, %401 : vector<8xf32>
    %404 = arith.mulf %110, %252 : vector<8xf32>
    %405 = arith.mulf %127, %255 : vector<8xf32>
    %406 = arith.subf %404, %405 : vector<8xf32>
    %407 = arith.mulf %110, %255 : vector<8xf32>
    %408 = arith.mulf %127, %252 : vector<8xf32>
    %409 = arith.addf %407, %408 : vector<8xf32>
    %410 = arith.subf %173, %406 : vector<8xf32>
    %411 = arith.subf %190, %409 : vector<8xf32>
    %412 = arith.mulf %110, %258 : vector<8xf32>
    %413 = arith.mulf %127, %261 : vector<8xf32>
    %414 = arith.subf %412, %413 : vector<8xf32>
    %415 = arith.mulf %110, %261 : vector<8xf32>
    %416 = arith.mulf %127, %258 : vector<8xf32>
    %417 = arith.addf %415, %416 : vector<8xf32>
    %418 = arith.subf %210, %414 : vector<8xf32>
    %419 = arith.subf %227, %417 : vector<8xf32>
    %420 = arith.mulf %110, %264 : vector<8xf32>
    %421 = arith.mulf %127, %267 : vector<8xf32>
    %422 = arith.subf %420, %421 : vector<8xf32>
    %423 = arith.mulf %110, %267 : vector<8xf32>
    %424 = arith.mulf %127, %264 : vector<8xf32>
    %425 = arith.addf %423, %424 : vector<8xf32>
    %426 = arith.subf %238, %422 : vector<8xf32>
    %427 = arith.subf %38, %425 : vector<8xf32>
    %428 = arith.mulf %110, %270 : vector<8xf32>
    %429 = arith.mulf %127, %273 : vector<8xf32>
    %430 = arith.subf %428, %429 : vector<8xf32>
    %431 = arith.mulf %110, %273 : vector<8xf32>
    %432 = arith.mulf %127, %270 : vector<8xf32>
    %433 = arith.addf %431, %432 : vector<8xf32>
    %434 = arith.subf %240, %430 : vector<8xf32>
    %435 = arith.subf %240, %433 : vector<8xf32>
    %436 = arith.mulf %110, %276 : vector<8xf32>
    %437 = arith.mulf %127, %279 : vector<8xf32>
    %438 = arith.subf %436, %437 : vector<8xf32>
    %439 = arith.mulf %110, %279 : vector<8xf32>
    %440 = arith.mulf %127, %276 : vector<8xf32>
    %441 = arith.addf %439, %440 : vector<8xf32>
    %442 = arith.subf %240, %438 : vector<8xf32>
    %443 = arith.subf %240, %441 : vector<8xf32>
    %444 = arith.mulf %110, %282 : vector<8xf32>
    %445 = arith.mulf %127, %285 : vector<8xf32>
    %446 = arith.subf %444, %445 : vector<8xf32>
    %447 = arith.mulf %110, %285 : vector<8xf32>
    %448 = arith.mulf %127, %282 : vector<8xf32>
    %449 = arith.addf %447, %448 : vector<8xf32>
    %450 = arith.subf %240, %446 : vector<8xf32>
    %451 = arith.subf %240, %449 : vector<8xf32>
    %452 = arith.mulf %110, %288 : vector<8xf32>
    %453 = arith.mulf %127, %291 : vector<8xf32>
    %454 = arith.subf %452, %453 : vector<8xf32>
    %455 = arith.mulf %110, %291 : vector<8xf32>
    %456 = arith.mulf %127, %288 : vector<8xf32>
    %457 = arith.addf %455, %456 : vector<8xf32>
    %458 = arith.subf %239, %454 : vector<8xf32>
    %459 = arith.subf %240, %457 : vector<8xf32>
    %460 = arith.mulf %298, %298 : vector<8xf32>
    %461 = arith.mulf %299, %299 : vector<8xf32>
    %462 = arith.addf %460, %461 : vector<8xf32>
    %cst_108 = arith.constant 1.000000e+00 : f32
    %463 = vector.broadcast %cst_108 : f32 to vector<8xf32>
    %464 = arith.divf %463, %462 : vector<8xf32>
    %465 = arith.mulf %298, %464 : vector<8xf32>
    %cst_109 = arith.constant 0.000000e+00 : f32
    %466 = vector.broadcast %cst_109 : f32 to vector<8xf32>
    %467 = arith.subf %466, %299 : vector<8xf32>
    %468 = arith.mulf %467, %464 : vector<8xf32>
    %469 = arith.mulf %306, %465 : vector<8xf32>
    %470 = arith.mulf %307, %468 : vector<8xf32>
    %471 = arith.subf %469, %470 : vector<8xf32>
    %472 = arith.mulf %306, %468 : vector<8xf32>
    %473 = arith.mulf %307, %465 : vector<8xf32>
    %474 = arith.addf %472, %473 : vector<8xf32>
    %475 = arith.mulf %314, %465 : vector<8xf32>
    %476 = arith.mulf %315, %468 : vector<8xf32>
    %477 = arith.subf %475, %476 : vector<8xf32>
    %478 = arith.mulf %314, %468 : vector<8xf32>
    %479 = arith.mulf %315, %465 : vector<8xf32>
    %480 = arith.addf %478, %479 : vector<8xf32>
    %481 = arith.mulf %322, %465 : vector<8xf32>
    %482 = arith.mulf %323, %468 : vector<8xf32>
    %483 = arith.subf %481, %482 : vector<8xf32>
    %484 = arith.mulf %322, %468 : vector<8xf32>
    %485 = arith.mulf %323, %465 : vector<8xf32>
    %486 = arith.addf %484, %485 : vector<8xf32>
    %487 = arith.mulf %330, %465 : vector<8xf32>
    %488 = arith.mulf %331, %468 : vector<8xf32>
    %489 = arith.subf %487, %488 : vector<8xf32>
    %490 = arith.mulf %330, %468 : vector<8xf32>
    %491 = arith.mulf %331, %465 : vector<8xf32>
    %492 = arith.addf %490, %491 : vector<8xf32>
    %493 = arith.mulf %338, %465 : vector<8xf32>
    %494 = arith.mulf %339, %468 : vector<8xf32>
    %495 = arith.subf %493, %494 : vector<8xf32>
    %496 = arith.mulf %338, %468 : vector<8xf32>
    %497 = arith.mulf %339, %465 : vector<8xf32>
    %498 = arith.addf %496, %497 : vector<8xf32>
    %499 = arith.mulf %346, %465 : vector<8xf32>
    %500 = arith.mulf %347, %468 : vector<8xf32>
    %501 = arith.subf %499, %500 : vector<8xf32>
    %502 = arith.mulf %346, %468 : vector<8xf32>
    %503 = arith.mulf %347, %465 : vector<8xf32>
    %504 = arith.addf %502, %503 : vector<8xf32>
    %505 = arith.mulf %252, %471 : vector<8xf32>
    %506 = arith.mulf %255, %474 : vector<8xf32>
    %507 = arith.subf %505, %506 : vector<8xf32>
    %508 = arith.mulf %252, %474 : vector<8xf32>
    %509 = arith.mulf %255, %471 : vector<8xf32>
    %510 = arith.addf %508, %509 : vector<8xf32>
    %511 = arith.subf %258, %507 : vector<8xf32>
    %512 = arith.subf %261, %510 : vector<8xf32>
    %513 = arith.mulf %252, %477 : vector<8xf32>
    %514 = arith.mulf %255, %480 : vector<8xf32>
    %515 = arith.subf %513, %514 : vector<8xf32>
    %516 = arith.mulf %252, %480 : vector<8xf32>
    %517 = arith.mulf %255, %477 : vector<8xf32>
    %518 = arith.addf %516, %517 : vector<8xf32>
    %519 = arith.subf %264, %515 : vector<8xf32>
    %520 = arith.subf %267, %518 : vector<8xf32>
    %521 = arith.mulf %252, %483 : vector<8xf32>
    %522 = arith.mulf %255, %486 : vector<8xf32>
    %523 = arith.subf %521, %522 : vector<8xf32>
    %524 = arith.mulf %252, %486 : vector<8xf32>
    %525 = arith.mulf %255, %483 : vector<8xf32>
    %526 = arith.addf %524, %525 : vector<8xf32>
    %527 = arith.subf %270, %523 : vector<8xf32>
    %528 = arith.subf %273, %526 : vector<8xf32>
    %529 = arith.mulf %252, %489 : vector<8xf32>
    %530 = arith.mulf %255, %492 : vector<8xf32>
    %531 = arith.subf %529, %530 : vector<8xf32>
    %532 = arith.mulf %252, %492 : vector<8xf32>
    %533 = arith.mulf %255, %489 : vector<8xf32>
    %534 = arith.addf %532, %533 : vector<8xf32>
    %535 = arith.subf %276, %531 : vector<8xf32>
    %536 = arith.subf %279, %534 : vector<8xf32>
    %537 = arith.mulf %252, %495 : vector<8xf32>
    %538 = arith.mulf %255, %498 : vector<8xf32>
    %539 = arith.subf %537, %538 : vector<8xf32>
    %540 = arith.mulf %252, %498 : vector<8xf32>
    %541 = arith.mulf %255, %495 : vector<8xf32>
    %542 = arith.addf %540, %541 : vector<8xf32>
    %543 = arith.subf %282, %539 : vector<8xf32>
    %544 = arith.subf %285, %542 : vector<8xf32>
    %545 = arith.mulf %252, %501 : vector<8xf32>
    %546 = arith.mulf %255, %504 : vector<8xf32>
    %547 = arith.subf %545, %546 : vector<8xf32>
    %548 = arith.mulf %252, %504 : vector<8xf32>
    %549 = arith.mulf %255, %501 : vector<8xf32>
    %550 = arith.addf %548, %549 : vector<8xf32>
    %551 = arith.subf %288, %547 : vector<8xf32>
    %552 = arith.subf %291, %550 : vector<8xf32>
    %553 = arith.mulf %354, %471 : vector<8xf32>
    %554 = arith.mulf %355, %474 : vector<8xf32>
    %555 = arith.subf %553, %554 : vector<8xf32>
    %556 = arith.mulf %354, %474 : vector<8xf32>
    %557 = arith.mulf %355, %471 : vector<8xf32>
    %558 = arith.addf %556, %557 : vector<8xf32>
    %559 = arith.subf %362, %555 : vector<8xf32>
    %560 = arith.subf %363, %558 : vector<8xf32>
    %561 = arith.mulf %354, %477 : vector<8xf32>
    %562 = arith.mulf %355, %480 : vector<8xf32>
    %563 = arith.subf %561, %562 : vector<8xf32>
    %564 = arith.mulf %354, %480 : vector<8xf32>
    %565 = arith.mulf %355, %477 : vector<8xf32>
    %566 = arith.addf %564, %565 : vector<8xf32>
    %567 = arith.subf %370, %563 : vector<8xf32>
    %568 = arith.subf %371, %566 : vector<8xf32>
    %569 = arith.mulf %354, %483 : vector<8xf32>
    %570 = arith.mulf %355, %486 : vector<8xf32>
    %571 = arith.subf %569, %570 : vector<8xf32>
    %572 = arith.mulf %354, %486 : vector<8xf32>
    %573 = arith.mulf %355, %483 : vector<8xf32>
    %574 = arith.addf %572, %573 : vector<8xf32>
    %575 = arith.subf %378, %571 : vector<8xf32>
    %576 = arith.subf %379, %574 : vector<8xf32>
    %577 = arith.mulf %354, %489 : vector<8xf32>
    %578 = arith.mulf %355, %492 : vector<8xf32>
    %579 = arith.subf %577, %578 : vector<8xf32>
    %580 = arith.mulf %354, %492 : vector<8xf32>
    %581 = arith.mulf %355, %489 : vector<8xf32>
    %582 = arith.addf %580, %581 : vector<8xf32>
    %583 = arith.subf %386, %579 : vector<8xf32>
    %584 = arith.subf %387, %582 : vector<8xf32>
    %585 = arith.mulf %354, %495 : vector<8xf32>
    %586 = arith.mulf %355, %498 : vector<8xf32>
    %587 = arith.subf %585, %586 : vector<8xf32>
    %588 = arith.mulf %354, %498 : vector<8xf32>
    %589 = arith.mulf %355, %495 : vector<8xf32>
    %590 = arith.addf %588, %589 : vector<8xf32>
    %591 = arith.subf %394, %587 : vector<8xf32>
    %592 = arith.subf %395, %590 : vector<8xf32>
    %593 = arith.mulf %354, %501 : vector<8xf32>
    %594 = arith.mulf %355, %504 : vector<8xf32>
    %595 = arith.subf %593, %594 : vector<8xf32>
    %596 = arith.mulf %354, %504 : vector<8xf32>
    %597 = arith.mulf %355, %501 : vector<8xf32>
    %598 = arith.addf %596, %597 : vector<8xf32>
    %599 = arith.subf %402, %595 : vector<8xf32>
    %600 = arith.subf %403, %598 : vector<8xf32>
    %601 = arith.mulf %410, %471 : vector<8xf32>
    %602 = arith.mulf %411, %474 : vector<8xf32>
    %603 = arith.subf %601, %602 : vector<8xf32>
    %604 = arith.mulf %410, %474 : vector<8xf32>
    %605 = arith.mulf %411, %471 : vector<8xf32>
    %606 = arith.addf %604, %605 : vector<8xf32>
    %607 = arith.subf %418, %603 : vector<8xf32>
    %608 = arith.subf %419, %606 : vector<8xf32>
    %609 = arith.mulf %410, %477 : vector<8xf32>
    %610 = arith.mulf %411, %480 : vector<8xf32>
    %611 = arith.subf %609, %610 : vector<8xf32>
    %612 = arith.mulf %410, %480 : vector<8xf32>
    %613 = arith.mulf %411, %477 : vector<8xf32>
    %614 = arith.addf %612, %613 : vector<8xf32>
    %615 = arith.subf %426, %611 : vector<8xf32>
    %616 = arith.subf %427, %614 : vector<8xf32>
    %617 = arith.mulf %410, %483 : vector<8xf32>
    %618 = arith.mulf %411, %486 : vector<8xf32>
    %619 = arith.subf %617, %618 : vector<8xf32>
    %620 = arith.mulf %410, %486 : vector<8xf32>
    %621 = arith.mulf %411, %483 : vector<8xf32>
    %622 = arith.addf %620, %621 : vector<8xf32>
    %623 = arith.subf %434, %619 : vector<8xf32>
    %624 = arith.subf %435, %622 : vector<8xf32>
    %625 = arith.mulf %410, %489 : vector<8xf32>
    %626 = arith.mulf %411, %492 : vector<8xf32>
    %627 = arith.subf %625, %626 : vector<8xf32>
    %628 = arith.mulf %410, %492 : vector<8xf32>
    %629 = arith.mulf %411, %489 : vector<8xf32>
    %630 = arith.addf %628, %629 : vector<8xf32>
    %631 = arith.subf %442, %627 : vector<8xf32>
    %632 = arith.subf %443, %630 : vector<8xf32>
    %633 = arith.mulf %410, %495 : vector<8xf32>
    %634 = arith.mulf %411, %498 : vector<8xf32>
    %635 = arith.subf %633, %634 : vector<8xf32>
    %636 = arith.mulf %410, %498 : vector<8xf32>
    %637 = arith.mulf %411, %495 : vector<8xf32>
    %638 = arith.addf %636, %637 : vector<8xf32>
    %639 = arith.subf %450, %635 : vector<8xf32>
    %640 = arith.subf %451, %638 : vector<8xf32>
    %641 = arith.mulf %410, %501 : vector<8xf32>
    %642 = arith.mulf %411, %504 : vector<8xf32>
    %643 = arith.subf %641, %642 : vector<8xf32>
    %644 = arith.mulf %410, %504 : vector<8xf32>
    %645 = arith.mulf %411, %501 : vector<8xf32>
    %646 = arith.addf %644, %645 : vector<8xf32>
    %647 = arith.subf %458, %643 : vector<8xf32>
    %648 = arith.subf %459, %646 : vector<8xf32>
    %649 = arith.mulf %559, %559 : vector<8xf32>
    %650 = arith.mulf %560, %560 : vector<8xf32>
    %651 = arith.addf %649, %650 : vector<8xf32>
    %cst_110 = arith.constant 1.000000e+00 : f32
    %652 = vector.broadcast %cst_110 : f32 to vector<8xf32>
    %653 = arith.divf %652, %651 : vector<8xf32>
    %654 = arith.mulf %559, %653 : vector<8xf32>
    %cst_111 = arith.constant 0.000000e+00 : f32
    %655 = vector.broadcast %cst_111 : f32 to vector<8xf32>
    %656 = arith.subf %655, %560 : vector<8xf32>
    %657 = arith.mulf %656, %653 : vector<8xf32>
    %658 = arith.mulf %567, %654 : vector<8xf32>
    %659 = arith.mulf %568, %657 : vector<8xf32>
    %660 = arith.subf %658, %659 : vector<8xf32>
    %661 = arith.mulf %567, %657 : vector<8xf32>
    %662 = arith.mulf %568, %654 : vector<8xf32>
    %663 = arith.addf %661, %662 : vector<8xf32>
    %664 = arith.mulf %575, %654 : vector<8xf32>
    %665 = arith.mulf %576, %657 : vector<8xf32>
    %666 = arith.subf %664, %665 : vector<8xf32>
    %667 = arith.mulf %575, %657 : vector<8xf32>
    %668 = arith.mulf %576, %654 : vector<8xf32>
    %669 = arith.addf %667, %668 : vector<8xf32>
    %670 = arith.mulf %583, %654 : vector<8xf32>
    %671 = arith.mulf %584, %657 : vector<8xf32>
    %672 = arith.subf %670, %671 : vector<8xf32>
    %673 = arith.mulf %583, %657 : vector<8xf32>
    %674 = arith.mulf %584, %654 : vector<8xf32>
    %675 = arith.addf %673, %674 : vector<8xf32>
    %676 = arith.mulf %591, %654 : vector<8xf32>
    %677 = arith.mulf %592, %657 : vector<8xf32>
    %678 = arith.subf %676, %677 : vector<8xf32>
    %679 = arith.mulf %591, %657 : vector<8xf32>
    %680 = arith.mulf %592, %654 : vector<8xf32>
    %681 = arith.addf %679, %680 : vector<8xf32>
    %682 = arith.mulf %599, %654 : vector<8xf32>
    %683 = arith.mulf %600, %657 : vector<8xf32>
    %684 = arith.subf %682, %683 : vector<8xf32>
    %685 = arith.mulf %599, %657 : vector<8xf32>
    %686 = arith.mulf %600, %654 : vector<8xf32>
    %687 = arith.addf %685, %686 : vector<8xf32>
    %688 = arith.mulf %511, %660 : vector<8xf32>
    %689 = arith.mulf %512, %663 : vector<8xf32>
    %690 = arith.subf %688, %689 : vector<8xf32>
    %691 = arith.mulf %511, %663 : vector<8xf32>
    %692 = arith.mulf %512, %660 : vector<8xf32>
    %693 = arith.addf %691, %692 : vector<8xf32>
    %694 = arith.subf %519, %690 : vector<8xf32>
    %695 = arith.subf %520, %693 : vector<8xf32>
    %696 = arith.mulf %511, %666 : vector<8xf32>
    %697 = arith.mulf %512, %669 : vector<8xf32>
    %698 = arith.subf %696, %697 : vector<8xf32>
    %699 = arith.mulf %511, %669 : vector<8xf32>
    %700 = arith.mulf %512, %666 : vector<8xf32>
    %701 = arith.addf %699, %700 : vector<8xf32>
    %702 = arith.subf %527, %698 : vector<8xf32>
    %703 = arith.subf %528, %701 : vector<8xf32>
    %704 = arith.mulf %511, %672 : vector<8xf32>
    %705 = arith.mulf %512, %675 : vector<8xf32>
    %706 = arith.subf %704, %705 : vector<8xf32>
    %707 = arith.mulf %511, %675 : vector<8xf32>
    %708 = arith.mulf %512, %672 : vector<8xf32>
    %709 = arith.addf %707, %708 : vector<8xf32>
    %710 = arith.subf %535, %706 : vector<8xf32>
    %711 = arith.subf %536, %709 : vector<8xf32>
    %712 = arith.mulf %511, %678 : vector<8xf32>
    %713 = arith.mulf %512, %681 : vector<8xf32>
    %714 = arith.subf %712, %713 : vector<8xf32>
    %715 = arith.mulf %511, %681 : vector<8xf32>
    %716 = arith.mulf %512, %678 : vector<8xf32>
    %717 = arith.addf %715, %716 : vector<8xf32>
    %718 = arith.subf %543, %714 : vector<8xf32>
    %719 = arith.subf %544, %717 : vector<8xf32>
    %720 = arith.mulf %511, %684 : vector<8xf32>
    %721 = arith.mulf %512, %687 : vector<8xf32>
    %722 = arith.subf %720, %721 : vector<8xf32>
    %723 = arith.mulf %511, %687 : vector<8xf32>
    %724 = arith.mulf %512, %684 : vector<8xf32>
    %725 = arith.addf %723, %724 : vector<8xf32>
    %726 = arith.subf %551, %722 : vector<8xf32>
    %727 = arith.subf %552, %725 : vector<8xf32>
    %728 = arith.mulf %471, %660 : vector<8xf32>
    %729 = arith.mulf %474, %663 : vector<8xf32>
    %730 = arith.subf %728, %729 : vector<8xf32>
    %731 = arith.mulf %471, %663 : vector<8xf32>
    %732 = arith.mulf %474, %660 : vector<8xf32>
    %733 = arith.addf %731, %732 : vector<8xf32>
    %734 = arith.subf %477, %730 : vector<8xf32>
    %735 = arith.subf %480, %733 : vector<8xf32>
    %736 = arith.mulf %471, %666 : vector<8xf32>
    %737 = arith.mulf %474, %669 : vector<8xf32>
    %738 = arith.subf %736, %737 : vector<8xf32>
    %739 = arith.mulf %471, %669 : vector<8xf32>
    %740 = arith.mulf %474, %666 : vector<8xf32>
    %741 = arith.addf %739, %740 : vector<8xf32>
    %742 = arith.subf %483, %738 : vector<8xf32>
    %743 = arith.subf %486, %741 : vector<8xf32>
    %744 = arith.mulf %471, %672 : vector<8xf32>
    %745 = arith.mulf %474, %675 : vector<8xf32>
    %746 = arith.subf %744, %745 : vector<8xf32>
    %747 = arith.mulf %471, %675 : vector<8xf32>
    %748 = arith.mulf %474, %672 : vector<8xf32>
    %749 = arith.addf %747, %748 : vector<8xf32>
    %750 = arith.subf %489, %746 : vector<8xf32>
    %751 = arith.subf %492, %749 : vector<8xf32>
    %752 = arith.mulf %471, %678 : vector<8xf32>
    %753 = arith.mulf %474, %681 : vector<8xf32>
    %754 = arith.subf %752, %753 : vector<8xf32>
    %755 = arith.mulf %471, %681 : vector<8xf32>
    %756 = arith.mulf %474, %678 : vector<8xf32>
    %757 = arith.addf %755, %756 : vector<8xf32>
    %758 = arith.subf %495, %754 : vector<8xf32>
    %759 = arith.subf %498, %757 : vector<8xf32>
    %760 = arith.mulf %471, %684 : vector<8xf32>
    %761 = arith.mulf %474, %687 : vector<8xf32>
    %762 = arith.subf %760, %761 : vector<8xf32>
    %763 = arith.mulf %471, %687 : vector<8xf32>
    %764 = arith.mulf %474, %684 : vector<8xf32>
    %765 = arith.addf %763, %764 : vector<8xf32>
    %766 = arith.subf %501, %762 : vector<8xf32>
    %767 = arith.subf %504, %765 : vector<8xf32>
    %768 = arith.mulf %607, %660 : vector<8xf32>
    %769 = arith.mulf %608, %663 : vector<8xf32>
    %770 = arith.subf %768, %769 : vector<8xf32>
    %771 = arith.mulf %607, %663 : vector<8xf32>
    %772 = arith.mulf %608, %660 : vector<8xf32>
    %773 = arith.addf %771, %772 : vector<8xf32>
    %774 = arith.subf %615, %770 : vector<8xf32>
    %775 = arith.subf %616, %773 : vector<8xf32>
    %776 = arith.mulf %607, %666 : vector<8xf32>
    %777 = arith.mulf %608, %669 : vector<8xf32>
    %778 = arith.subf %776, %777 : vector<8xf32>
    %779 = arith.mulf %607, %669 : vector<8xf32>
    %780 = arith.mulf %608, %666 : vector<8xf32>
    %781 = arith.addf %779, %780 : vector<8xf32>
    %782 = arith.subf %623, %778 : vector<8xf32>
    %783 = arith.subf %624, %781 : vector<8xf32>
    %784 = arith.mulf %607, %672 : vector<8xf32>
    %785 = arith.mulf %608, %675 : vector<8xf32>
    %786 = arith.subf %784, %785 : vector<8xf32>
    %787 = arith.mulf %607, %675 : vector<8xf32>
    %788 = arith.mulf %608, %672 : vector<8xf32>
    %789 = arith.addf %787, %788 : vector<8xf32>
    %790 = arith.subf %631, %786 : vector<8xf32>
    %791 = arith.subf %632, %789 : vector<8xf32>
    %792 = arith.mulf %607, %678 : vector<8xf32>
    %793 = arith.mulf %608, %681 : vector<8xf32>
    %794 = arith.subf %792, %793 : vector<8xf32>
    %795 = arith.mulf %607, %681 : vector<8xf32>
    %796 = arith.mulf %608, %678 : vector<8xf32>
    %797 = arith.addf %795, %796 : vector<8xf32>
    %798 = arith.subf %639, %794 : vector<8xf32>
    %799 = arith.subf %640, %797 : vector<8xf32>
    %800 = arith.mulf %607, %684 : vector<8xf32>
    %801 = arith.mulf %608, %687 : vector<8xf32>
    %802 = arith.subf %800, %801 : vector<8xf32>
    %803 = arith.mulf %607, %687 : vector<8xf32>
    %804 = arith.mulf %608, %684 : vector<8xf32>
    %805 = arith.addf %803, %804 : vector<8xf32>
    %806 = arith.subf %647, %802 : vector<8xf32>
    %807 = arith.subf %648, %805 : vector<8xf32>
    %808 = arith.mulf %774, %774 : vector<8xf32>
    %809 = arith.mulf %775, %775 : vector<8xf32>
    %810 = arith.addf %808, %809 : vector<8xf32>
    %cst_112 = arith.constant 1.000000e+00 : f32
    %811 = vector.broadcast %cst_112 : f32 to vector<8xf32>
    %812 = arith.divf %811, %810 : vector<8xf32>
    %813 = arith.mulf %774, %812 : vector<8xf32>
    %cst_113 = arith.constant 0.000000e+00 : f32
    %814 = vector.broadcast %cst_113 : f32 to vector<8xf32>
    %815 = arith.subf %814, %775 : vector<8xf32>
    %816 = arith.mulf %815, %812 : vector<8xf32>
    %817 = arith.mulf %782, %813 : vector<8xf32>
    %818 = arith.mulf %783, %816 : vector<8xf32>
    %819 = arith.subf %817, %818 : vector<8xf32>
    %820 = arith.mulf %782, %816 : vector<8xf32>
    %821 = arith.mulf %783, %813 : vector<8xf32>
    %822 = arith.addf %820, %821 : vector<8xf32>
    %823 = arith.mulf %790, %813 : vector<8xf32>
    %824 = arith.mulf %791, %816 : vector<8xf32>
    %825 = arith.subf %823, %824 : vector<8xf32>
    %826 = arith.mulf %790, %816 : vector<8xf32>
    %827 = arith.mulf %791, %813 : vector<8xf32>
    %828 = arith.addf %826, %827 : vector<8xf32>
    %829 = arith.mulf %798, %813 : vector<8xf32>
    %830 = arith.mulf %799, %816 : vector<8xf32>
    %831 = arith.subf %829, %830 : vector<8xf32>
    %832 = arith.mulf %798, %816 : vector<8xf32>
    %833 = arith.mulf %799, %813 : vector<8xf32>
    %834 = arith.addf %832, %833 : vector<8xf32>
    %835 = arith.mulf %806, %813 : vector<8xf32>
    %836 = arith.mulf %807, %816 : vector<8xf32>
    %837 = arith.subf %835, %836 : vector<8xf32>
    %838 = arith.mulf %806, %816 : vector<8xf32>
    %839 = arith.mulf %807, %813 : vector<8xf32>
    %840 = arith.addf %838, %839 : vector<8xf32>
    %841 = arith.mulf %694, %819 : vector<8xf32>
    %842 = arith.mulf %695, %822 : vector<8xf32>
    %843 = arith.subf %841, %842 : vector<8xf32>
    %844 = arith.mulf %694, %822 : vector<8xf32>
    %845 = arith.mulf %695, %819 : vector<8xf32>
    %846 = arith.addf %844, %845 : vector<8xf32>
    %847 = arith.subf %702, %843 : vector<8xf32>
    %848 = arith.subf %703, %846 : vector<8xf32>
    %849 = arith.mulf %694, %825 : vector<8xf32>
    %850 = arith.mulf %695, %828 : vector<8xf32>
    %851 = arith.subf %849, %850 : vector<8xf32>
    %852 = arith.mulf %694, %828 : vector<8xf32>
    %853 = arith.mulf %695, %825 : vector<8xf32>
    %854 = arith.addf %852, %853 : vector<8xf32>
    %855 = arith.subf %710, %851 : vector<8xf32>
    %856 = arith.subf %711, %854 : vector<8xf32>
    %857 = arith.mulf %694, %831 : vector<8xf32>
    %858 = arith.mulf %695, %834 : vector<8xf32>
    %859 = arith.subf %857, %858 : vector<8xf32>
    %860 = arith.mulf %694, %834 : vector<8xf32>
    %861 = arith.mulf %695, %831 : vector<8xf32>
    %862 = arith.addf %860, %861 : vector<8xf32>
    %863 = arith.subf %718, %859 : vector<8xf32>
    %864 = arith.subf %719, %862 : vector<8xf32>
    %865 = arith.mulf %694, %837 : vector<8xf32>
    %866 = arith.mulf %695, %840 : vector<8xf32>
    %867 = arith.subf %865, %866 : vector<8xf32>
    %868 = arith.mulf %694, %840 : vector<8xf32>
    %869 = arith.mulf %695, %837 : vector<8xf32>
    %870 = arith.addf %868, %869 : vector<8xf32>
    %871 = arith.subf %726, %867 : vector<8xf32>
    %872 = arith.subf %727, %870 : vector<8xf32>
    %873 = arith.mulf %734, %819 : vector<8xf32>
    %874 = arith.mulf %735, %822 : vector<8xf32>
    %875 = arith.subf %873, %874 : vector<8xf32>
    %876 = arith.mulf %734, %822 : vector<8xf32>
    %877 = arith.mulf %735, %819 : vector<8xf32>
    %878 = arith.addf %876, %877 : vector<8xf32>
    %879 = arith.subf %742, %875 : vector<8xf32>
    %880 = arith.subf %743, %878 : vector<8xf32>
    %881 = arith.mulf %734, %825 : vector<8xf32>
    %882 = arith.mulf %735, %828 : vector<8xf32>
    %883 = arith.subf %881, %882 : vector<8xf32>
    %884 = arith.mulf %734, %828 : vector<8xf32>
    %885 = arith.mulf %735, %825 : vector<8xf32>
    %886 = arith.addf %884, %885 : vector<8xf32>
    %887 = arith.subf %750, %883 : vector<8xf32>
    %888 = arith.subf %751, %886 : vector<8xf32>
    %889 = arith.mulf %734, %831 : vector<8xf32>
    %890 = arith.mulf %735, %834 : vector<8xf32>
    %891 = arith.subf %889, %890 : vector<8xf32>
    %892 = arith.mulf %734, %834 : vector<8xf32>
    %893 = arith.mulf %735, %831 : vector<8xf32>
    %894 = arith.addf %892, %893 : vector<8xf32>
    %895 = arith.subf %758, %891 : vector<8xf32>
    %896 = arith.subf %759, %894 : vector<8xf32>
    %897 = arith.mulf %734, %837 : vector<8xf32>
    %898 = arith.mulf %735, %840 : vector<8xf32>
    %899 = arith.subf %897, %898 : vector<8xf32>
    %900 = arith.mulf %734, %840 : vector<8xf32>
    %901 = arith.mulf %735, %837 : vector<8xf32>
    %902 = arith.addf %900, %901 : vector<8xf32>
    %903 = arith.subf %766, %899 : vector<8xf32>
    %904 = arith.subf %767, %902 : vector<8xf32>
    %905 = arith.mulf %660, %819 : vector<8xf32>
    %906 = arith.mulf %663, %822 : vector<8xf32>
    %907 = arith.subf %905, %906 : vector<8xf32>
    %908 = arith.mulf %660, %822 : vector<8xf32>
    %909 = arith.mulf %663, %819 : vector<8xf32>
    %910 = arith.addf %908, %909 : vector<8xf32>
    %911 = arith.subf %666, %907 : vector<8xf32>
    %912 = arith.subf %669, %910 : vector<8xf32>
    %913 = arith.mulf %660, %825 : vector<8xf32>
    %914 = arith.mulf %663, %828 : vector<8xf32>
    %915 = arith.subf %913, %914 : vector<8xf32>
    %916 = arith.mulf %660, %828 : vector<8xf32>
    %917 = arith.mulf %663, %825 : vector<8xf32>
    %918 = arith.addf %916, %917 : vector<8xf32>
    %919 = arith.subf %672, %915 : vector<8xf32>
    %920 = arith.subf %675, %918 : vector<8xf32>
    %921 = arith.mulf %660, %831 : vector<8xf32>
    %922 = arith.mulf %663, %834 : vector<8xf32>
    %923 = arith.subf %921, %922 : vector<8xf32>
    %924 = arith.mulf %660, %834 : vector<8xf32>
    %925 = arith.mulf %663, %831 : vector<8xf32>
    %926 = arith.addf %924, %925 : vector<8xf32>
    %927 = arith.subf %678, %923 : vector<8xf32>
    %928 = arith.subf %681, %926 : vector<8xf32>
    %929 = arith.mulf %660, %837 : vector<8xf32>
    %930 = arith.mulf %663, %840 : vector<8xf32>
    %931 = arith.subf %929, %930 : vector<8xf32>
    %932 = arith.mulf %660, %840 : vector<8xf32>
    %933 = arith.mulf %663, %837 : vector<8xf32>
    %934 = arith.addf %932, %933 : vector<8xf32>
    %935 = arith.subf %684, %931 : vector<8xf32>
    %936 = arith.subf %687, %934 : vector<8xf32>
    %cst_114 = arith.constant 9.99999993E-9 : f32
    %937 = vector.broadcast %cst_114 : f32 to vector<8xf32>
    %938 = arith.addf %848, %937 : vector<8xf32>
    %cst_115 = arith.constant 9.99999993E-9 : f32
    %939 = vector.broadcast %cst_115 : f32 to vector<8xf32>
    %940 = arith.addf %856, %939 : vector<8xf32>
    %cst_116 = arith.constant 9.99999993E-9 : f32
    %941 = vector.broadcast %cst_116 : f32 to vector<8xf32>
    %942 = arith.addf %864, %941 : vector<8xf32>
    %cst_117 = arith.constant 9.99999993E-9 : f32
    %943 = vector.broadcast %cst_117 : f32 to vector<8xf32>
    %944 = arith.addf %872, %943 : vector<8xf32>
    %cst_118 = arith.constant 9.99999993E-9 : f32
    %945 = vector.broadcast %cst_118 : f32 to vector<8xf32>
    %946 = arith.addf %880, %945 : vector<8xf32>
    %cst_119 = arith.constant 9.99999993E-9 : f32
    %947 = vector.broadcast %cst_119 : f32 to vector<8xf32>
    %948 = arith.addf %888, %947 : vector<8xf32>
    %cst_120 = arith.constant 9.99999993E-9 : f32
    %949 = vector.broadcast %cst_120 : f32 to vector<8xf32>
    %950 = arith.addf %896, %949 : vector<8xf32>
    %cst_121 = arith.constant 9.99999993E-9 : f32
    %951 = vector.broadcast %cst_121 : f32 to vector<8xf32>
    %952 = arith.addf %904, %951 : vector<8xf32>
    %cst_122 = arith.constant 9.99999993E-9 : f32
    %953 = vector.broadcast %cst_122 : f32 to vector<8xf32>
    %954 = arith.addf %912, %953 : vector<8xf32>
    %cst_123 = arith.constant 9.99999993E-9 : f32
    %955 = vector.broadcast %cst_123 : f32 to vector<8xf32>
    %956 = arith.addf %920, %955 : vector<8xf32>
    %cst_124 = arith.constant 9.99999993E-9 : f32
    %957 = vector.broadcast %cst_124 : f32 to vector<8xf32>
    %958 = arith.addf %928, %957 : vector<8xf32>
    %cst_125 = arith.constant 9.99999993E-9 : f32
    %959 = vector.broadcast %cst_125 : f32 to vector<8xf32>
    %960 = arith.addf %936, %959 : vector<8xf32>
    %cst_126 = arith.constant 9.99999993E-9 : f32
    %961 = vector.broadcast %cst_126 : f32 to vector<8xf32>
    %962 = arith.addf %822, %961 : vector<8xf32>
    %cst_127 = arith.constant 9.99999993E-9 : f32
    %963 = vector.broadcast %cst_127 : f32 to vector<8xf32>
    %964 = arith.addf %828, %963 : vector<8xf32>
    %cst_128 = arith.constant 9.99999993E-9 : f32
    %965 = vector.broadcast %cst_128 : f32 to vector<8xf32>
    %966 = arith.addf %834, %965 : vector<8xf32>
    %cst_129 = arith.constant 9.99999993E-9 : f32
    %967 = vector.broadcast %cst_129 : f32 to vector<8xf32>
    %968 = arith.addf %840, %967 : vector<8xf32>
    %969 = arith.mulf %847, %44 : vector<8xf32>
    %970 = arith.mulf %938, %38 : vector<8xf32>
    %971 = arith.subf %969, %970 : vector<8xf32>
    %972 = arith.mulf %847, %38 : vector<8xf32>
    %973 = arith.mulf %938, %44 : vector<8xf32>
    %974 = arith.addf %972, %973 : vector<8xf32>
    %975 = arith.mulf %855, %55 : vector<8xf32>
    %976 = arith.mulf %940, %71 : vector<8xf32>
    %977 = arith.subf %975, %976 : vector<8xf32>
    %978 = arith.mulf %855, %71 : vector<8xf32>
    %979 = arith.mulf %940, %55 : vector<8xf32>
    %980 = arith.addf %978, %979 : vector<8xf32>
    %981 = arith.addf %971, %977 : vector<8xf32>
    %982 = arith.addf %974, %980 : vector<8xf32>
    %983 = arith.mulf %863, %81 : vector<8xf32>
    %984 = arith.mulf %942, %97 : vector<8xf32>
    %985 = arith.subf %983, %984 : vector<8xf32>
    %986 = arith.mulf %863, %97 : vector<8xf32>
    %987 = arith.mulf %942, %81 : vector<8xf32>
    %988 = arith.addf %986, %987 : vector<8xf32>
    %989 = arith.addf %981, %985 : vector<8xf32>
    %990 = arith.addf %982, %988 : vector<8xf32>
    %991 = arith.mulf %871, %107 : vector<8xf32>
    %992 = arith.mulf %944, %123 : vector<8xf32>
    %993 = arith.subf %991, %992 : vector<8xf32>
    %994 = arith.mulf %871, %123 : vector<8xf32>
    %995 = arith.mulf %944, %107 : vector<8xf32>
    %996 = arith.addf %994, %995 : vector<8xf32>
    %997 = arith.addf %989, %993 : vector<8xf32>
    %998 = arith.addf %990, %996 : vector<8xf32>
    %999 = arith.mulf %879, %44 : vector<8xf32>
    %1000 = arith.mulf %946, %38 : vector<8xf32>
    %1001 = arith.subf %999, %1000 : vector<8xf32>
    %1002 = arith.mulf %879, %38 : vector<8xf32>
    %1003 = arith.mulf %946, %44 : vector<8xf32>
    %1004 = arith.addf %1002, %1003 : vector<8xf32>
    %1005 = arith.mulf %887, %55 : vector<8xf32>
    %1006 = arith.mulf %948, %71 : vector<8xf32>
    %1007 = arith.subf %1005, %1006 : vector<8xf32>
    %1008 = arith.mulf %887, %71 : vector<8xf32>
    %1009 = arith.mulf %948, %55 : vector<8xf32>
    %1010 = arith.addf %1008, %1009 : vector<8xf32>
    %1011 = arith.addf %1001, %1007 : vector<8xf32>
    %1012 = arith.addf %1004, %1010 : vector<8xf32>
    %1013 = arith.mulf %895, %81 : vector<8xf32>
    %1014 = arith.mulf %950, %97 : vector<8xf32>
    %1015 = arith.subf %1013, %1014 : vector<8xf32>
    %1016 = arith.mulf %895, %97 : vector<8xf32>
    %1017 = arith.mulf %950, %81 : vector<8xf32>
    %1018 = arith.addf %1016, %1017 : vector<8xf32>
    %1019 = arith.addf %1011, %1015 : vector<8xf32>
    %1020 = arith.addf %1012, %1018 : vector<8xf32>
    %1021 = arith.mulf %903, %107 : vector<8xf32>
    %1022 = arith.mulf %952, %123 : vector<8xf32>
    %1023 = arith.subf %1021, %1022 : vector<8xf32>
    %1024 = arith.mulf %903, %123 : vector<8xf32>
    %1025 = arith.mulf %952, %107 : vector<8xf32>
    %1026 = arith.addf %1024, %1025 : vector<8xf32>
    %1027 = arith.addf %1019, %1023 : vector<8xf32>
    %1028 = arith.addf %1020, %1026 : vector<8xf32>
    %1029 = arith.mulf %911, %44 : vector<8xf32>
    %1030 = arith.mulf %954, %38 : vector<8xf32>
    %1031 = arith.subf %1029, %1030 : vector<8xf32>
    %1032 = arith.mulf %911, %38 : vector<8xf32>
    %1033 = arith.mulf %954, %44 : vector<8xf32>
    %1034 = arith.addf %1032, %1033 : vector<8xf32>
    %1035 = arith.mulf %919, %55 : vector<8xf32>
    %1036 = arith.mulf %956, %71 : vector<8xf32>
    %1037 = arith.subf %1035, %1036 : vector<8xf32>
    %1038 = arith.mulf %919, %71 : vector<8xf32>
    %1039 = arith.mulf %956, %55 : vector<8xf32>
    %1040 = arith.addf %1038, %1039 : vector<8xf32>
    %1041 = arith.addf %1031, %1037 : vector<8xf32>
    %1042 = arith.addf %1034, %1040 : vector<8xf32>
    %1043 = arith.mulf %927, %81 : vector<8xf32>
    %1044 = arith.mulf %958, %97 : vector<8xf32>
    %1045 = arith.subf %1043, %1044 : vector<8xf32>
    %1046 = arith.mulf %927, %97 : vector<8xf32>
    %1047 = arith.mulf %958, %81 : vector<8xf32>
    %1048 = arith.addf %1046, %1047 : vector<8xf32>
    %1049 = arith.addf %1041, %1045 : vector<8xf32>
    %1050 = arith.addf %1042, %1048 : vector<8xf32>
    %1051 = arith.mulf %935, %107 : vector<8xf32>
    %1052 = arith.mulf %960, %123 : vector<8xf32>
    %1053 = arith.subf %1051, %1052 : vector<8xf32>
    %1054 = arith.mulf %935, %123 : vector<8xf32>
    %1055 = arith.mulf %960, %107 : vector<8xf32>
    %1056 = arith.addf %1054, %1055 : vector<8xf32>
    %1057 = arith.addf %1049, %1053 : vector<8xf32>
    %1058 = arith.addf %1050, %1056 : vector<8xf32>
    %1059 = arith.mulf %819, %44 : vector<8xf32>
    %1060 = arith.mulf %962, %38 : vector<8xf32>
    %1061 = arith.subf %1059, %1060 : vector<8xf32>
    %1062 = arith.mulf %819, %38 : vector<8xf32>
    %1063 = arith.mulf %962, %44 : vector<8xf32>
    %1064 = arith.addf %1062, %1063 : vector<8xf32>
    %1065 = arith.mulf %825, %55 : vector<8xf32>
    %1066 = arith.mulf %964, %71 : vector<8xf32>
    %1067 = arith.subf %1065, %1066 : vector<8xf32>
    %1068 = arith.mulf %825, %71 : vector<8xf32>
    %1069 = arith.mulf %964, %55 : vector<8xf32>
    %1070 = arith.addf %1068, %1069 : vector<8xf32>
    %1071 = arith.addf %1061, %1067 : vector<8xf32>
    %1072 = arith.addf %1064, %1070 : vector<8xf32>
    %1073 = arith.mulf %831, %81 : vector<8xf32>
    %1074 = arith.mulf %966, %97 : vector<8xf32>
    %1075 = arith.subf %1073, %1074 : vector<8xf32>
    %1076 = arith.mulf %831, %97 : vector<8xf32>
    %1077 = arith.mulf %966, %81 : vector<8xf32>
    %1078 = arith.addf %1076, %1077 : vector<8xf32>
    %1079 = arith.addf %1071, %1075 : vector<8xf32>
    %1080 = arith.addf %1072, %1078 : vector<8xf32>
    %1081 = arith.mulf %837, %107 : vector<8xf32>
    %1082 = arith.mulf %968, %123 : vector<8xf32>
    %1083 = arith.subf %1081, %1082 : vector<8xf32>
    %1084 = arith.mulf %837, %123 : vector<8xf32>
    %1085 = arith.mulf %968, %107 : vector<8xf32>
    %1086 = arith.addf %1084, %1085 : vector<8xf32>
    %1087 = arith.addf %1079, %1083 : vector<8xf32>
    %1088 = arith.addf %1080, %1086 : vector<8xf32>
    %1089 = arith.mulf %879, %55 : vector<8xf32>
    %1090 = arith.mulf %946, %69 : vector<8xf32>
    %1091 = arith.subf %1089, %1090 : vector<8xf32>
    %1092 = arith.mulf %879, %69 : vector<8xf32>
    %1093 = arith.mulf %946, %55 : vector<8xf32>
    %1094 = arith.addf %1092, %1093 : vector<8xf32>
    %1095 = arith.addf %997, %1091 : vector<8xf32>
    %1096 = arith.addf %998, %1094 : vector<8xf32>
    %1097 = arith.mulf %887, %133 : vector<8xf32>
    %1098 = arith.mulf %948, %38 : vector<8xf32>
    %1099 = arith.subf %1097, %1098 : vector<8xf32>
    %1100 = arith.mulf %887, %38 : vector<8xf32>
    %1101 = arith.mulf %948, %133 : vector<8xf32>
    %1102 = arith.addf %1100, %1101 : vector<8xf32>
    %1103 = arith.addf %1095, %1099 : vector<8xf32>
    %1104 = arith.addf %1096, %1102 : vector<8xf32>
    %1105 = arith.mulf %895, %144 : vector<8xf32>
    %1106 = arith.mulf %950, %160 : vector<8xf32>
    %1107 = arith.subf %1105, %1106 : vector<8xf32>
    %1108 = arith.mulf %895, %160 : vector<8xf32>
    %1109 = arith.mulf %950, %144 : vector<8xf32>
    %1110 = arith.addf %1108, %1109 : vector<8xf32>
    %1111 = arith.addf %1103, %1107 : vector<8xf32>
    %1112 = arith.addf %1104, %1110 : vector<8xf32>
    %1113 = arith.mulf %903, %170 : vector<8xf32>
    %1114 = arith.mulf %952, %186 : vector<8xf32>
    %1115 = arith.subf %1113, %1114 : vector<8xf32>
    %1116 = arith.mulf %903, %186 : vector<8xf32>
    %1117 = arith.mulf %952, %170 : vector<8xf32>
    %1118 = arith.addf %1116, %1117 : vector<8xf32>
    %1119 = arith.addf %1111, %1115 : vector<8xf32>
    %1120 = arith.addf %1112, %1118 : vector<8xf32>
    %1121 = arith.mulf %911, %81 : vector<8xf32>
    %1122 = arith.mulf %954, %95 : vector<8xf32>
    %1123 = arith.subf %1121, %1122 : vector<8xf32>
    %1124 = arith.mulf %911, %95 : vector<8xf32>
    %1125 = arith.mulf %954, %81 : vector<8xf32>
    %1126 = arith.addf %1124, %1125 : vector<8xf32>
    %1127 = arith.addf %1119, %1123 : vector<8xf32>
    %1128 = arith.addf %1120, %1126 : vector<8xf32>
    %1129 = arith.mulf %919, %144 : vector<8xf32>
    %1130 = arith.mulf %956, %158 : vector<8xf32>
    %1131 = arith.subf %1129, %1130 : vector<8xf32>
    %1132 = arith.mulf %919, %158 : vector<8xf32>
    %1133 = arith.mulf %956, %144 : vector<8xf32>
    %1134 = arith.addf %1132, %1133 : vector<8xf32>
    %1135 = arith.addf %1127, %1131 : vector<8xf32>
    %1136 = arith.addf %1128, %1134 : vector<8xf32>
    %1137 = arith.mulf %927, %196 : vector<8xf32>
    %1138 = arith.mulf %958, %38 : vector<8xf32>
    %1139 = arith.subf %1137, %1138 : vector<8xf32>
    %1140 = arith.mulf %927, %38 : vector<8xf32>
    %1141 = arith.mulf %958, %196 : vector<8xf32>
    %1142 = arith.addf %1140, %1141 : vector<8xf32>
    %1143 = arith.addf %1135, %1139 : vector<8xf32>
    %1144 = arith.addf %1136, %1142 : vector<8xf32>
    %1145 = arith.mulf %935, %207 : vector<8xf32>
    %1146 = arith.mulf %960, %223 : vector<8xf32>
    %1147 = arith.subf %1145, %1146 : vector<8xf32>
    %1148 = arith.mulf %935, %223 : vector<8xf32>
    %1149 = arith.mulf %960, %207 : vector<8xf32>
    %1150 = arith.addf %1148, %1149 : vector<8xf32>
    %1151 = arith.addf %1143, %1147 : vector<8xf32>
    %1152 = arith.addf %1144, %1150 : vector<8xf32>
    %1153 = arith.mulf %819, %107 : vector<8xf32>
    %1154 = arith.mulf %962, %121 : vector<8xf32>
    %1155 = arith.subf %1153, %1154 : vector<8xf32>
    %1156 = arith.mulf %819, %121 : vector<8xf32>
    %1157 = arith.mulf %962, %107 : vector<8xf32>
    %1158 = arith.addf %1156, %1157 : vector<8xf32>
    %1159 = arith.addf %1151, %1155 : vector<8xf32>
    %1160 = arith.addf %1152, %1158 : vector<8xf32>
    %1161 = arith.mulf %825, %170 : vector<8xf32>
    %1162 = arith.mulf %964, %184 : vector<8xf32>
    %1163 = arith.subf %1161, %1162 : vector<8xf32>
    %1164 = arith.mulf %825, %184 : vector<8xf32>
    %1165 = arith.mulf %964, %170 : vector<8xf32>
    %1166 = arith.addf %1164, %1165 : vector<8xf32>
    %1167 = arith.addf %1159, %1163 : vector<8xf32>
    %1168 = arith.addf %1160, %1166 : vector<8xf32>
    %1169 = arith.mulf %831, %207 : vector<8xf32>
    %1170 = arith.mulf %966, %221 : vector<8xf32>
    %1171 = arith.subf %1169, %1170 : vector<8xf32>
    %1172 = arith.mulf %831, %221 : vector<8xf32>
    %1173 = arith.mulf %966, %207 : vector<8xf32>
    %1174 = arith.addf %1172, %1173 : vector<8xf32>
    %1175 = arith.addf %1167, %1171 : vector<8xf32>
    %1176 = arith.addf %1168, %1174 : vector<8xf32>
    %1177 = arith.mulf %837, %233 : vector<8xf32>
    %1178 = arith.mulf %968, %38 : vector<8xf32>
    %1179 = arith.subf %1177, %1178 : vector<8xf32>
    %1180 = arith.mulf %837, %38 : vector<8xf32>
    %1181 = arith.mulf %968, %233 : vector<8xf32>
    %1182 = arith.addf %1180, %1181 : vector<8xf32>
    %1183 = arith.addf %1175, %1179 : vector<8xf32>
    %1184 = arith.addf %1176, %1182 : vector<8xf32>
    %cst_130 = arith.constant 9.99999993E-9 : f32
    %1185 = vector.broadcast %cst_130 : f32 to vector<8xf32>
    %1186 = arith.addf %1183, %1185 : vector<8xf32>
    %1187 = arith.mulf %1186, %1186 : vector<8xf32>
    %1188 = arith.mulf %1184, %1184 : vector<8xf32>
    %1189 = arith.addf %1187, %1188 : vector<8xf32>
    %cst_131 = arith.constant 1.000000e+00 : f32
    %1190 = vector.broadcast %cst_131 : f32 to vector<8xf32>
    %1191 = arith.divf %1190, %1189 : vector<8xf32>
    %1192 = arith.mulf %997, %1186 : vector<8xf32>
    %1193 = arith.mulf %998, %1184 : vector<8xf32>
    %1194 = arith.addf %1192, %1193 : vector<8xf32>
    %1195 = arith.mulf %1194, %1191 : vector<8xf32>
    %1196 = arith.mulf %998, %1186 : vector<8xf32>
    %1197 = arith.mulf %997, %1184 : vector<8xf32>
    %1198 = arith.subf %1196, %1197 : vector<8xf32>
    %1199 = arith.mulf %1198, %1191 : vector<8xf32>
    %1200 = vector.shape_cast %1195 : vector<8xf32> to vector<8x1xf32>
    %1201 = vector.shape_cast %1199 : vector<8xf32> to vector<8x1xf32>
    %1202 = vector.broadcast %1200 : vector<8x1xf32> to vector<8x128xf32>
    %1203 = arith.mulf %1202, %1 : vector<8x128xf32>
    %1204 = vector.broadcast %1201 : vector<8x1xf32> to vector<8x128xf32>
    %1205 = arith.mulf %1204, %9 : vector<8x128xf32>
    %1206 = arith.addf %1203, %1205 : vector<8x128xf32>
    %1207 = vector.broadcast %1200 : vector<8x1xf32> to vector<8x128xf32>
    %1208 = arith.mulf %1207, %9 : vector<8x128xf32>
    %1209 = vector.broadcast %1201 : vector<8x1xf32> to vector<8x128xf32>
    %1210 = arith.mulf %1209, %1 : vector<8x128xf32>
    %1211 = arith.subf %1208, %1210 : vector<8x128xf32>
    %1212 = arith.mulf %1027, %1186 : vector<8xf32>
    %1213 = arith.mulf %1028, %1184 : vector<8xf32>
    %1214 = arith.addf %1212, %1213 : vector<8xf32>
    %1215 = arith.mulf %1214, %1191 : vector<8xf32>
    %1216 = arith.mulf %1028, %1186 : vector<8xf32>
    %1217 = arith.mulf %1027, %1184 : vector<8xf32>
    %1218 = arith.subf %1216, %1217 : vector<8xf32>
    %1219 = arith.mulf %1218, %1191 : vector<8xf32>
    %1220 = vector.shape_cast %1215 : vector<8xf32> to vector<8x1xf32>
    %1221 = vector.shape_cast %1219 : vector<8xf32> to vector<8x1xf32>
    %1222 = vector.broadcast %1220 : vector<8x1xf32> to vector<8x128xf32>
    %1223 = arith.mulf %1222, %3 : vector<8x128xf32>
    %1224 = vector.broadcast %1221 : vector<8x1xf32> to vector<8x128xf32>
    %1225 = arith.mulf %1224, %11 : vector<8x128xf32>
    %1226 = arith.addf %1223, %1225 : vector<8x128xf32>
    %1227 = vector.broadcast %1220 : vector<8x1xf32> to vector<8x128xf32>
    %1228 = arith.mulf %1227, %11 : vector<8x128xf32>
    %1229 = vector.broadcast %1221 : vector<8x1xf32> to vector<8x128xf32>
    %1230 = arith.mulf %1229, %3 : vector<8x128xf32>
    %1231 = arith.subf %1228, %1230 : vector<8x128xf32>
    %1232 = arith.addf %1206, %1226 : vector<8x128xf32>
    %1233 = arith.addf %1211, %1231 : vector<8x128xf32>
    %1234 = arith.mulf %1057, %1186 : vector<8xf32>
    %1235 = arith.mulf %1058, %1184 : vector<8xf32>
    %1236 = arith.addf %1234, %1235 : vector<8xf32>
    %1237 = arith.mulf %1236, %1191 : vector<8xf32>
    %1238 = arith.mulf %1058, %1186 : vector<8xf32>
    %1239 = arith.mulf %1057, %1184 : vector<8xf32>
    %1240 = arith.subf %1238, %1239 : vector<8xf32>
    %1241 = arith.mulf %1240, %1191 : vector<8xf32>
    %1242 = vector.shape_cast %1237 : vector<8xf32> to vector<8x1xf32>
    %1243 = vector.shape_cast %1241 : vector<8xf32> to vector<8x1xf32>
    %1244 = vector.broadcast %1242 : vector<8x1xf32> to vector<8x128xf32>
    %1245 = arith.mulf %1244, %5 : vector<8x128xf32>
    %1246 = vector.broadcast %1243 : vector<8x1xf32> to vector<8x128xf32>
    %1247 = arith.mulf %1246, %13 : vector<8x128xf32>
    %1248 = arith.addf %1245, %1247 : vector<8x128xf32>
    %1249 = vector.broadcast %1242 : vector<8x1xf32> to vector<8x128xf32>
    %1250 = arith.mulf %1249, %13 : vector<8x128xf32>
    %1251 = vector.broadcast %1243 : vector<8x1xf32> to vector<8x128xf32>
    %1252 = arith.mulf %1251, %5 : vector<8x128xf32>
    %1253 = arith.subf %1250, %1252 : vector<8x128xf32>
    %1254 = arith.addf %1232, %1248 : vector<8x128xf32>
    %1255 = arith.addf %1233, %1253 : vector<8x128xf32>
    %1256 = arith.mulf %1087, %1186 : vector<8xf32>
    %1257 = arith.mulf %1088, %1184 : vector<8xf32>
    %1258 = arith.addf %1256, %1257 : vector<8xf32>
    %1259 = arith.mulf %1258, %1191 : vector<8xf32>
    %1260 = arith.mulf %1088, %1186 : vector<8xf32>
    %1261 = arith.mulf %1087, %1184 : vector<8xf32>
    %1262 = arith.subf %1260, %1261 : vector<8xf32>
    %1263 = arith.mulf %1262, %1191 : vector<8xf32>
    %1264 = vector.shape_cast %1259 : vector<8xf32> to vector<8x1xf32>
    %1265 = vector.shape_cast %1263 : vector<8xf32> to vector<8x1xf32>
    %1266 = vector.broadcast %1264 : vector<8x1xf32> to vector<8x128xf32>
    %1267 = arith.mulf %1266, %7 : vector<8x128xf32>
    %1268 = vector.broadcast %1265 : vector<8x1xf32> to vector<8x128xf32>
    %1269 = arith.mulf %1268, %15 : vector<8x128xf32>
    %1270 = arith.addf %1267, %1269 : vector<8x128xf32>
    %1271 = vector.broadcast %1264 : vector<8x1xf32> to vector<8x128xf32>
    %1272 = arith.mulf %1271, %15 : vector<8x128xf32>
    %1273 = vector.broadcast %1265 : vector<8x1xf32> to vector<8x128xf32>
    %1274 = arith.mulf %1273, %7 : vector<8x128xf32>
    %1275 = arith.subf %1272, %1274 : vector<8x128xf32>
    %1276 = arith.addf %1254, %1270 : vector<8x128xf32>
    %1277 = arith.addf %1255, %1275 : vector<8x128xf32>
    %c0_132 = arith.constant 0 : index
    %c0_133 = arith.constant 0 : index
    %c0_134 = arith.constant 0 : index
    %1278 = vector.load %arg8[%c0_132, %c0_133, %c0_134] : memref<1x8x128xf32, #tpu.memory_space<vmem>>, vector<1x8x128xf32>
    %1279 = vector.shape_cast %1278 : vector<1x8x128xf32> to vector<8x128xf32>
    %1280 = vector.shape_cast %1276 : vector<8x128xf32> to vector<1x8x128xf32>
    tpu.vector_store %arg8[%c0_132, %c0_133, %c0_134], %1280 {strides = array<i32>} : memref<1x8x128xf32, #tpu.memory_space<vmem>>, vector<1x8x128xf32>,
    %c0_135 = arith.constant 0 : index
    %c0_136 = arith.constant 0 : index
    %c0_137 = arith.constant 0 : index
    %1281 = vector.load %arg9[%c0_135, %c0_136, %c0_137] : memref<1x8x128xf32, #tpu.memory_space<vmem>>, vector<1x8x128xf32>
    %1282 = vector.shape_cast %1281 : vector<1x8x128xf32> to vector<8x128xf32>
    %1283 = vector.shape_cast %1277 : vector<8x128xf32> to vector<1x8x128xf32>
    tpu.vector_store %arg9[%c0_135, %c0_136, %c0_137], %1283 {strides = array<i32>} : memref<1x8x128xf32, #tpu.memory_space<vmem>>, vector<1x8x128xf32>,
    return
  }
  func.func @transform_0(%arg0: i32, %arg1: i32) -> (i32, i32, i32, i32) {
    %c0_i32 = arith.constant 0 : i32
    %c0_i32_0 = arith.constant 0 : i32
    %c0_i32_1 = arith.constant 0 : i32
    return %arg0, %c0_i32, %arg1, %c0_i32_0 : i32, i32, i32, i32
  }
  func.func @transform_1(%arg0: i32, %arg1: i32) -> (i32, i32, i32, i32) {
    %c0_i32 = arith.constant 0 : i32
    %c0_i32_0 = arith.constant 0 : i32
    %c0_i32_1 = arith.constant 0 : i32
    return %arg0, %c0_i32, %arg1, %c0_i32_0 : i32, i32, i32, i32
  }
  func.func @transform_2(%arg0: i32, %arg1: i32) -> (i32, i32, i32) {
    %c0_i32 = arith.constant 0 : i32
    %c0_i32_0 = arith.constant 0 : i32
    return %arg0, %arg1, %c0_i32 : i32, i32, i32
  }
  func.func @transform_3(%arg0: i32, %arg1: i32) -> (i32, i32, i32) {
    %c0_i32 = arith.constant 0 : i32
    %c0_i32_0 = arith.constant 0 : i32
    return %arg0, %arg1, %c0_i32 : i32, i32, i32
  }
  func.func @transform_4(%arg0: i32, %arg1: i32) -> (i32, i32, i32) {
    %c0_i32 = arith.constant 0 : i32
    %c0_i32_0 = arith.constant 0 : i32
    return %arg0, %arg1, %c0_i32 : i32, i32, i32
  }
  func.func @transform_5(%arg0: i32, %arg1: i32) -> (i32, i32, i32) {
    %c0_i32 = arith.constant 0 : i32
    %c0_i32_0 = arith.constant 0 : i32
    return %arg0, %arg1, %c0_i32 : i32, i32, i32
  }
  func.func @transform_6(%arg0: i32, %arg1: i32) -> (i32, i32, i32) {
    %c0_i32 = arith.constant 0 : i32
    %c0_i32_0 = arith.constant 0 : i32
    return %arg0, %arg1, %c0_i32 : i32, i32, i32
  }
  func.func @transform_7(%arg0: i32, %arg1: i32) -> (i32, i32, i32) {
    %c0_i32 = arith.constant 0 : i32
    %c0_i32_0 = arith.constant 0 : i32
    return %arg0, %arg1, %c0_i32 : i32, i32, i32
  }
}

</mosaic_0001>

<bundles_post_ra>
// kernel: mvdr_beamformer.1
= control target key start
LH: loop header
LB: loop body
LE: loop exit
PB: predicated region body
PF: predicated region fallthrough
CT: control target
= control target key end

     0   :  { %s3807_s0 = inlined_call_operand.vmem [shape: f32[2,4,8,128], index: 0, kind: input, shape index: {}]   ;;  %s3808_s1 = inlined_call_operand.vmem [shape: f32[2,4,8,128], index: 1, kind: input, shape index: {}]   ;;  %s3809_s2 = inlined_call_operand.vmem [shape: f32[2,8,128], index: 2, kind: input, shape index: {}]   ;;  %s3810_s3 = inlined_call_operand.vmem [shape: f32[2,8,128], index: 3, kind: input, shape index: {}]   ;;  %s3811_s4 = inlined_call_operand.vmem [shape: f32[2,8,128], index: 4, kind: input, shape index: {}]   ;;  %s3812_s5 = inlined_call_operand.vmem [shape: f32[2,8,128], index: 5, kind: input, shape index: {}]   ;;  %s3813_s6 = inlined_call_operand.hbm [shape: f32[2,8,128], index: 6, kind: output, shape index: {0}]   ;;  %s3814_s7 = inlined_call_operand.hbm [shape: f32[2,8,128], index: 7, kind: output, shape index: {1}]  }
   0x1   :  { %3858 = sst [smem:[#allocation43_spill]] %s3807_s0 }
   0x2   :  { %13 = vsyncpa [#allocation3], 0 }
   0x3   :  { %15 = vsyncpa [#allocation3 + $0x1], 0 }
   0x4   :  { %16 = vsyncpa [#allocation5], 0 }
   0x5   :  { %18 = vsyncpa [#allocation5 + $0x1], 0  ;;  %s2142_s24 = smov 0   ;;  %s2144_s25 = smov 0  }
   0x6   :  { %s2146_s26 = smov 0   ;;  %s2148_s27 = smov 0  }
   0x7   :  { %s2150_s28 = smov 0   ;;  %s2152_s29 = smov 0  }
   0x8 LB: > { %s1879_s30 = sadd.s32 4294967295, %s2100_s29   ;;  %s1880_s8 = sadd.s32 4294967294, %s2100_s29   ;;  %s2100_s29 = sphi %s2152_s29, %s24_s29   ;;  %s2096_s28 = sphi %s2150_s28, %s3996_s28   ;;  %s2092_s27 = sphi %s2148_s27, %s3995_s27   ;;  %s2088_s26 = sphi %s2146_s26, %s3994_s26   ;;  %s2084_s25 = sphi %s2144_s25, %s3993_s25   ;;  %s2080_s24 = sphi %s2142_s24, %s3992_s24  }
   0x9   : > { %s36_s9 = sadd.s32 1, %s2096_s28  ;;  %s213_s10 = sadd.s32 1, %s2088_s26 }
   0xa   : > { %p38_p0 = scmp.ge.s32.totalorder %s36_s9, 2  ;;  %p223_p1 = scmp.ne.s32.totalorder %s2088_s26, %s2084_s25 }
   0xb   : > { %p224_p2 = scmp.eq.s32.totalorder %s1879_s30, 1  ;;  %p229_p3 = scmp.ne.s32.totalorder %s2084_s25, %s2080_s24 }
   0xc   : > { %s3998_s9 = smov (%p38_p0, %s36_s9), 0  ;;  %p230_p5 = scmp.eq.s32.totalorder %s1880_s8, 1 }
   0xd   : > { %3859 = sst [smem:[#allocation8_spill]] %s3998_s9  ;;  %p2182_p4 = por %p224_p2, %p223_p1 }
   0xe   : > { %s208_s12 = ssub.s32 %s2096_s28, %s3998_s9  ;;  %p1883_p6 = scmp.ge.s32.totalorder %s2100_s29, 1 }
   0xf   : > { %p211_p7 = scmp.eq.s32.totalorder %s208_s12, 0  ;;  %p2189_p8 = por %p230_p5, %p229_p3 }
  0x10   : > { %p338_p9 = scmp.lt.s32.totalorder %s2100_s29, 3 }
  0x11   : > { %s2195_s14 = scalar_select %p211_p7, %s2088_s26, %s213_s10  }
  0x12   : > { %p339_p10 = pnand %p1883_p6, %p338_p9 }
  0x14   : > { %342 = sbr.rel (%p339_p10) target bundleno = 477 (0x1dd), region = 44 }
  0x19   : > { %p414_p11 = scmp.lt.s32.totalorder %s2092_s27, 1  ;;  %s3862_s0 = sld [smem:[#allocation43_spill]] }
  0x1b   : > { %s415_s15 = scalar_select %p414_p11, %s2092_s27, 1 }
  0x1d   : > { %s2199_s16 = sshll.u32 %s415_s15, 3  ;;  %s1906_s17 = sshll.u32 %s415_s15, 5 }
  0x1e   : > { %s450_s20 = scalar_lea.vmem %s3811_s4, %s2199_s16  ;;  %s457_s23 = scalar_lea.vmem %s3812_s5, %s2199_s16 }
  0x1f   : > { %v474_v0 = vld [vmem:[%s450_s20] sm:$0xff]  ;;  %s2212_s10 = scalar_lea.vmem %s3862_s0, %s1906_s17  ;;  %s2217_s15 = scalar_lea.vmem %s3808_s1, %s1906_s17 }
  0x20   : > { %v475_v1 = vld [vmem:[%s457_s23] sm:$0xff]  ;;  %v479_v2 = vmul.f32 %v474_v0, %v474_v0  ;;  %v2220_v4 = vld [vmem:[%s2212_s10 + $0x8] sm:$0xff]  ;;  %v2233_v12 = vld [vmem:[%s2212_s10 + $0x10] sm:$0xff]  ;;  %s436_s18 = scalar_lea.vmem %s3809_s2, %s2199_s16  ;;  %s443_s21 = scalar_lea.vmem %s3810_s3, %s2199_s16 }
  0x21   : > { %v480_v3 = vmul.f32 %v475_v1, %v475_v1  ;;  %v2223_v5 = vld [vmem:[%s2217_s15 + $0x8] sm:$0xff]  ;;  %v458_v6 = vld [vmem:[%s2212_s10] sm:$0xff]  ;;  %v580_v7 = vmul.f32 %v2220_v4, %v2220_v4  ;;  %v2236_v13 = vld [vmem:[%s2217_s15 + $0x10] sm:$0xff]  ;;  %v592_v32 = vmul.f32 %v2233_v12, %v2220_v4  ;;  %v644_v41 = vmul.f32 %v2233_v12, %v2233_v12  ;;  %s3730_s16 = sand.u32 1, %s2084_s25   ;;  %s1902_s23 = sshll.u32 %s2092_s27, 3 }
  0x22   : > { %v581_v8 = vmul.f32 %v2223_v5, %v2223_v5  ;;  %v465_v9 = vld [vmem:[%s2217_s15] sm:$0xff]  ;;  %v514_v10 = vmul.f32 %v2223_v5, %v458_v6  ;;  %v490_v11 = vmul.f32 %v458_v6, %v458_v6  ;;  %v540_v19 = vmul.f32 %v2236_v13, %v458_v6  ;;  %v1896_v43 = vld [vmem:[%s2212_s10 + $0x18] sm:$0xff]  ;;  %s1884_s22 = sshll.u32 %s3730_s16, 3  ;;  %s1673_s12 = scalar_lea.hbm %s3813_s6, %s1902_s23 }
  0x23   : > { %v2238_v14 = vadd.f32 %v480_v3, %v479_v2  ;;  %v513_v15 = vmul.f32 %v2220_v4, %v465_v9  ;;  %v491_v16 = vmul.f32 %v465_v9, %v465_v9  ;;  %v539_v18 = vmul.f32 %v2233_v12, %v465_v9  ;;  %v1899_v44 = vld [vmem:[%s2217_s15 + $0x18] sm:$0xff]  ;;  %s1688_s9 = scalar_lea.hbm %s3814_s7, %s1902_s23  ;;  %s406_s17 = scalar_lea.vmem [#allocation2], %s1884_s22 }
  0x24   : > { %v2241_v17 = vadd.f32 %v581_v8, %v580_v7  ;;  %v502_v22 = vmul.f32 %v2220_v4, %v458_v6  ;;  %v503_v23 = vmul.f32 %v2223_v5, %v465_v9  ;;  %v528_v29 = vmul.f32 %v2233_v12, %v458_v6  ;;  %s1677_s19 = sshll.u32 %s1673_s12, 4  ;;  %s413_s20 = scalar_lea.vmem [#allocation4], %s1884_s22  ;;  %s1678_s19 = int_to_ptr.hbm [resolvable:$true] %s1677_s19 }
  0x25   : > { %485 = vadd.xlane.f32.xlu0 %v2238_v14  ;;  %v2246_v20 = vsub.f32 %v513_v15, %v514_v10  ;;  %v2248_v21 = vadd.f32 %v491_v16, %v490_v11  ;;  %v2256_v26 = vsub.f32 %v539_v18, %v540_v19  ;;  %v529_v30 = vmul.f32 %v2236_v13, %v465_v9  ;;  %v472_v10 = vld [vmem:[%s436_s18] sm:$0xff]  ;;  %s1675_s18 = sshll.u32 %s406_s17, 4  ;;  %s1690_s27 = sshll.u32 %s413_s20, 4  ;;  %s1676_s18 = int_to_ptr.vmem [resolvable:$true] %s1675_s18  ;;  %s3756_s27 = int_to_ptr.vmem [resolvable:$true] %s1690_s27 }
  0x26   : > { %v587_v24 = vmul.f32 %v2241_v17, %v2238_v14  ;;  %v2260_v28 = vadd.f32 %v503_v23, %v502_v22  ;;  %v593_v33 = vmul.f32 %v2236_v13, %v2223_v5  ;;  %v603_v36 = vmul.f32 %v2223_v5, %v2233_v12  ;;  %v473_v11 = vld [vmem:[%s443_s21] sm:$0xff]  ;;  %s1692_s21 = sshll.u32 %s1688_s9, 4  ;;  %s1657_s23 = scalar_lea.sflag [#allocation3], %s3730_s16  ;;  %s3758_s21 = int_to_ptr.hbm [resolvable:$true] %s1692_s21 }
  0x27   : > { %v520_v25 = vmul.f32 %v2246_v20, %v2238_v14  ;;  %v497_v27 = vmul.f32 %v2248_v21, %v2238_v14  ;;  %v546_v31 = vmul.f32 %v2256_v26, %v2238_v14  ;;  %v2272_v35 = vadd.f32 %v529_v30, %v528_v29  ;;  %s2004_s30 = sshra.s32 %s1678_s19, 4  ;;  %s2005_s30 = int_to_ptr.hbm [resolvable:$true] %s2004_s30 }
  0x28   : > { %588 = vadd.xlane.f32.xlu2 %v587_v24  ;;  %v509_v34 = vmul.f32 %v2260_v28, %v2238_v14  ;;  %v604_v37 = vmul.f32 %v2236_v13, %v2220_v4  ;;  %v2278_v38 = vadd.f32 %v593_v33, %v592_v32  ;;  %v645_v42 = vmul.f32 %v2236_v13, %v2236_v13  ;;  %s2006_s8 = scalar_lea.hbm %s2005_s30, 8  ;;  %p2011_p1 = scmp.lt.s32.totalorder %s2005_s30, %s3813_s6 }
  0x29   : > { %521 = vadd.xlane.f32.xlu1 %v520_v25  ;;  %v535_v39 = vmul.f32 %v2272_v35, %v2238_v14  ;;  %v554_v46 = vmul.f32 %v1896_v43, %v458_v6  ;;  %v555_v47 = vmul.f32 %v1899_v44, %v465_v9  ;;  %v565_v50 = vmul.f32 %v1896_v43, %v465_v9  ;;  %p2007_p12 = scmp.ne.s32.totalorder %s2005_s30, %s2006_s8 }
  0x2a   : > { %v2282_v40 = vsub.f32 %v603_v36, %v604_v37  ;;  %v599_v45 = vmul.f32 %v2278_v38, %v2238_v14  ;;  %v2294_v49 = vadd.f32 %v645_v42, %v644_v41  ;;  %v566_v51 = vmul.f32 %v1899_v44, %v458_v6 }
  0x2b   : > { %v556_v52 = vadd.f32 %v555_v47, %v554_v46  ;;  %v629_v55 = vmul.f32 %v2223_v5, %v1896_v43  ;;  %v630_v56 = vmul.f32 %v1899_v44, %v2220_v4  ;;  %v667_v58 = vmul.f32 %v2236_v13, %v1896_v43  ;;  %p2008_p13 = pnand %p2007_p12, %p2182_p4 }
  0x2c   : > { %v610_v48 = vmul.f32 %v2282_v40, %v2238_v14  ;;  %v651_v53 = vmul.f32 %v2294_v49, %v2238_v14  ;;  %v567_v54 = vsub.f32 %v565_v50, %v566_v51  ;;  %v668_v59 = vmul.f32 %v1899_v44, %v2233_v12 }
  0x2d   : > { %498 = vadd.xlane.f32.xlu0 %v497_v27  ;;  %v561_v57 = vmul.f32 %v556_v52, %v2238_v14  ;;  %v631_v61 = vsub.f32 %v629_v55, %v630_v56  ;;  %v618_v62 = vmul.f32 %v1896_v43, %v2220_v4  ;;  %v619_v63 = vmul.f32 %v1899_v44, %v2223_v5  ;;  %p2009_p0 = pneg %p2008_p13 }
  0x2e   : > { %v572_v60 = vmul.f32 %v567_v54, %v2238_v14  ;;  %v669_v0 = vsub.f32 %v667_v58, %v668_v59  ;;  %v656_v3 = vmul.f32 %v1896_v43, %v2233_v12  ;;  %v657_v6 = vmul.f32 %v1899_v44, %v2236_v13 }
  0x2f   : > { %v636_v1 = vmul.f32 %v631_v61, %v2238_v14  ;;  %v620_v2 = vadd.f32 %v619_v63, %v618_v62  ;;  %v682_v8 = vmul.f32 %v1896_v43, %v1896_v43  ;;  %v683_v9 = vmul.f32 %v1899_v44, %v1899_v44 }
  0x30   : > { %547 = vadd.xlane.f32.xlu2 %v546_v31  ;;  %v674_v4 = vmul.f32 %v669_v0, %v2238_v14  ;;  %v658_v7 = vadd.f32 %v657_v6, %v656_v3  ;;  %v476_v15 = vmul.f32 %v472_v10, %v472_v10  ;;  %v477_v16 = vmul.f32 %v473_v11, %v473_v11 }
  0x31   : > { %510 = vadd.xlane.f32.xlu1 %v509_v34  ;;  %v625_v5 = vmul.f32 %v620_v2, %v2238_v14  ;;  %v684_v13 = vadd.f32 %v683_v9, %v682_v8 }
  0x32   : > { %v663_v12 = vmul.f32 %v658_v7, %v2238_v14  ;;  %v478_v19 = vadd.f32 %v477_v16, %v476_v15 }
  0x33   : > { %v689_v18 = vmul.f32 %v684_v13, %v2238_v14 }
  0x34   : > { %v516_v22 = vmul.f32 %v2246_v20, %v478_v19  ;;  %v505_v23 = vmul.f32 %v2260_v28, %v478_v19  ;;  %v493_v24 = vmul.f32 %v2248_v21, %v478_v19  ;;  %v542_v25 = vmul.f32 %v2256_v26, %v478_v19 }
  0x35   : > { %536 = vadd.xlane.f32.xlu0 %v535_v39  ;;  %v568_v27 = vmul.f32 %v567_v54, %v478_v19  ;;  %v531_v29 = vmul.f32 %v2272_v35, %v478_v19  ;;  %v557_v14 = vmul.f32 %v556_v52, %v478_v19  ;;  %v606_v30 = vmul.f32 %v2282_v40, %v478_v19 }
  0x36   : > { %v595_v20 = vmul.f32 %v2278_v38, %v478_v19  ;;  %v583_v28 = vmul.f32 %v2241_v17, %v478_v19  ;;  %v621_v21 = vmul.f32 %v620_v2, %v478_v19  ;;  %v647_v26 = vmul.f32 %v2294_v49, %v478_v19 }
  0x37   : > { %v632_v31 = vmul.f32 %v631_v61, %v478_v19  ;;  %v659_v32 = vmul.f32 %v658_v7, %v478_v19  ;;  %v685_v33 = vmul.f32 %v684_v13, %v478_v19  ;;  %v670_v34 = vmul.f32 %v669_v0, %v478_v19 }
  0x38   : > { %600 = vadd.xlane.f32.xlu2 %v599_v45 }
  0x39   : > { %611 = vadd.xlane.f32.xlu1 %v610_v48 }
  0x3d   : > { %652 = vadd.xlane.f32.xlu0 %v651_v53 }
  0x40   : > { %562 = vadd.xlane.f32.xlu2 %v561_v57 }
  0x41   : > { %573 = vadd.xlane.f32.xlu1 %v572_v60 }
  0x45   : > { %637 = vadd.xlane.f32.xlu0 %v636_v1 }
  0x48   : > { %675 = vadd.xlane.f32.xlu2 %v674_v4 }
  0x49   : > { %626 = vadd.xlane.f32.xlu1 %v625_v5 }
  0x4d   : > { %664 = vadd.xlane.f32.xlu0 %v663_v12 }
  0x50   : > { %482 = vadd.xlane.f32.xlu2 %v478_v19 }
  0x51   : > { %690 = vadd.xlane.f32.xlu1 %v689_v18 }
  0x55   : > { %517 = vadd.xlane.f32.xlu0 %v516_v22 }
  0x58   : > { %506 = vadd.xlane.f32.xlu2 %v505_v23 }
  0x59   : > { %494 = vadd.xlane.f32.xlu1 %v493_v24 }
  0x5d   : > { %543 = vadd.xlane.f32.xlu0 %v542_v25 }
  0x60   : > { %569 = vadd.xlane.f32.xlu2 %v568_v27 }
  0x61   : > { %532 = vadd.xlane.f32.xlu1 %v531_v29 }
  0x65   : > { %558 = vadd.xlane.f32.xlu0 %v557_v14 }
  0x68   : > { %607 = vadd.xlane.f32.xlu2 %v606_v30 }
  0x69   : > { %584 = vadd.xlane.f32.xlu1 %v583_v28 }
  0x6d   : > { %596 = vadd.xlane.f32.xlu0 %v595_v20 }
  0x70   : > { %622 = vadd.xlane.f32.xlu2 %v621_v21 }
  0x71   : > { %633 = vadd.xlane.f32.xlu1 %v632_v31 }
  0x75   : > { %648 = vadd.xlane.f32.xlu0 %v647_v26 }
  0x78   : > { %660 = vadd.xlane.f32.xlu2 %v659_v32 }
  0x79   : > { %671 = vadd.xlane.f32.xlu1 %v670_v34 }
  0x7d   : > { %686 = vadd.xlane.f32.xlu0 %v685_v33 }
  0x98   : > { %v486_v35 = vpop.xlane.xlu0 %485 }
  0x99   : > { %v487_v36 = vadd.f32 1e-08, %v486_v35 }
  0x9b   : > { %1968 = vrcp.f32 %v487_v36  ;;  %v589_v17 = vpop.xlane.xlu2 %588 }
  0x9c   : > { %v522_v37 = vpop.xlane.xlu1 %521 }
  0xa0   : > { %v499_v38 = vpop.xlane.xlu0 %498 }
  0xa1   : > { %v2330_v39 = vpop.eup %1968 }
  0xa2   : > { %v500_v40 = vmul.f32 %v2330_v39, %v499_v38  ;;  %v590_v52 = vmul.f32 %v2330_v39, %v589_v17  ;;  %v523_v54 = vmul.f32 %v2330_v39, %v522_v37 }
  0xa3   : > { %v548_v43 = vpop.xlane.xlu2 %547 }
  0xa4   : > { %v511_v41 = vpop.xlane.xlu1 %510  ;;  %v501_v42 = vadd.f32 1e-08, %v500_v40  ;;  %v549_v59 = vmul.f32 %v2330_v39, %v548_v43  ;;  %v2336_v60 = vadd.f32 1e-08, %v590_v52  ;;  %v526_v63 = vadd.f32 1e-05, %v523_v54 }
  0xa5   : > { %v2343_v3 = vsub.f32 1e-05, %v523_v54  ;;  %v2346_v4 = vmul.f32 %v2330_v39, %v511_v41 }
  0xa6   : > { %v694_v44 = vmul.f32 %v501_v42, %v501_v42  ;;  %v552_v8 = vadd.f32 1e-05, %v549_v59  ;;  %v2348_v9 = vsub.f32 1e-05, %v549_v59 }
  0xa8   : > { %v537_v45 = vpop.xlane.xlu0 %536  ;;  %v695_v46 = vadd.f32 9.9999994e-11, %v694_v44 }
  0xa9   : > { %v2351_v10 = vmul.f32 %v2330_v39, %v537_v45 }
  0xaa   : > { %1970 = vrcp.f32 %v695_v46  ;;  %v707_v55 = vand.u32 2147483648, %v695_v46  ;;  %v705_v57 = vand.u32 2147483647, %v695_v46  ;;  %vm701_vm1 = vweird.f32 %v695_v46 }
  0xab   : > { %v601_v48 = vpop.xlane.xlu2 %600 }
  0xac   : > { %v612_v47 = vpop.xlane.xlu1 %611  ;;  %v708_v0 = vor.u32 1.1754944e-38, %v707_v55  ;;  %vm706_vm3 = vcmp.eq.f32.partialorder %v705_v57, 8.507059e+37  ;;  %v2358_v13 = vmul.f32 %v2330_v39, %v601_v48 }
  0xad   : > { %v2339_v62 = vmul.f32 %v2330_v39, %v612_v47 }
  0xaf   : > { %v2361_v15 = vadd.f32 1e-05, %v2339_v62  ;;  %v617_v18 = vsub.f32 1e-05, %v2339_v62 }
  0xb0   : > { %v1971_v49 = vpop.eup %1970  ;;  %v653_v51 = vpop.xlane.xlu0 %652 }
  0xb1   : > { %v697_v50 = vmul.f32 %v1971_v49, %v695_v46  ;;  %vm702_vm0 = vweird.f32 %v1971_v49  ;;  %v654_v1 = vmul.f32 %v2330_v39, %v653_v51 }
  0xb2   : > { %vm703_vm2 = vmor %vm701_vm1, %vm702_vm0 }
  0xb3   : > { %v698_v53 = vsub.f32 1.0, %v697_v50  ;;  %v563_v5 = vpop.xlane.xlu2 %562  ;;  %v2364_v19 = vadd.f32 1e-08, %v654_v1 }
  0xb4   : > { %v574_v58 = vpop.xlane.xlu1 %573  ;;  %v2367_v22 = vmul.f32 %v2330_v39, %v563_v5 }
  0xb5   : > { %v699_v56 = vmul.f32 %v1971_v49, %v698_v53  ;;  %v575_v2 = vmul.f32 %v2330_v39, %v574_v58 }
  0xb7   : > { %v700_v61 = vadd.f32 %v1971_v49, %v699_v56  ;;  %v2369_v23 = vadd.f32 1e-05, %v575_v2  ;;  %v2379_v20 = vsub.f32 1e-05, %v575_v2 }
  0xb8   : > { %v638_v16 = vpop.xlane.xlu0 %637 }
  0xb9   : > { %v704_v6 = vsel %vm703_vm2, %v1971_v49, %v700_v61  ;;  %v2382_v28 = vmul.f32 %v2330_v39, %v638_v16 }
  0xba   : > { %v709_v7 = vsel %vm706_vm3, %v708_v0, %v704_v6 }
  0xbb   : > { %v2353_v11 = vmul.f32 %v709_v7, %v501_v42  ;;  %v2355_v12 = vmul.f32 -1e-05, %v709_v7  ;;  %v676_v53 = vpop.xlane.xlu2 %675  ;;  %v643_v0 = vsub.f32 1e-05, %v2382_v28 }
  0xbc   : > { %v627_v54 = vpop.xlane.xlu1 %626  ;;  %v2450_v6 = vmul.f32 %v2330_v39, %v676_v53 }
  0xbd   : > { %v714_v24 = vmul.f32 %v2355_v12, %v526_v63  ;;  %v717_v25 = vmul.f32 %v2353_v11, %v526_v63  ;;  %v731_v27 = vmul.f32 0.0, %v2355_v12  ;;  %v733_v29 = vmul.f32 0.0, %v2353_v11 }
  0xbe   : > { %v713_v14 = vmul.f32 %v2353_v11, %v2346_v4  ;;  %v716_v30 = vmul.f32 %v2355_v12, %v2346_v4  ;;  %v720_v33 = vmul.f32 %v2355_v12, %v552_v8  ;;  %v723_v34 = vmul.f32 %v2353_v11, %v552_v8 }
  0xbf   : > { %v2385_v21 = vsub.f32 %v2353_v11, %v731_v27  ;;  %v2388_v26 = vadd.f32 %v733_v29, %v2355_v12  ;;  %v2390_v31 = vsub.f32 %v733_v29, %v731_v27  ;;  %v2392_v32 = vadd.f32 %v733_v29, %v731_v27 }
  0xc0   : > { %v2396_v35 = vsub.f32 %v713_v14, %v714_v24  ;;  %v2398_v36 = vadd.f32 %v717_v25, %v716_v30  ;;  %v719_v38 = vmul.f32 %v2353_v11, %v2351_v10  ;;  %v722_v40 = vmul.f32 %v2355_v12, %v2351_v10 }
  0xc1   : > { %3863 = vst [vmem:[#allocation9_spill] sm:$0xff] %v2388_v26  ;;  %v770_v17 = vmul.f32 %v2392_v32, %v2343_v3  ;;  %v773_v37 = vmul.f32 %v2390_v31, %v2343_v3  ;;  %v769_v45 = vmul.f32 %v2390_v31, %v2346_v4  ;;  %v772_v46 = vmul.f32 %v2392_v32, %v2346_v4 }
  0xc2   : > { %3864 = vst [vmem:[#allocation10_spill] sm:$0xff] %v2390_v31  ;;  %v737_v41 = vmul.f32 %v2396_v35, %v2346_v4  ;;  %v738_v42 = vmul.f32 %v2398_v36, %v2343_v3  ;;  %v740_v43 = vmul.f32 %v2398_v36, %v2346_v4  ;;  %v741_v44 = vmul.f32 %v2396_v35, %v2343_v3 }
  0xc3   : > { %3865 = vst [vmem:[#allocation11_spill] sm:$0xff] %v2392_v32  ;;  %v779_v47 = vmul.f32 %v2398_v36, %v2348_v9  ;;  %v782_v48 = vmul.f32 %v2396_v35, %v2348_v9  ;;  %v778_v51 = vmul.f32 %v2396_v35, %v2351_v10  ;;  %v781_v52 = vmul.f32 %v2398_v36, %v2351_v10 }
  0xc4   : > { %3866 = vst [vmem:[#allocation12_spill] sm:$0xff] %v2396_v35  ;;  %v739_v49 = vsub.f32 %v737_v41, %v738_v42  ;;  %v742_v50 = vadd.f32 %v741_v44, %v740_v43  ;;  %v2428_v55 = vsub.f32 %v769_v45, %v770_v17  ;;  %v2430_v56 = vadd.f32 %v773_v37, %v772_v46 }
  0xc5   : > { %3867 = vst [vmem:[#allocation13_spill] sm:$0xff] %v2398_v36  ;;  %v2432_v57 = vsub.f32 %v719_v38, %v720_v33  ;;  %v2434_v58 = vadd.f32 %v723_v34, %v722_v40  ;;  %v2442_v63 = vadd.f32 1e-05, %v2382_v28  ;;  %v2453_v5 = vmul.f32 %v2330_v39, %v627_v54 }
  0xc6   : > { %v2437_v59 = vsub.f32 %v2336_v60, %v739_v49  ;;  %v2439_v61 = vsub.f32 1e-05, %v742_v50  ;;  %v811_v60 = vmul.f32 %v2392_v32, %v2348_v9  ;;  %v780_v16 = vsub.f32 %v778_v51, %v779_v47 }
  0xc7   : > { %3868 = vst [vmem:[#allocation14_spill] sm:$0xff] %v2432_v57  ;;  %v745_v1 = vmul.f32 %v2432_v57, %v2346_v4  ;;  %v746_v2 = vmul.f32 %v2434_v58, %v2343_v3  ;;  %v783_v24 = vadd.f32 %v782_v48, %v781_v52  ;;  %v748_v27 = vmul.f32 %v2434_v58, %v2346_v4 }
  0xc8   : > { %3869 = vst [vmem:[#allocation15_spill] sm:$0xff] %v2434_v58  ;;  %v860_v7 = vmul.f32 %v2437_v59, %v2437_v59  ;;  %v861_v8 = vmul.f32 %v2439_v61, %v2439_v61  ;;  %v749_v29 = vmul.f32 %v2432_v57, %v2343_v3  ;;  %v814_v14 = vmul.f32 %v2390_v31, %v2348_v9 }
  0xc9   : > { %v747_v25 = vsub.f32 %v745_v1, %v746_v2  ;;  %v789_v33 = vmul.f32 %v2434_v58, %v2351_v10  ;;  %v790_v34 = vmul.f32 %v2432_v57, %v2348_v9  ;;  %v786_v37 = vmul.f32 %v2432_v57, %v2351_v10 }
  0xca   : > { %v2467_v30 = vadd.f32 %v861_v8, %v860_v7  ;;  %v750_v17 = vadd.f32 %v749_v29, %v748_v27  ;;  %v787_v38 = vmul.f32 %v2434_v58, %v2348_v9  ;;  %v810_v40 = vmul.f32 %v2390_v31, %v2351_v10 }
  0xcb   : > { %v776_v41 = vsub.f32 0.0, %v2430_v56  ;;  %v777_v42 = vsub.f32 0.0, %v2428_v55  ;;  %v879_v43 = vsub.f32 0.0, %v2439_v61  ;;  %v2484_v44 = vsub.f32 %v2358_v13, %v747_v25 }
  0xcc   : > { %1972 = vrcp.f32 %v2467_v30  ;;  %v2487_v45 = vsub.f32 %v2358_v13, %v780_v16  ;;  %v2491_v46 = vsub.f32 %v617_v18, %v783_v24  ;;  %v2493_v47 = vsub.f32 %v810_v40, %v811_v60 }
  0xcd   : > { %v874_v48 = vand.u32 2147483648, %v2467_v30  ;;  %v2496_v49 = vadd.f32 %v790_v34, %v789_v33  ;;  %v813_v50 = vmul.f32 %v2392_v32, %v2351_v10  ;;  %v725_v51 = vmul.f32 %v2353_v11, %v2367_v22 }
  0xce   : > { %v872_v52 = vand.u32 2147483647, %v2467_v30  ;;  %v2504_v13 = vsub.f32 %v2361_v15, %v750_v17  ;;  %v788_v62 = vsub.f32 %v786_v37, %v787_v38  ;;  %v728_v18 = vmul.f32 %v2355_v12, %v2367_v22 }
  0xcf   : > { %v2508_v53 = vadd.f32 %v814_v14, %v813_v50  ;;  %v726_v54 = vmul.f32 %v2355_v12, %v2369_v23  ;;  %v729_v1 = vmul.f32 %v2353_v11, %v2369_v23  ;;  %v819_v2 = vmul.f32 %v2396_v35, %v2367_v22 }
  0xd0   : > { %vm868_vm4 = vweird.f32 %v2467_v30  ;;  %v820_v15 = vmul.f32 %v2398_v36, %v2379_v20  ;;  %v822_v60 = vmul.f32 %v2398_v36, %v2367_v22  ;;  %v823_v7 = vmul.f32 %v2396_v35, %v2379_v20 }
  0xd1   : > { %3870 = vst [vmem:[#allocation16_spill] sm:$0xff] %v2508_v53  ;;  %v2525_v12 = vmul.f32 %v2392_v32, %v2379_v20  ;;  %v875_v11 = vor.u32 1.1754944e-38, %v874_v48  ;;  %v2528_v16 = vsub.f32 %v725_v51, %v726_v54  ;;  %v2530_v24 = vadd.f32 %v729_v1, %v728_v18 }
  0xd2   : > { %v1973_v8 = vpop.eup %1972  ;;  %vm2533_vm5 = vcmp.eq.f32.partialorder %v872_v52, 8.507059e+37  ;;  %v2539_v14 = vsub.f32 %v2364_v19, %v788_v62  ;;  %v824_v33 = vadd.f32 %v823_v7, %v822_v60  ;;  %v821_v48 = vsub.f32 %v819_v2, %v820_v15 }
  0xd3   : > { %3871 = vst [vmem:[#allocation17_spill] sm:$0xff] %v2530_v24  ;;  %v864_v25 = vmul.f32 %v1973_v8, %v2467_v30  ;;  %v838_v34 = vmul.f32 %v2530_v24, %v2367_v22  ;;  %v839_v17 = vmul.f32 %v2528_v16, %v2379_v20  ;;  %v756_v37 = vmul.f32 %v2530_v24, %v2346_v4 }
  0xd4   : > { %v757_v38 = vmul.f32 %v2528_v16, %v2343_v3  ;;  %vm869_vm6 = vweird.f32 %v1973_v8  ;;  %v797_v19 = vmul.f32 %v2530_v24, %v2351_v10  ;;  %v798_v52 = vmul.f32 %v2528_v16, %v2348_v9 }
  0xd5   : > { %v865_v40 = vsub.f32 1.0, %v864_v25  ;;  %v2551_v50 = vadd.f32 %v839_v17, %v838_v34  ;;  %v830_v62 = vmul.f32 %v2434_v58, %v2367_v22  ;;  %v831_v54 = vmul.f32 %v2432_v57, %v2379_v20  ;;  %vm870_vm7 = vmor %vm868_vm4, %vm869_vm6 }
  0xd6   : > { %v758_v51 = vadd.f32 %v757_v38, %v756_v37  ;;  %v753_v1 = vmul.f32 %v2528_v16, %v2346_v4  ;;  %v754_v2 = vmul.f32 %v2530_v24, %v2343_v3  ;;  %v2566_v60 = vsub.f32 %v643_v0, %v824_v33 }
  0xd7   : > { %v866_v18 = vmul.f32 %v1973_v8, %v865_v40  ;;  %v2569_v7 = vadd.f32 1e-05, %v2450_v6  ;;  %v2571_v25 = vadd.f32 %v798_v52, %v797_v19  ;;  %v832_v17 = vadd.f32 %v831_v54, %v830_v62  ;;  %v665_v19 = vpop.xlane.xlu0 %664 }
  0xd8   : > { %v755_v37 = vsub.f32 %v753_v1, %v754_v2  ;;  %v2575_v38 = vmul.f32 %v2528_v16, %v2351_v10  ;;  %v681_v28 = vsub.f32 1e-05, %v2450_v6  ;;  %v2583_v0 = vmul.f32 %v2530_v24, %v2348_v9 }
  0xd9   : > { %v867_v34 = vadd.f32 %v1973_v8, %v866_v18  ;;  %v2587_v33 = vmul.f32 %v2432_v57, %v2367_v22  ;;  %v2591_v40 = vmul.f32 %v2434_v58, %v2379_v20  ;;  %v760_v30 = vsub.f32 %v2442_v63, %v758_v51  ;;  %v691_v18 = vpop.xlane.xlu1 %690 }
  0xda   : > { %v2596_v6 = vsub.f32 %v2453_v5, %v821_v48  ;;  %v2602_v2 = vsub.f32 %v681_v28, %v832_v17  ;;  %v759_v23 = vsub.f32 %v2453_v5, %v755_v37  ;;  %v796_v48 = vsub.f32 %v2575_v38, %v2583_v0 }
  0xdb   : > { %v871_v52 = vsel %vm870_vm7, %v1973_v8, %v867_v34  ;;  %v2615_v27 = vmul.f32 %v2330_v39, %v665_v19  ;;  %v692_v51 = vmul.f32 %v2330_v39, %v691_v18  ;;  %v2622_v5 = vmul.f32 %v2528_v16, %v2367_v22 }
  0xdc   : > { %v876_v54 = vsel %vm2533_vm5, %v875_v11, %v871_v52  ;;  %v829_v11 = vsub.f32 %v2587_v33, %v2591_v40  ;;  %v3876_v58 = vsub.f32 0.0, %v2508_v53 }
  0xdd   : > { %v2606_v8 = vmul.f32 %v876_v54, %v2437_v59  ;;  %v2610_v63 = vmul.f32 %v879_v43, %v876_v54  ;;  %v2626_v59 = vmul.f32 %v2390_v31, %v2367_v22 }
  0xdf   : > { %v2631_v61 = vmul.f32 %v2610_v63, %v776_v41  ;;  %v2636_v43 = vmul.f32 %v2606_v8, %v776_v41  ;;  %v905_v39 = vmul.f32 %v2606_v8, %v777_v42  ;;  %v907_v34 = vmul.f32 %v2610_v63, %v777_v42 }
  0xe0   : > { %v881_v17 = vmul.f32 %v2606_v8, %v2484_v44  ;;  %v884_v37 = vmul.f32 %v2610_v63, %v2484_v44  ;;  %v882_v56 = vmul.f32 %v2610_v63, %v2504_v13  ;;  %v885_v41 = vmul.f32 %v2606_v8, %v2504_v13 }
  0xe1   : > { %3874 = vst [vmem:[#allocation18_spill] sm:$0xff] %v2636_v43  ;;  %v2653_v38 = vsub.f32 %v905_v39, %v2631_v61  ;;  %v2656_v28 = vadd.f32 %v907_v34, %v2636_v43  ;;  %v888_v42 = vmul.f32 %v2610_v63, %v760_v30  ;;  %v891_v0 = vmul.f32 %v2606_v8, %v760_v30 }
  0xe2   : > { %v2660_v33 = vsub.f32 %v881_v17, %v882_v56  ;;  %v2662_v40 = vadd.f32 %v885_v41, %v884_v37  ;;  %v887_v44 = vmul.f32 %v2606_v8, %v759_v23  ;;  %v890_v19 = vmul.f32 %v2610_v63, %v759_v23 }
  0xe3   : > { %v981_v13 = vmul.f32 %v2653_v38, %v2487_v45  ;;  %v984_v52 = vmul.f32 %v2656_v28, %v2487_v45  ;;  %v982_v18 = vmul.f32 %v2656_v28, %v2491_v46  ;;  %v985_v30 = vmul.f32 %v2653_v38, %v2491_v46 }
  0xe4   : > { %v952_v54 = vmul.f32 %v2662_v40, %v2487_v45  ;;  %v953_v39 = vmul.f32 %v2660_v33, %v2491_v46  ;;  %v949_v23 = vmul.f32 %v2660_v33, %v2487_v45  ;;  %v950_v34 = vmul.f32 %v2662_v40, %v2491_v46 }
  0xe5   : > { %v2682_v17 = vsub.f32 %v981_v13, %v982_v18  ;;  %v986_v37 = vadd.f32 %v985_v30, %v984_v52  ;;  %v991_v56 = vmul.f32 %v2662_v40, %v2566_v60  ;;  %v994_v41 = vmul.f32 %v2660_v33, %v2566_v60 }
  0xe6   : > { %v954_v62 = vadd.f32 %v953_v39, %v952_v54  ;;  %v951_v1 = vsub.f32 %v949_v23, %v950_v34  ;;  %v2688_v29 = vsub.f32 %v887_v44, %v888_v42  ;;  %v2690_v15 = vadd.f32 %v891_v0, %v890_v19 }
  0xe7   : > { %3875 = vst [vmem:[#allocation19_spill] sm:$0xff] %v2682_v17  ;;  %v2694_v57 = vsub.f32 %v3876_v58, %v986_v37  ;;  %v3877_v13 = vsub.f32 0.0, %v2493_v47  ;;  %v990_v18 = vmul.f32 %v2660_v33, %v2596_v6  ;;  %v993_v30 = vmul.f32 %v2662_v40, %v2596_v6 }
  0xe8   : > { %v3878_v42 = vsub.f32 1e-05, %v2496_v49  ;;  %v2710_v0 = vsub.f32 %v2539_v14, %v951_v1  ;;  %v917_v58 = vmul.f32 %v2688_v29, %v2396_v35  ;;  %v918_v19 = vmul.f32 %v2690_v15, %v2398_v36 }
  0xe9   : > { %v2699_v52 = vsub.f32 %v3877_v13, %v2682_v17  ;;  %v920_v54 = vmul.f32 %v2690_v15, %v2396_v35  ;;  %v921_v39 = vmul.f32 %v2688_v29, %v2398_v36  ;;  %v960_v49 = vmul.f32 %v2690_v15, %v2487_v45 }
  0xea   : > { %v2707_v44 = vsub.f32 %v3878_v42, %v954_v62  ;;  %v961_v62 = vmul.f32 %v2688_v29, %v2491_v46  ;;  %v1031_v1 = vmul.f32 %v2710_v0, %v2710_v0  ;;  %v919_v23 = vsub.f32 %v917_v58, %v918_v19 }
  0xeb   : > { %v836_v34 = vmul.f32 %v2530_v24, %v2379_v20  ;;  %v2730_v37 = vadd.f32 %v921_v39, %v920_v54  ;;  %v992_v42 = vsub.f32 %v990_v18, %v991_v56  ;;  %v2733_v36 = vsub.f32 %v2615_v27, %v796_v48 }
  0xec   : > { %v1032_v14 = vmul.f32 %v2707_v44, %v2707_v44  ;;  %v962_v13 = vadd.f32 %v961_v62, %v960_v49  ;;  %v995_v53 = vadd.f32 %v994_v41, %v993_v30  ;;  %v1001_v17 = vmul.f32 %v2690_v15, %v2596_v6 }
  0xed   : > { %3879 = vst [vmem:[#allocation20_spill] sm:$0xff] %v2730_v37  ;;  %v1002_v43 = vmul.f32 %v2688_v29, %v2566_v60  ;;  %v1022_v19 = vmul.f32 %v2653_v38, %v2596_v6  ;;  %v833_v54 = vsub.f32 %v2615_v27, %v829_v11  ;;  %v693_v56 = vadd.f32 1e-08, %v692_v51 }
  0xee   : > { %v2735_v35 = vadd.f32 %v1032_v14, %v1031_v1  ;;  %v2748_v41 = vsub.f32 %v2528_v16, %v919_v23  ;;  %v3881_v30 = vsub.f32 %v2569_v7, %v2571_v25  ;;  %v957_v27 = vmul.f32 %v2688_v29, %v2487_v45 }
  0xef   : > { %v1003_v49 = vadd.f32 %v1002_v43, %v1001_v17  ;;  %v958_v11 = vmul.f32 %v2690_v15, %v2491_v46  ;;  %v2763_v16 = vsub.f32 %v2602_v2, %v995_v53  ;;  %v2765_v62 = vsub.f32 %v833_v54, %v992_v42 }
  0xf0   : > { %1974 = vrcp.f32 %v2735_v35  ;;  %v1045_v48 = vand.u32 2147483648, %v2735_v35  ;;  %3880 = vst [vmem:[#allocation21_spill] sm:$0xff] %v2748_v41  ;;  %v2755_v39 = vsub.f32 %v3881_v30, %v962_v13  ;;  %v1043_v51 = vand.u32 2147483647, %v2735_v35 }
  0xf1   : > { %v2769_v14 = vsub.f32 %v2626_v59, %v2525_v12  ;;  %v837_v25 = vsub.f32 %v2622_v5, %v836_v34  ;;  %v854_v43 = vmul.f32 %v2392_v32, %v2367_v22  ;;  %v855_v17 = vmul.f32 %v2390_v31, %v2379_v20 }
  0xf2   : > { %v1046_v7 = vor.u32 1.1754944e-38, %v1045_v48  ;;  %v3882_v1 = vsub.f32 1e-05, %v2551_v50  ;;  %v959_v53 = vsub.f32 %v957_v27, %v958_v11  ;;  %v998_v2 = vmul.f32 %v2688_v29, %v2596_v6 }
  0xf3   : > { %v999_v12 = vmul.f32 %v2690_v15, %v2566_v60  ;;  %vm1039_vm8 = vweird.f32 %v2735_v35  ;;  %v841_v5 = vsub.f32 %v693_v56, %v837_v25  ;;  %v2785_v59 = vadd.f32 %v855_v17, %v854_v43 }
  0xf4   : > { %v2778_v23 = vsub.f32 %v3882_v1, %v1003_v49  ;;  %v1023_v34 = vmul.f32 %v2656_v28, %v2566_v60  ;;  %v1025_v50 = vmul.f32 %v2656_v28, %v2596_v6  ;;  %v859_v42 = vsub.f32 1.0, %v2769_v14 }
  0xf5   : > { %v1026_v54 = vmul.f32 %v2653_v38, %v2566_v60  ;;  %v761_v48 = vmul.f32 %v2385_v21, %v2346_v4  ;;  %v762_v56 = vmul.f32 %v2388_v26, %v2343_v3  ;;  %vm2799_vm10 = vcmp.eq.f32.partialorder %v1043_v51, 8.507059e+37 }
  0xf6   : > { %v1975_v13 = vpop.eup %1974  ;;  %v1000_v27 = vsub.f32 %v998_v2, %v999_v12  ;;  %v2803_v11 = vsub.f32 %v1022_v19, %v1023_v34  ;;  %v3826_v25 = vsub.f32 0.0, %v2785_v59  ;;  %v764_v1 = vmul.f32 %v2388_v26, %v2346_v4 }
  0xf7   : > { %v1035_v30 = vmul.f32 %v1975_v13, %v2735_v35  ;;  %vm1040_vm9 = vweird.f32 %v1975_v13  ;;  %v1027_v43 = vadd.f32 %v1026_v54, %v1025_v50  ;;  %v763_v17 = vsub.f32 %v761_v48, %v762_v56 }
  0xf8   : > { %v2809_v58 = vsub.f32 %v859_v42, %v2803_v11  ;;  %v765_v51 = vmul.f32 %v2385_v21, %v2343_v3  ;;  %v802_v37 = vmul.f32 %v2385_v21, %v2351_v10  ;;  %v803_v12 = vmul.f32 %v2388_v26, %v2348_v9  ;;  %vm1041_vm11 = vmor %vm1039_vm8, %vm1040_vm9 }
  0xf9   : > { %v1036_v18 = vsub.f32 1.0, %v1035_v30  ;;  %v2817_v19 = vsub.f32 %v3826_v25, %v1027_v43  ;;  %v767_v2 = vsub.f32 0.0, %v763_v17  ;;  %v805_v4 = vmul.f32 %v2388_v26, %v2351_v10 }
  0xfa   : > { %v766_v50 = vadd.f32 %v765_v51, %v764_v1  ;;  %v806_v42 = vmul.f32 %v2385_v21, %v2348_v9  ;;  %v843_v3 = vmul.f32 %v2385_v21, %v2367_v22  ;;  %v804_v54 = vsub.f32 %v802_v37, %v803_v12 }
  0xfb   : > { %v1037_v34 = vmul.f32 %v1975_v13, %v1036_v18  ;;  %v844_v48 = vmul.f32 %v2388_v26, %v2379_v20  ;;  %v846_v56 = vmul.f32 %v2388_v26, %v2367_v22  ;;  %v847_v30 = vmul.f32 %v2385_v21, %v2379_v20 }
  0xfc   : > { %v768_v10 = vsub.f32 0.0, %v766_v50  ;;  %v2833_v18 = vadd.f32 %v806_v42, %v805_v4  ;;  %v893_v17 = vmul.f32 %v2606_v8, %v767_v2  ;;  %v963_v9 = vsub.f32 %v2733_v36, %v959_v53 }
  0xfd   : > { %v1038_v43 = vadd.f32 %v1975_v13, %v1037_v34  ;;  %v845_v37 = vsub.f32 %v843_v3, %v844_v48  ;;  %v2840_v1 = vadd.f32 %v847_v30, %v846_v56  ;;  %v896_v22 = vmul.f32 %v2610_v63, %v767_v2 }
  0xfe   : > { %v1004_v12 = vsub.f32 %v841_v5, %v1000_v27  ;;  %v894_v20 = vmul.f32 %v2610_v63, %v768_v10  ;;  %v897_v4 = vmul.f32 %v2606_v8, %v768_v10  ;;  %v808_v50 = vsub.f32 0.0, %v804_v54 }
  0xff   : > { %v1042_v51 = vsel %vm1041_vm11, %v1975_v13, %v1038_v43  ;;  %v809_v35 = vsub.f32 0.0, %v2833_v18  ;;  %v2848_v42 = vsub.f32 0.0, %v845_v37  ;;  %v3885_v53 = vsub.f32 0.0, %v2707_v44 }
 0x100   : > { %v1047_v34 = vsel %vm2799_vm10, %v1046_v7, %v1042_v51  ;;  %v2857_v5 = vsub.f32 %v893_v17, %v894_v20  ;;  %v2859_v13 = vadd.f32 %v897_v4, %v896_v22  ;;  %v850_v27 = vsub.f32 0.0, %v2840_v1 }
 0x101   : > { %v2851_v36 = vmul.f32 %v1047_v34, %v2710_v0  ;;  %v2855_v2 = vmul.f32 %v3885_v53, %v1047_v34  ;;  %v3888_v32 = vsub.f32 1.0, %v2428_v55  ;;  %v3899_v26 = vsub.f32 1.0, %v2493_v47 }
 0x102   : > { %v965_v17 = vmul.f32 %v2857_v5, %v2487_v45 }
 0x103   : > { %v2867_v0 = vmul.f32 %v2855_v2, %v2694_v57  ;;  %v2871_v44 = vmul.f32 %v2851_v36, %v2694_v57  ;;  %v1076_v54 = vmul.f32 %v2851_v36, %v2699_v52  ;;  %v1078_v48 = vmul.f32 %v2855_v2, %v2699_v52 }
 0x104   : > { %v1053_v56 = vmul.f32 %v2855_v2, %v2755_v39  ;;  %v1056_v30 = vmul.f32 %v2851_v36, %v2755_v39  ;;  %v1052_v43 = vmul.f32 %v2851_v36, %v963_v9  ;;  %v1055_v10 = vmul.f32 %v2855_v2, %v963_v9 }
 0x105   : > { %v2884_v18 = vsub.f32 %v1076_v54, %v2867_v0  ;;  %v2887_v57 = vadd.f32 %v1078_v48, %v2871_v44  ;;  %v966_v52 = vmul.f32 %v2859_v13, %v2491_v46  ;;  %v968_v39 = vmul.f32 %v2859_v13, %v2487_v45 }
 0x106   : > { %v2893_v37 = vsub.f32 %v1052_v43, %v1053_v56  ;;  %v2895_v1 = vadd.f32 %v1056_v30, %v1055_v10  ;;  %v969_v9 = vmul.f32 %v2857_v5, %v2491_v46  ;;  %v483_v56 = vpop.xlane.xlu2 %482 }
 0x107   : > { %3886 = vst [vmem:[#allocation22_spill] sm:$0xff] %v2884_v18  ;;  %v1192_v22 = vmul.f32 %v2884_v18, %v2765_v62  ;;  %v1193_v51 = vmul.f32 %v2887_v57, %v2763_v16  ;;  %v1195_v20 = vmul.f32 %v2887_v57, %v2765_v62  ;;  %v1196_v4 = vmul.f32 %v2884_v18, %v2763_v16 }
 0x108   : > { %3887 = vst [vmem:[#allocation23_spill] sm:$0xff] %v2887_v57  ;;  %v1163_v34 = vmul.f32 %v2895_v1, %v2765_v62  ;;  %v1164_v53 = vmul.f32 %v2893_v37, %v2763_v16  ;;  %v1160_v54 = vmul.f32 %v2893_v37, %v2765_v62  ;;  %v1161_v48 = vmul.f32 %v2895_v1, %v2763_v16 }
 0x109   : > { %v1194_v30 = vsub.f32 %v1192_v22, %v1193_v51  ;;  %v1197_v43 = vadd.f32 %v1196_v4, %v1195_v20  ;;  %v484_v10 = vadd.f32 1e-08, %v483_v56  ;;  %v967_v25 = vsub.f32 %v965_v17, %v966_v52 }
 0x10a   : > { %v1165_v3 = vadd.f32 %v1164_v53, %v1163_v34  ;;  %v1162_v49 = vsub.f32 %v1160_v54, %v1161_v48  ;;  %v970_v7 = vadd.f32 %v969_v9, %v968_v39  ;;  %v1006_v57 = vmul.f32 %v2857_v5, %v2596_v6  ;;  %v518_v48 = vpop.xlane.xlu0 %517 }
 0x10b   : > { %v2920_v18 = vsub.f32 %v2809_v58, %v1194_v30  ;;  %v2923_v24 = vsub.f32 %v2817_v19, %v1197_v43  ;;  %v971_v41 = vsub.f32 %v808_v50, %v967_v25  ;;  %v899_v22 = vmul.f32 %v2606_v8, %v3888_v32 }
 0x10c   : > { %v2929_v51 = vsub.f32 %v2778_v23, %v1165_v3  ;;  %v2931_v17 = vsub.f32 %v1004_v12, %v1162_v49  ;;  %v972_v52 = vsub.f32 %v809_v35, %v970_v7  ;;  %v1007_v39 = vmul.f32 %v2859_v13, %v2566_v60 }
 0x10d   : > { %v1009_v58 = vmul.f32 %v2859_v13, %v2596_v6  ;;  %v1010_v9 = vmul.f32 %v2857_v5, %v2566_v60  ;;  %v1058_v25 = vmul.f32 %v2851_v36, %v971_v41  ;;  %v1061_v50 = vmul.f32 %v2855_v2, %v971_v41 }
 0x10e   : > { %v1201_v32 = vmul.f32 %v2929_v51, %v2929_v51  ;;  %v1200_v8 = vmul.f32 %v2931_v17, %v2931_v17  ;;  %1976 = vrcp.f32 %v484_v10  ;;  %v1008_v23 = vsub.f32 %v1006_v57, %v1007_v39  ;;  %v507_v30 = vpop.xlane.xlu2 %506 }
 0x10f   : > { %v1011_v12 = vadd.f32 %v1010_v9, %v1009_v58  ;;  %v1059_v35 = vmul.f32 %v2855_v2, %v972_v52  ;;  %v1062_v7 = vmul.f32 %v2851_v36, %v972_v52  ;;  %v1120_v49 = vmul.f32 %v2893_v37, %v2660_v33  ;;  %v495_v9 = vpop.xlane.xlu1 %494 }
 0x110   : > { %v2949_v3 = vadd.f32 %v1201_v32, %v1200_v8  ;;  %v1012_v41 = vsub.f32 %v2848_v42, %v1008_v23  ;;  %v1121_v20 = vmul.f32 %v2895_v1, %v2662_v40  ;;  %v1123_v4 = vmul.f32 %v2895_v1, %v2660_v33 }
 0x111   : > { %v1013_v34 = vsub.f32 %v850_v27, %v1011_v12  ;;  %v2956_v57 = vsub.f32 %v1058_v25, %v1059_v35  ;;  %v2958_v53 = vadd.f32 %v1062_v7, %v1061_v50  ;;  %v1124_v54 = vmul.f32 %v2893_v37, %v2662_v40 }
 0x112   : > { %1978 = vrcp.f32 %v2949_v3  ;;  %v1214_v42 = vand.u32 2147483648, %v2949_v3  ;;  %v3889_v43 = vsub.f32 1.0, %v2428_v55  ;;  %v1122_v27 = vsub.f32 %v1120_v49, %v1121_v20 }
 0x113   : > { %v1125_v52 = vadd.f32 %v1124_v54, %v1123_v4  ;;  %v1128_v39 = vmul.f32 %v2956_v57, %v2660_v33  ;;  %v1129_v58 = vmul.f32 %v2958_v53, %v2662_v40  ;;  %v1212_v50 = vand.u32 2147483647, %v2949_v3 }
 0x114   : > { %v902_v10 = vmul.f32 %v2610_v63, %v3889_v43  ;;  %v2972_v25 = vpop.eup %1976  ;;  %v2975_v32 = vor.u32 1.1754944e-38, %v1214_v42  ;;  %v1131_v55 = vmul.f32 %v2958_v53, %v2660_v33  ;;  %v1132_v63 = vmul.f32 %v2956_v57, %v2662_v40 }
 0x115   : > { %3890 = vst [vmem:[#allocation24_spill] sm:$0xff] %v2972_v25  ;;  %v2982_v8 = vsub.f32 %v2688_v29, %v1122_v27  ;;  %v2985_v23 = vsub.f32 %v2690_v15, %v1125_v52  ;;  %v1130_v12 = vsub.f32 %v1128_v39, %v1129_v58  ;;  %v1168_v35 = vmul.f32 %v2956_v57, %v2765_v62 }
 0x116   : > { %v2989_v7 = vadd.f32 %v1132_v63, %v1131_v55  ;;  %v1169_v49 = vmul.f32 %v2958_v53, %v2763_v16  ;;  %v1171_v20 = vmul.f32 %v2958_v53, %v2765_v62  ;;  %v1172_v4 = vmul.f32 %v2956_v57, %v2763_v16  ;;  %v544_v63 = vpop.xlane.xlu0 %543 }
 0x117   : > { %vm1208_vm12 = vweird.f32 %v2949_v3  ;;  %v2999_v29 = vsub.f32 %v2857_v5, %v1130_v12  ;;  %v519_v15 = vmul.f32 %v2972_v25, %v518_v48  ;;  %v3003_v54 = vmul.f32 %v2972_v25, %v507_v30 }
 0x118   : > { %v3006_v42 = vmul.f32 %v2972_v25, %v495_v9  ;;  %v1979_v43 = vpop.eup %1978  ;;  %v1170_v52 = vsub.f32 %v1168_v35, %v1169_v49  ;;  %v1173_v39 = vadd.f32 %v1172_v4, %v1171_v20  ;;  %v3011_v58 = vsub.f32 %v899_v22, %v2631_v61  ;;  %v570_v49 = vpop.xlane.xlu2 %569  ;;  %v3894_v20 = vld [vmem:[#allocation18_spill] sm:$0xff] }
 0x119   : > { %v1204_v55 = vmul.f32 %v1979_v43, %v2949_v3  ;;  %vm1209_vm13 = vweird.f32 %v1979_v43  ;;  %vm3014_vm14 = vcmp.eq.f32.partialorder %v1212_v50, 8.507059e+37  ;;  %v3018_v30 = vadd.f32 1e-05, %v519_v15  ;;  %v533_v50 = vpop.xlane.xlu1 %532 }
 0x11a   : > { %v3020_v9 = vsub.f32 1e-05, %v519_v15  ;;  %v1174_v12 = vsub.f32 %v1012_v41, %v1170_v52  ;;  %v1175_v56 = vsub.f32 %v1013_v34, %v1173_v39  ;;  %v545_v35 = vmul.f32 %v2972_v25, %v544_v63  ;;  %vm1210_vm15 = vmor %vm1208_vm12, %vm1209_vm13 }
 0x11b   : > { %v3024_v61 = vadd.f32 %v3894_v20, %v902_v10  ;;  %v1205_v22 = vsub.f32 1.0, %v1204_v55  ;;  %v571_v4 = vmul.f32 %v2972_v25, %v570_v49  ;;  %v973_v27 = vmul.f32 %v3011_v58, %v2487_v45  ;;  %v3898_v20 = vld [vmem:[#allocation19_spill] sm:$0xff] }
 0x11c   : > { %3893 = vst [vmem:[#allocation25_spill] sm:$0xff] %v3020_v9  ;;  %v977_v15 = vmul.f32 %v3011_v58, %v2491_v46  ;;  %v3031_v31 = vadd.f32 1e-05, %v545_v35  ;;  %v3033_v41 = vsub.f32 1e-05, %v545_v35  ;;  %v3036_v34 = vmul.f32 %v2972_v25, %v533_v50 }
 0x11d   : > { %v974_v10 = vmul.f32 %v3024_v61, %v2491_v46  ;;  %v1206_v52 = vmul.f32 %v1979_v43, %v1205_v22  ;;  %v3040_v39 = vadd.f32 1e-05, %v571_v4  ;;  %v3042_v55 = vsub.f32 1e-05, %v571_v4 }
 0x11e   : > { %3895 = vst [vmem:[#allocation18_spill] sm:$0xff] %v3033_v41  ;;  %v976_v63 = vmul.f32 %v3024_v61, %v2487_v45  ;;  %v987_v35 = vsub.f32 %v3899_v26, %v3898_v20  ;;  %v1014_v50 = vmul.f32 %v3011_v58, %v2596_v6  ;;  %v1015_v41 = vmul.f32 %v3024_v61, %v2566_v60 }
 0x11f   : > { %3896 = vst [vmem:[#allocation26_spill] sm:$0xff] %v3036_v34  ;;  %v975_v49 = vsub.f32 %v973_v27, %v974_v10  ;;  %v1207_v46 = vadd.f32 %v1979_v43, %v1206_v52  ;;  %v1017_v4 = vmul.f32 %v3024_v61, %v2596_v6  ;;  %v3900_v26 = vsub.f32 0.0, %v2493_v47  ;;  %v559_v6 = vpop.xlane.xlu0 %558 }
 0x120   : > { %3897 = vst [vmem:[#allocation27_spill] sm:$0xff] %v3042_v55  ;;  %v978_v22 = vadd.f32 %v977_v15, %v976_v63  ;;  %v1018_v55 = vmul.f32 %v3011_v58, %v2566_v60  ;;  %v1016_v27 = vsub.f32 %v1014_v50, %v1015_v41  ;;  %v3901_v10 = vsub.f32 0.0, %v2769_v14  ;;  %v3902_v63 = vld [vmem:[#allocation16_spill] sm:$0xff] }
 0x121   : > { %v979_v45 = vsub.f32 %v3900_v26, %v975_v49  ;;  %v1070_v15 = vmul.f32 %v2851_v36, %v987_v35  ;;  %v1211_v52 = vsel %vm1210_vm15, %v1979_v43, %v1207_v46  ;;  %v3903_v34 = vsub.f32 0.0, %v3902_v63  ;;  %v608_v49 = vpop.xlane.xlu2 %607 }
 0x122   : > { %v3065_v20 = vsub.f32 %v3901_v10, %v2803_v11  ;;  %v1019_v9 = vadd.f32 %v1018_v55, %v1017_v4  ;;  %v1073_v3 = vmul.f32 %v2855_v2, %v987_v35  ;;  %v1216_v47 = vsel %vm3014_vm14, %v2975_v32, %v1211_v52 }
 0x123   : > { %v980_v60 = vsub.f32 %v3903_v34, %v978_v22  ;;  %v3075_v41 = vmul.f32 %v2972_v25, %v559_v6  ;;  %v3904_v11 = vmov %v3901_v10  ;;  %v1064_v43 = vmul.f32 %v2851_v36, %v979_v45 }
 0x124   : > { %v3079_v50 = vsub.f32 %v3904_v11, %v1016_v27  ;;  %v3083_v46 = vmul.f32 %v1216_v47, %v2931_v17  ;;  %v3905_v34 = vsub.f32 0.0, %v2929_v51  ;;  %v3090_v48 = vmul.f32 %v2972_v25, %v608_v49 }
 0x125   : > { %v3906_v32 = vsub.f32 0.0, %v2785_v59  ;;  %v1065_v14 = vmul.f32 %v2855_v2, %v980_v60  ;;  %v1067_v22 = vmul.f32 %v2855_v2, %v979_v45  ;;  %v1068_v4 = vmul.f32 %v2851_v36, %v980_v60 }
 0x126   : > { %v3087_v55 = vmul.f32 %v3905_v34, %v1216_v47  ;;  %v3100_v17 = vsub.f32 %v1070_v15, %v2867_v0  ;;  %v1239_v51 = vmul.f32 %v3083_v46, %v2920_v18  ;;  %v1221_v27 = vmul.f32 %v3083_v46, %v1174_v12 }
 0x127   : > { %v3094_v35 = vsub.f32 %v3906_v32, %v1019_v9  ;;  %v1243_v9 = vmul.f32 %v3083_v46, %v2923_v24  ;;  %v1225_v0 = vmul.f32 %v3083_v46, %v1175_v56  ;;  %v3119_v15 = vadd.f32 1e-05, %v3090_v48 }
 0x128   : > { %v1240_v26 = vmul.f32 %v3087_v55, %v2923_v24  ;;  %v1242_v59 = vmul.f32 %v3087_v55, %v2920_v18  ;;  %v1222_v2 = vmul.f32 %v3087_v55, %v1175_v56  ;;  %v1224_v36 = vmul.f32 %v3087_v55, %v1174_v12 }
 0x129   : > { %v3126_v6 = vsub.f32 %v1064_v43, %v1065_v14  ;;  %v3128_v63 = vadd.f32 %v1068_v4, %v1067_v22  ;;  %v3131_v12 = vadd.f32 %v2871_v44, %v1073_v3  ;;  %v1144_v56 = vmul.f32 %v3100_v17, %v2660_v33 }
 0x12a   : > { %v3114_v45 = vsub.f32 %v1239_v51, %v1240_v26  ;;  %v3116_v10 = vadd.f32 %v1243_v9, %v1242_v59  ;;  %v3122_v52 = vsub.f32 %v1221_v27, %v1222_v2  ;;  %v3124_v24 = vadd.f32 %v1225_v0, %v1224_v36 }
 0x12b   : > { %v1148_v60 = vmul.f32 %v3100_v17, %v2662_v40  ;;  %v3139_v47 = vmul.f32 %v3100_v17, %v2765_v62  ;;  %v3910_v0 = vsub.f32 %v2859_v13, %v2989_v7 }
 0x12c   : > { %v1277_v49 = vmul.f32 %v3122_v52, %v2982_v8  ;;  %v1278_v11 = vmul.f32 %v3124_v24, %v2985_v23  ;;  %v1280_v44 = vmul.f32 %v3124_v24, %v2982_v8  ;;  %v1281_v3 = vmul.f32 %v3122_v52, %v2985_v23 }
 0x12d   : > { %v1309_v43 = vmul.f32 %v3122_v52, %v2893_v37  ;;  %v1310_v34 = vmul.f32 %v3124_v24, %v2895_v1  ;;  %v1312_v32 = vmul.f32 %v3124_v24, %v2893_v37  ;;  %v1313_v14 = vmul.f32 %v3122_v52, %v2895_v1 }
 0x12e   : > { %v1279_v22 = vsub.f32 %v1277_v49, %v1278_v11  ;;  %v1282_v4 = vadd.f32 %v1281_v3, %v1280_v44  ;;  %v3158_v51 = vadd.f32 1e-08, %v3124_v24  ;;  %v3162_v26 = vmul.f32 %v3122_v52, %v3006_v42 }
 0x12f   : > { %v1311_v59 = vsub.f32 %v1309_v43, %v1310_v34  ;;  %v1314_v9 = vadd.f32 %v1313_v14, %v1312_v32  ;;  %v1450_v27 = vmul.f32 1e-05, %v3122_v52  ;;  %v3167_v2 = vmul.f32 %v3122_v52, %v3040_v39 }
 0x130   : > { %3907 = vst [vmem:[#allocation19_spill] sm:$0xff] %v3158_v51  ;;  %v3170_v36 = vsub.f32 %v2999_v29, %v1279_v22  ;;  %v1284_v49 = vsub.f32 %v3910_v0, %v1282_v4  ;;  %v3176_v11 = vmul.f32 1e-05, %v3158_v51  ;;  %v1451_v44 = vmul.f32 %v3158_v51, %v3006_v42 }
 0x131   : > { %3908 = vst [vmem:[#allocation16_spill] sm:$0xff] %v3162_v26  ;;  %v3181_v3 = vsub.f32 %v2956_v57, %v1311_v59  ;;  %v1316_v43 = vsub.f32 %v2958_v53, %v1314_v9  ;;  %v3186_v34 = vmul.f32 %v3158_v51, %v3040_v39  ;;  %v1145_v29 = vmul.f32 %v3131_v12, %v2662_v40 }
 0x132   : > { %3909 = vst [vmem:[#allocation28_spill] sm:$0xff] %v3167_v2  ;;  %v3190_v7 = vadd.f32 1e-08, %v1284_v49  ;;  %v3193_v32 = vmul.f32 1e-05, %v3170_v36  ;;  %v3197_v14 = vmul.f32 %v3170_v36, %v3018_v30  ;;  %v3210_v9 = vadd.f32 %v1451_v44, %v1450_v27 }
 0x133   : > { %3911 = vst [vmem:[#allocation29_spill] sm:$0xff] %v3176_v11  ;;  %v3201_v4 = vadd.f32 1e-08, %v1316_v43  ;;  %v3204_v39 = vmul.f32 1e-05, %v3181_v3  ;;  %v3208_v59 = vmul.f32 %v3181_v3, %v3031_v31  ;;  %v1146_v18 = vsub.f32 %v1144_v56, %v1145_v29 }
 0x134   : > { %3912 = vst [vmem:[#allocation30_spill] sm:$0xff] %v3181_v3  ;;  %v3213_v0 = vmul.f32 1e-05, %v3190_v7  ;;  %v3217_v49 = vmul.f32 %v3190_v7, %v3018_v30  ;;  %v1147_v43 = vmul.f32 %v3131_v12, %v2660_v33  ;;  %v1176_v27 = vmul.f32 %v3126_v6, %v2765_v62 }
 0x135   : > { %3913 = vst [vmem:[#allocation31_spill] sm:$0xff] %v3186_v34  ;;  %v3222_v22 = vmul.f32 1e-05, %v3201_v4  ;;  %v3226_v11 = vmul.f32 %v3201_v4, %v3031_v31  ;;  %v1177_v44 = vmul.f32 %v3128_v63, %v2763_v16  ;;  %v1150_v30 = vsub.f32 %v2653_v38, %v1146_v18  ;;  %v3924_v34 = vld [vmem:[#allocation12_spill] sm:$0xff] }
 0x136   : > { %3914 = vst [vmem:[#allocation32_spill] sm:$0xff] %v3193_v32  ;;  %v1179_v56 = vmul.f32 %v3128_v63, %v2765_v62  ;;  %v1180_v29 = vmul.f32 %v3126_v6, %v2763_v16  ;;  %v1185_v31 = vmul.f32 %v3131_v12, %v2763_v16 }
 0x137   : > { %3915 = vst [vmem:[#allocation33_spill] sm:$0xff] %v3197_v14  ;;  %v1178_v26 = vsub.f32 %v1176_v27, %v1177_v44  ;;  %v909_v27 = vmul.f32 %v2660_v33, %v3924_v34 }
 0x138   : > { %3916 = vst [vmem:[#allocation34_spill] sm:$0xff] %v3201_v4  ;;  %v1186_v51 = vsub.f32 %v3139_v47, %v1185_v31 }
 0x139   : > { %3917 = vst [vmem:[#allocation35_spill] sm:$0xff] %v3204_v39  ;;  %v1187_v39 = vmul.f32 %v3131_v12, %v2765_v62  ;;  %v1182_v44 = vsub.f32 %v3079_v50, %v1178_v26  ;;  %v3925_v62 = vld [vmem:[#allocation13_spill] sm:$0xff] }
 0x13a   : > { %3918 = vst [vmem:[#allocation36_spill] sm:$0xff] %v3208_v59 }
 0x13b   : > { %3919 = vst [vmem:[#allocation37_spill] sm:$0xff] %v3210_v9  ;;  %v3232_v9 = vadd.f32 %v1148_v60, %v1147_v43  ;;  %v597_v60 = vpop.xlane.xlu0 %596  ;;  %v1181_v43 = vadd.f32 %v1180_v29, %v1179_v56  ;;  %v913_v56 = vmul.f32 %v2660_v33, %v3925_v62  ;;  %v925_v29 = vmul.f32 %v2857_v5, %v3924_v34 }
 0x13c   : > { %3920 = vst [vmem:[#allocation38_spill] sm:$0xff] %v3213_v0  ;;  %v3248_v2 = vmul.f32 %v2972_v25, %v597_v60  ;;  %v1190_v60 = vsub.f32 %v3065_v20, %v1186_v51  ;;  %v1227_v47 = vmul.f32 %v3083_v46, %v1182_v44  ;;  %v1230_v26 = vmul.f32 %v3087_v55, %v1182_v44  ;;  %v3927_v25 = vld [vmem:[#allocation15_spill] sm:$0xff] }
 0x13d   : > { %3921 = vst [vmem:[#allocation39_spill] sm:$0xff] %v3217_v49  ;;  %v1151_v18 = vsub.f32 %v2656_v28, %v3232_v9  ;;  %v912_v9 = vmul.f32 %v2662_v40, %v3924_v34 }
 0x13e   : > { %3922 = vst [vmem:[#allocation40_spill] sm:$0xff] %v3222_v22  ;;  %v1188_v22 = vmul.f32 %v3100_v17, %v2763_v16  ;;  %v1183_v16 = vsub.f32 %v3094_v35, %v1181_v43  ;;  %v1233_v43 = vmul.f32 %v3083_v46, %v1190_v60  ;;  %v1236_v3 = vmul.f32 %v3087_v55, %v1190_v60 }
 0x13f   : > { %3923 = vst [vmem:[#allocation41_spill] sm:$0xff] %v3226_v11  ;;  %v910_v11 = vmul.f32 %v2662_v40, %v3925_v62  ;;  %v914_v31 = vadd.f32 %v913_v56, %v912_v9 }
 0x140   : > { %v1189_v59 = vadd.f32 %v1188_v22, %v1187_v39  ;;  %v1228_v22 = vmul.f32 %v3087_v55, %v1183_v16  ;;  %v1231_v35 = vmul.f32 %v3083_v46, %v1183_v16  ;;  %v926_v16 = vmul.f32 %v2859_v13, %v3925_v62 }
 0x141   : > { %v911_v39 = vsub.f32 %v909_v27, %v910_v11  ;;  %v3281_v14 = vsub.f32 %v3927_v25, %v914_v31  ;;  %v933_v31 = vmul.f32 %v3011_v58, %v3924_v34 }
 0x142   : > { %v1191_v50 = vsub.f32 %v2817_v19, %v1189_v59  ;;  %v3273_v51 = vsub.f32 %v1227_v47, %v1228_v22  ;;  %v3275_v19 = vadd.f32 %v1231_v35, %v1230_v26  ;;  %v3926_v59 = vld [vmem:[#allocation14_spill] sm:$0xff]  ;;  %v927_v26 = vsub.f32 %v925_v29, %v926_v16 }
 0x143   : > { %v3278_v44 = vsub.f32 %v3926_v59, %v911_v39  ;;  %v929_v22 = vmul.f32 %v2857_v5, %v3925_v62  ;;  %v936_v5 = vmul.f32 %v3024_v61, %v3924_v34 }
 0x144   : > { %v1234_v4 = vmul.f32 %v3087_v55, %v1191_v50  ;;  %v1237_v20 = vmul.f32 %v3083_v46, %v1191_v50  ;;  %v928_v46 = vmul.f32 %v2859_v13, %v3924_v34  ;;  %v1317_v55 = vmul.f32 %v3273_v51, %v2893_v37 }
 0x145   : > { %v1318_v9 = vmul.f32 %v3275_v19, %v2895_v1  ;;  %v1320_v25 = vmul.f32 %v3275_v19, %v2893_v37 }
 0x146   : > { %v3283_v11 = vsub.f32 %v1233_v43, %v1234_v4  ;;  %v3285_v27 = vadd.f32 %v1237_v20, %v1236_v3  ;;  %v1321_v4 = vmul.f32 %v3273_v51, %v2895_v1  ;;  %v934_v43 = vmul.f32 %v3024_v61, %v3925_v62 }
 0x147   : > { %v1319_v50 = vsub.f32 %v1317_v55, %v1318_v9  ;;  %v3315_v49 = vadd.f32 %v929_v22, %v928_v46  ;;  %v931_v55 = vsub.f32 %v2385_v21, %v927_v26 }
 0x148   : > { %v1293_v3 = vmul.f32 %v3283_v11, %v2982_v8  ;;  %v1294_v56 = vmul.f32 %v3285_v27, %v2985_v23  ;;  %v1296_v13 = vmul.f32 %v3285_v27, %v2982_v8  ;;  %v1297_v60 = vmul.f32 %v3283_v11, %v2985_v23 }
 0x149   : > { %v1322_v47 = vadd.f32 %v1321_v4, %v1320_v25  ;;  %v1323_v20 = vsub.f32 %v3126_v6, %v1319_v50  ;;  %v935_v9 = vsub.f32 %v933_v31, %v934_v43  ;;  %v3930_v50 = vld [vmem:[#allocation26_spill] sm:$0xff] }
 0x14a   : > { %v1295_v35 = vsub.f32 %v1293_v3, %v1294_v56  ;;  %v1298_v39 = vadd.f32 %v1297_v60, %v1296_v13  ;;  %v3929_v3 = vld [vmem:[#allocation25_spill] sm:$0xff] }
 0x14b   : > { %v1324_v59 = vsub.f32 %v3128_v63, %v1322_v47  ;;  %v3321_v4 = vmul.f32 %v1323_v20, %v3003_v54  ;;  %v1426_v56 = vmul.f32 %v1323_v20, %v3929_v3  ;;  %v1520_v13 = vmul.f32 %v1323_v20, %v3119_v15  ;;  %v3932_v47 = vld [vmem:[#allocation18_spill] sm:$0xff] }
 0x14c   : > { %v1299_v29 = vsub.f32 %v1150_v30, %v1295_v35  ;;  %v1300_v16 = vsub.f32 %v1151_v18, %v1298_v39  ;;  %v3933_v30 = vsub.f32 1e-05, %v3090_v48  ;;  %v3941_v48 = vld [vmem:[#allocation9_spill] sm:$0xff] }
 0x14d   : > { %v1350_v25 = vadd.f32 1e-08, %v1324_v59  ;;  %3928 = vst [vmem:[#allocation12_spill] sm:$0xff] %v3321_v4  ;;  %v1091_v4 = vmul.f32 %v2958_v53, %v3278_v44 }
 0x14e   : > { %v1347_v60 = vadd.f32 1e-08, %v1300_v16  ;;  %v3326_v46 = vmul.f32 %v1299_v29, %v3930_v50  ;;  %v1404_v21 = vmul.f32 %v1299_v29, %v3932_v47  ;;  %v3331_v18 = vmul.f32 %v1299_v29, %v3933_v30 }
 0x14f   : > { %v3334_v26 = vmul.f32 %v1350_v25, %v3929_v3  ;;  %v1427_v22 = vmul.f32 %v1350_v25, %v3003_v54  ;;  %v3338_v35 = vmul.f32 %v1350_v25, %v3119_v15  ;;  %v3341_v39 = vmul.f32 %v1299_v29, %v3248_v2 }
 0x150   : > { %3931 = vst [vmem:[#allocation13_spill] sm:$0xff] %v3326_v46  ;;  %v3344_v31 = vmul.f32 %v1347_v60, %v3932_v47  ;;  %v1405_v43 = vmul.f32 %v1347_v60, %v3930_v50  ;;  %v3938_v59 = vmov %v3933_v30  ;;  %v3352_v30 = vmul.f32 %v1347_v60, %v3248_v2  ;;  %v3950_v46 = vld [vmem:[#allocation23_spill] sm:$0xff] }
 0x151   : > { %3934 = vst [vmem:[#allocation14_spill] sm:$0xff] %v3331_v18  ;;  %v3349_v16 = vmul.f32 %v1347_v60, %v3938_v59  ;;  %v3356_v15 = vadd.f32 %v1427_v22, %v1426_v56  ;;  %v3359_v29 = vmul.f32 %v1323_v20, %v3248_v2  ;;  %v932_v59 = vsub.f32 %v3941_v48, %v3315_v49  ;;  %v3943_v20 = vld [vmem:[#allocation10_spill] sm:$0xff] }
 0x152   : > { %3935 = vst [vmem:[#allocation15_spill] sm:$0xff] %v3334_v26  ;;  %v3364_v0 = vadd.f32 %v1405_v43, %v1404_v21  ;;  %v937_v60 = vmul.f32 %v3011_v58, %v3925_v62  ;;  %v939_v18 = vsub.f32 %v3943_v20, %v935_v9  ;;  %v942_v21 = vmul.f32 %v2656_v28, %v3925_v62 }
 0x153   : > { %3936 = vst [vmem:[#allocation25_spill] sm:$0xff] %v3341_v39  ;;  %v1521_v39 = vmul.f32 %v1350_v25, %v3248_v2  ;;  %v941_v2 = vmul.f32 %v2653_v38, %v3924_v34  ;;  %v944_v49 = vmul.f32 %v2656_v28, %v3924_v34  ;;  %v945_v43 = vmul.f32 %v2653_v38, %v3925_v62 }
 0x154   : > { %3937 = vst [vmem:[#allocation26_spill] sm:$0xff] %v3344_v31  ;;  %v938_v25 = vadd.f32 %v937_v60, %v936_v5  ;;  %v1080_v48 = vmul.f32 %v2893_v37, %v3278_v44  ;;  %v1083_v9 = vmul.f32 %v2895_v1, %v3278_v44  ;;  %v1084_v5 = vmul.f32 %v2893_v37, %v3281_v14 }
 0x155   : > { %3939 = vst [vmem:[#allocation18_spill] sm:$0xff] %v3356_v15  ;;  %v3372_v22 = vadd.f32 %v1521_v39, %v1520_v13  ;;  %v1081_v13 = vmul.f32 %v2895_v1, %v3281_v14  ;;  %v3944_v39 = vld [vmem:[#allocation11_spill] sm:$0xff]  ;;  %v943_v32 = vsub.f32 %v941_v2, %v942_v21  ;;  %v946_v56 = vadd.f32 %v945_v43, %v944_v49  ;;  %v3945_v21 = vld [vmem:[#allocation21_spill] sm:$0xff] }
 0x156   : > { %3940 = vst [vmem:[#allocation42_spill] sm:$0xff] %v3364_v0  ;;  %v940_v60 = vsub.f32 %v3944_v39, %v938_v25  ;;  %v1088_v34 = vmul.f32 %v2956_v57, %v3278_v44  ;;  %v1085_v15 = vadd.f32 %v1084_v5, %v1083_v9  ;;  %v1089_v26 = vmul.f32 %v2958_v53, %v3281_v14  ;;  %v3946_v43 = vld [vmem:[#allocation17_spill] sm:$0xff] }
 0x157   : > { %3942 = vst [vmem:[#allocation9_spill] sm:$0xff] %v3372_v22  ;;  %v1082_v62 = vsub.f32 %v1080_v48, %v1081_v13  ;;  %v947_v0 = vsub.f32 %v3943_v20, %v943_v32  ;;  %v3400_v31 = vsub.f32 %v3944_v39, %v946_v56  ;;  %v1092_v2 = vmul.f32 %v2956_v57, %v3281_v14  ;;  %v3947_v48 = vld [vmem:[#allocation20_spill] sm:$0xff] }
 0x158   : > { %v1096_v25 = vmul.f32 %v3126_v6, %v3278_v44  ;;  %v3948_v13 = vsub.f32 %v3946_v43, %v3947_v48  ;;  %v1090_v5 = vsub.f32 %v1088_v34, %v1089_v26  ;;  %v1097_v53 = vmul.f32 %v3128_v63, %v3281_v14 }
 0x159   : > { %v1086_v49 = vsub.f32 %v3945_v21, %v1082_v62  ;;  %v1093_v32 = vadd.f32 %v1092_v2, %v1091_v4  ;;  %v1099_v56 = vmul.f32 %v3128_v63, %v3278_v44  ;;  %v1100_v57 = vmul.f32 %v3126_v6, %v3281_v14  ;;  %v3949_v2 = vld [vmem:[#allocation22_spill] sm:$0xff] }
 0x15a   : > { %v1087_v9 = vsub.f32 %v3948_v13, %v1085_v15  ;;  %v1104_v20 = vmul.f32 %v3100_v17, %v3278_v44  ;;  %v1094_v39 = vsub.f32 %v931_v55, %v1090_v5  ;;  %v1098_v62 = vsub.f32 %v1096_v25, %v1097_v53 }
 0x15b   : > { %v1105_v21 = vmul.f32 %v3131_v12, %v3281_v14  ;;  %v1107_v26 = vmul.f32 %v3131_v12, %v3278_v44  ;;  %v1095_v15 = vsub.f32 %v932_v59, %v1093_v32  ;;  %v1101_v34 = vadd.f32 %v1100_v57, %v1099_v56 }
 0x15c   : > { %v1108_v4 = vmul.f32 %v3100_v17, %v3281_v14  ;;  %v1112_v43 = vmul.f32 %v3949_v2, %v3278_v44  ;;  %v1102_v48 = vsub.f32 %v939_v18, %v1098_v62  ;;  %v1113_v55 = vmul.f32 %v3950_v46, %v3281_v14 }
 0x15d   : > { %v1106_v13 = vsub.f32 %v1104_v20, %v1105_v21  ;;  %v1115_v25 = vmul.f32 %v3950_v46, %v3278_v44  ;;  %v1103_v5 = vsub.f32 %v940_v60, %v1101_v34  ;;  %v1116_v59 = vmul.f32 %v3949_v2, %v3281_v14 }
 0x15e   : > { %v1109_v53 = vadd.f32 %v1108_v4, %v1107_v26  ;;  %v1136_v32 = vmul.f32 %v3126_v6, %v2660_v33  ;;  %v1114_v57 = vsub.f32 %v1112_v43, %v1113_v55  ;;  %v1137_v18 = vmul.f32 %v3128_v63, %v2662_v40 }
 0x15f   : > { %v1110_v56 = vsub.f32 %v947_v0, %v1106_v13  ;;  %v1139_v20 = vmul.f32 %v3128_v63, %v2660_v33  ;;  %v1117_v21 = vadd.f32 %v1116_v59, %v1115_v25  ;;  %v1140_v44 = vmul.f32 %v3126_v6, %v2662_v40 }
 0x160   : > { %v1111_v62 = vsub.f32 %v3400_v31, %v1109_v53  ;;  %v1245_v60 = vmul.f32 %v3122_v52, %v1086_v49  ;;  %v1118_v14 = vsub.f32 %v947_v0, %v1114_v57  ;;  %v1138_v26 = vsub.f32 %v1136_v32, %v1137_v18 }
 0x161   : > { %v1246_v34 = vmul.f32 %v3124_v24, %v1087_v9  ;;  %v1248_v4 = vmul.f32 %v3124_v24, %v1086_v49  ;;  %v1119_v43 = vsub.f32 %v3400_v31, %v1117_v21  ;;  %v1141_v13 = vadd.f32 %v1140_v44, %v1139_v20 }
 0x162   : > { %v1249_v55 = vmul.f32 %v3122_v52, %v1087_v9  ;;  %v1253_v63 = vmul.f32 %v3273_v51, %v1086_v49  ;;  %v1142_v25 = vsub.f32 %v3011_v58, %v1138_v26  ;;  %v1254_v6 = vmul.f32 %v3275_v19, %v1087_v9 }
 0x163   : > { %v1247_v53 = vsub.f32 %v1245_v60, %v1246_v34  ;;  %v1256_v59 = vmul.f32 %v3275_v19, %v1086_v49  ;;  %v1143_v0 = vsub.f32 %v3024_v61, %v1141_v13  ;;  %v1257_v57 = vmul.f32 %v3273_v51, %v1087_v9 }
 0x164   : > { %v1250_v32 = vadd.f32 %v1249_v55, %v1248_v4  ;;  %v1261_v24 = vmul.f32 %v3283_v11, %v1086_v49  ;;  %v1255_v18 = vsub.f32 %v1253_v63, %v1254_v6  ;;  %v1262_v20 = vmul.f32 %v3285_v27, %v1087_v9 }
 0x165   : > { %v1251_v31 = vsub.f32 %v1094_v39, %v1247_v53  ;;  %v1264_v21 = vmul.f32 %v3285_v27, %v1086_v49  ;;  %v1258_v58 = vadd.f32 %v1257_v57, %v1256_v59  ;;  %v1265_v60 = vmul.f32 %v3283_v11, %v1087_v9 }
 0x166   : > { %v1252_v44 = vsub.f32 %v1095_v15, %v1250_v32  ;;  %v1269_v26 = vmul.f32 %v3114_v45, %v1086_v49  ;;  %v1259_v34 = vsub.f32 %v1102_v48, %v1255_v18  ;;  %v1263_v22 = vsub.f32 %v1261_v24, %v1262_v20 }
 0x167   : > { %v1270_v61 = vmul.f32 %v3116_v10, %v1087_v9  ;;  %v1272_v4 = vmul.f32 %v3116_v10, %v1086_v49  ;;  %v1260_v13 = vsub.f32 %v1103_v5, %v1258_v58  ;;  %v1266_v55 = vadd.f32 %v1265_v60, %v1264_v21 }
 0x168   : > { %v1273_v39 = vmul.f32 %v3114_v45, %v1087_v9  ;;  %v1285_v63 = vmul.f32 %v3273_v51, %v2982_v8  ;;  %v1267_v53 = vsub.f32 %v1110_v56, %v1263_v22  ;;  %v1286_v6 = vmul.f32 %v3275_v19, %v2985_v23 }
 0x169   : > { %v1271_v15 = vsub.f32 %v1269_v26, %v1270_v61  ;;  %v1288_v48 = vmul.f32 %v3275_v19, %v2982_v8  ;;  %v1268_v59 = vsub.f32 %v1111_v62, %v1266_v55  ;;  %v1289_v49 = vmul.f32 %v3273_v51, %v2985_v23 }
 0x16a   : > { %v1274_v32 = vadd.f32 %v1273_v39, %v1272_v4  ;;  %v1341_v5 = vadd.f32 1e-08, %v1252_v44  ;;  %v1287_v24 = vsub.f32 %v1285_v63, %v1286_v6  ;;  %v1342_v9 = vadd.f32 1e-08, %v1260_v13 }
 0x16b   : > { %v1275_v57 = vsub.f32 %v1118_v14, %v1271_v15  ;;  %v1357_v18 = vmul.f32 %v1251_v31, %v3006_v42  ;;  %v1290_v22 = vadd.f32 %v1289_v49, %v1288_v48  ;;  %v1343_v56 = vadd.f32 1e-08, %v1268_v59  ;;  %v3951_v59 = vld [vmem:[#allocation27_spill] sm:$0xff] }
 0x16c   : > { %v1276_v20 = vsub.f32 %v1119_v43, %v1274_v32  ;;  %v1358_v21 = vmul.f32 1e-05, %v1341_v5  ;;  %v1291_v58 = vsub.f32 %v1142_v25, %v1287_v24  ;;  %v1360_v60 = vmul.f32 1e-05, %v1251_v31 }
 0x16d   : > { %v1361_v26 = vmul.f32 %v1341_v5, %v3006_v42  ;;  %v1363_v62 = vmul.f32 %v1259_v34, %v3003_v54  ;;  %v1292_v61 = vsub.f32 %v1143_v0, %v1290_v22  ;;  %v1364_v44 = vmul.f32 %v1342_v9, %v3929_v3 }
 0x16e   : > { %v1344_v4 = vadd.f32 1e-08, %v1276_v20  ;;  %v1359_v55 = vsub.f32 %v1357_v18, %v1358_v21  ;;  %v1366_v13 = vmul.f32 %v1259_v34, %v3929_v3  ;;  %v1367_v39 = vmul.f32 %v1342_v9, %v3003_v54 }
 0x16f   : > { %v1362_v14 = vadd.f32 %v1361_v26, %v1360_v60  ;;  %v1371_v43 = vmul.f32 %v1267_v53, %v3930_v50  ;;  %v1346_v63 = vadd.f32 1e-08, %v1292_v61  ;;  %v1365_v15 = vsub.f32 %v1363_v62, %v1364_v44  ;;  %v3952_v62 = vld [vmem:[#allocation38_spill] sm:$0xff]  ;;  %v3954_v44 = vld [vmem:[#allocation32_spill] sm:$0xff] }
 0x170   : > { %v1372_v25 = vmul.f32 %v1343_v56, %v3932_v47  ;;  %v1374_v31 = vmul.f32 %v1267_v53, %v3932_v47  ;;  %v1368_v6 = vadd.f32 %v1367_v39, %v1366_v13  ;;  %v1375_v0 = vmul.f32 %v1343_v56, %v3930_v50 }
 0x171   : > { %v1379_v48 = vmul.f32 %v1275_v57, %v3075_v41  ;;  %v1380_v32 = vmul.f32 %v1344_v4, %v3951_v59  ;;  %v1369_v49 = vadd.f32 %v1365_v15, %v1359_v55  ;;  %v1382_v34 = vmul.f32 %v1275_v57, %v3951_v59 }
 0x172   : > { %v1373_v5 = vsub.f32 %v1371_v43, %v1372_v25  ;;  %v1383_v24 = vmul.f32 %v1344_v4, %v3075_v41  ;;  %v1370_v9 = vadd.f32 %v1368_v6, %v1362_v14  ;;  %v1376_v18 = vadd.f32 %v1375_v0, %v1374_v31  ;;  %v3956_v0 = vld [vmem:[#allocation39_spill] sm:$0xff] }
 0x173   : > { %v1381_v20 = vsub.f32 %v1379_v48, %v1380_v32  ;;  %v1387_v22 = vmul.f32 %v3170_v36, %v3006_v42  ;;  %v1391_v56 = vmul.f32 %v3190_v7, %v3006_v42  ;;  %v1393_v60 = vmul.f32 %v1291_v58, %v3003_v54 }
 0x174   : > { %v1377_v53 = vadd.f32 %v1373_v5, %v1369_v49  ;;  %v1384_v21 = vadd.f32 %v1383_v24, %v1382_v34  ;;  %v1378_v26 = vadd.f32 %v1376_v18, %v1370_v9  ;;  %v1394_v57 = vmul.f32 %v1346_v63, %v3929_v3  ;;  %v3957_v49 = vld [vmem:[#allocation25_spill] sm:$0xff]  ;;  %v585_v34 = vpop.xlane.xlu1 %584 }
 0x175   : > { %v1389_v61 = vsub.f32 %v1387_v22, %v3952_v62  ;;  %v1396_v4 = vmul.f32 %v1291_v58, %v3929_v3  ;;  %v1392_v14 = vadd.f32 %v1391_v56, %v3954_v44  ;;  %v1397_v13 = vmul.f32 %v1346_v63, %v3003_v54  ;;  %v3958_v9 = vld [vmem:[#allocation33_spill] sm:$0xff]  ;;  %v3960_v22 = vld [vmem:[#allocation24_spill] sm:$0xff] }
 0x176   : > { %v3490_v55 = vadd.f32 %v1381_v20, %v1377_v53  ;;  %v1477_v39 = vmul.f32 %v3170_v36, %v3003_v54  ;;  %v3496_v43 = vadd.f32 %v1384_v21, %v1378_v26  ;;  %v1395_v15 = vsub.f32 %v1393_v60, %v1394_v57  ;;  %v3959_v36 = vld [vmem:[#allocation14_spill] sm:$0xff]  ;;  %v623_v21 = vpop.xlane.xlu2 %622  ;;  %v649_v57 = vpop.xlane.xlu0 %648 }
 0x177   : > { %v1481_v25 = vmul.f32 %v3190_v7, %v3003_v54  ;;  %v1486_v31 = vmul.f32 1e-05, %v1346_v63  ;;  %v1398_v6 = vadd.f32 %v1397_v13, %v1396_v4  ;;  %v1488_v32 = vmul.f32 1e-05, %v1291_v58 }
 0x178   : > { %3953 = vst [vmem:[#allocation10_spill] sm:$0xff] %v3490_v55  ;;  %v1479_v48 = vsub.f32 %v1477_v39, %v3956_v0  ;;  %v1495_v5 = vsub.f32 %v3957_v49, %v3349_v16  ;;  %v3503_v24 = vadd.f32 %v1395_v15, %v1389_v61  ;;  %v1498_v20 = vadd.f32 %v3352_v30, %v3959_v36 }
 0x179   : > { %3955 = vst [vmem:[#allocation11_spill] sm:$0xff] %v3496_v43  ;;  %v1482_v18 = vadd.f32 %v1481_v25, %v3958_v9  ;;  %v586_v53 = vmul.f32 %v3960_v22, %v585_v34  ;;  %v3509_v7 = vadd.f32 %v1398_v6, %v1392_v14  ;;  %v3513_v60 = vmul.f32 %v3960_v22, %v623_v21 }
 0x17a   : > { %v1483_v56 = vadd.f32 %v1479_v48, %v3490_v55  ;;  %v1325_v16 = vmul.f32 %v3283_v11, %v2893_v37  ;;  %v1326_v30 = vmul.f32 %v3285_v27, %v2895_v1  ;;  %v1328_v4 = vmul.f32 %v3285_v27, %v2893_v37 }
 0x17b   : > { %v1484_v26 = vadd.f32 %v1482_v18, %v3496_v43  ;;  %v1485_v62 = vmul.f32 %v1291_v58, %v586_v53  ;;  %v1489_v61 = vmul.f32 %v1346_v63, %v586_v53  ;;  %v1329_v44 = vmul.f32 %v3283_v11, %v2895_v1 }
 0x17c   : > { %v650_v14 = vmul.f32 %v3960_v22, %v649_v57  ;;  %v1152_v13 = vmul.f32 %v3949_v2, %v2660_v33  ;;  %v1327_v25 = vsub.f32 %v1325_v16, %v1326_v30  ;;  %v1153_v58 = vmul.f32 %v3950_v46, %v2662_v40 }
 0x17d   : > { %v1487_v39 = vsub.f32 %v1485_v62, %v1486_v31  ;;  %v1490_v15 = vadd.f32 %v1489_v61, %v1488_v32  ;;  %v1330_v63 = vadd.f32 %v1329_v44, %v1328_v4  ;;  %v1155_v6 = vmul.f32 %v3950_v46, %v2660_v33 }
 0x17e   : > { %v1156_v0 = vmul.f32 %v3949_v2, %v2662_v40  ;;  %v1301_v48 = vmul.f32 %v3114_v45, %v2982_v8  ;;  %v1331_v9 = vsub.f32 %v3100_v17, %v1327_v25  ;;  %v1154_v31 = vsub.f32 %v1152_v13, %v1153_v58 }
 0x17f   : > { %v1491_v49 = vadd.f32 %v1487_v39, %v1483_v56  ;;  %v1492_v34 = vadd.f32 %v1490_v15, %v1484_v26  ;;  %v1332_v32 = vsub.f32 %v3131_v12, %v1330_v63  ;;  %v1302_v36 = vmul.f32 %v3116_v10, %v2985_v23 }
 0x180   : > { %v1157_v18 = vadd.f32 %v1156_v0, %v1155_v6  ;;  %v1304_v33 = vmul.f32 %v3116_v10, %v2982_v8  ;;  %v1434_v21 = vmul.f32 %v1331_v9, %v3932_v47  ;;  %v1528_v56 = vmul.f32 1e-05, %v1331_v9  ;;  %v661_v6 = vpop.xlane.xlu2 %660 }
 0x181   : > { %v3541_v53 = vadd.f32 %v1495_v5, %v1491_v49  ;;  %v3543_v40 = vadd.f32 %v1498_v20, %v1492_v34  ;;  %v1351_v16 = vadd.f32 1e-08, %v1332_v32  ;;  %v3547_v17 = vmul.f32 %v1331_v9, %v3930_v50  ;;  %v3961_v34 = vld [vmem:[#allocation30_spill] sm:$0xff] }
 0x182   : > { %v3549_v26 = vmul.f32 %v1331_v9, %v650_v14  ;;  %v1158_v12 = vsub.f32 %v2653_v38, %v1154_v31  ;;  %v1159_v62 = vsub.f32 %v2656_v28, %v1157_v18  ;;  %v1303_v61 = vsub.f32 %v1301_v48, %v1302_v36  ;;  %v3962_v32 = vld [vmem:[#allocation34_spill] sm:$0xff] }
 0x183   : > { %v1305_v8 = vmul.f32 %v3114_v45, %v2985_v23  ;;  %v1354_v5 = vadd.f32 1e-08, %v3275_v19  ;;  %v3557_v20 = vmul.f32 %v1351_v16, %v3932_v47  ;;  %v3559_v30 = vmul.f32 1e-05, %v1351_v16 }
 0x184   : > { %v1435_v57 = vmul.f32 %v1351_v16, %v3930_v50  ;;  %v1529_v4 = vmul.f32 %v1351_v16, %v650_v14  ;;  %v1307_v13 = vsub.f32 %v1158_v12, %v1303_v61  ;;  %v3564_v38 = vmul.f32 %v3273_v51, %v3003_v54 }
 0x185   : > { %v1306_v44 = vadd.f32 %v1305_v8, %v1304_v33  ;;  %v3567_v28 = vmul.f32 %v1354_v5, %v3929_v3  ;;  %v1456_v0 = vmul.f32 %v3273_v51, %v3929_v3  ;;  %v1457_v48 = vmul.f32 %v1354_v5, %v3003_v54  ;;  %v3963_v54 = vld [vmem:[#allocation41_spill] sm:$0xff] }
 0x186   : > { %v3571_v19 = vadd.f32 %v1435_v57, %v1434_v21  ;;  %v3575_v15 = vadd.f32 %v1529_v4, %v1528_v56  ;;  %v3578_v25 = vmul.f32 %v1307_v13, %v3075_v41  ;;  %v1412_v58 = vmul.f32 %v1307_v13, %v3951_v59  ;;  %v634_v21 = vpop.xlane.xlu1 %633  ;;  %v687_v56 = vpop.xlane.xlu0 %686  ;;  %v3964_v4 = vld [vmem:[#allocation36_spill] sm:$0xff] }
 0x187   : > { %v1308_v14 = vsub.f32 %v1159_v62, %v1306_v44  ;;  %v1501_v49 = vmul.f32 %v1307_v13, %v3513_v60  ;;  %v1509_v9 = vmul.f32 %v3961_v34, %v3930_v50  ;;  %v1513_v18 = vmul.f32 %v3962_v32, %v3930_v50 }
 0x188   : > { %v3593_v36 = vmul.f32 %v3273_v51, %v3513_v60  ;;  %v1553_v33 = vmul.f32 %v1354_v5, %v3513_v60  ;;  %v3596_v3 = vadd.f32 %v1457_v48, %v1456_v0  ;;  %v635_v12 = vmul.f32 %v3960_v22, %v634_v21 }
 0x189   : > { %v1348_v31 = vadd.f32 1e-08, %v1308_v14  ;;  %v1511_v16 = vsub.f32 %v1509_v9, %v3963_v54  ;;  %v3601_v62 = vmul.f32 %v3960_v22, %v661_v6  ;;  %v1514_v44 = vadd.f32 %v1513_v18, %v3964_v4 }
 0x18a   : > { %v640_v14 = vadd.f32 1e-05, %v635_v12  ;;  %v641_v23 = vsub.f32 1e-05, %v635_v12  ;;  %v1356_v0 = vadd.f32 1e-08, %v3116_v10  ;;  %v688_v48 = vmul.f32 %v3960_v22, %v687_v56 }
 0x18b   : > { %v3604_v61 = vmul.f32 %v1348_v31, %v3951_v59  ;;  %v1413_v8 = vmul.f32 %v1348_v31, %v3075_v41  ;;  %v1505_v57 = vmul.f32 %v1348_v31, %v3513_v60  ;;  %v1568_v21 = vmul.f32 1e-05, %v3114_v45 }
 0x18c   : > { %v1333_v54 = vmul.f32 %v3114_v45, %v2893_v37  ;;  %v1502_v63 = vmul.f32 %v1348_v31, %v641_v23  ;;  %v1504_v39 = vmul.f32 %v1307_v13, %v641_v23  ;;  %v3616_v60 = vmul.f32 %v1354_v5, %v640_v14 }
 0x18d   : > { %v1411_v9 = vsub.f32 %v3578_v25, %v3604_v61  ;;  %v1414_v6 = vadd.f32 %v1413_v8, %v1412_v58  ;;  %v1552_v18 = vmul.f32 %v3273_v51, %v640_v14  ;;  %v3620_v12 = vmul.f32 %v1356_v0, %v3951_v59 }
 0x18e   : > { %v3623_v56 = vmul.f32 %v1356_v0, %v3075_v41  ;;  %v3625_v4 = vmul.f32 1e-05, %v1356_v0  ;;  %v3628_v25 = vmul.f32 %v3114_v45, %v688_v48  ;;  %v1503_v58 = vsub.f32 %v1501_v49, %v1502_v63 }
 0x18f   : > { %v1506_v61 = vadd.f32 %v1505_v57, %v1504_v39  ;;  %v3632_v5 = vadd.f32 %v1553_v33, %v1552_v18  ;;  %v1569_v23 = vmul.f32 %v1356_v0, %v688_v48  ;;  %v1334_v31 = vmul.f32 %v3116_v10, %v2895_v1  ;;  %v3965_v48 = vld [vmem:[#allocation19_spill] sm:$0xff] }
 0x190   : > { %v1336_v8 = vmul.f32 %v3116_v10, %v2893_v37  ;;  %v1507_v14 = vadd.f32 %v1503_v58, %v3541_v53  ;;  %v1337_v39 = vmul.f32 %v3114_v45, %v2895_v1  ;;  %v1355_v49 = vadd.f32 1e-08, %v3285_v27  ;;  %v3966_v27 = vld [vmem:[#allocation31_spill] sm:$0xff] }
 0x191   : > { %v1508_v63 = vadd.f32 %v1506_v61, %v3543_v40  ;;  %v3645_v33 = vadd.f32 %v1569_v23, %v1568_v21  ;;  %v1335_v57 = vsub.f32 %v1333_v54, %v1334_v31  ;;  %v3649_v0 = vmul.f32 %v3122_v52, %v3075_v41  ;;  %v3967_v54 = vld [vmem:[#allocation28_spill] sm:$0xff]  ;;  %v672_v23 = vpop.xlane.xlu1 %671 }
 0x192   : > { %v1545_v18 = vmul.f32 %v3965_v48, %v3075_v41  ;;  %v1515_v37 = vadd.f32 %v1511_v16, %v1507_v14  ;;  %v1338_v53 = vadd.f32 %v1337_v39, %v1336_v8  ;;  %v1462_v40 = vmul.f32 %v1355_v49, %v3932_v47 }
 0x193   : > { %v1516_v10 = vadd.f32 %v1514_v44, %v1508_v63  ;;  %v1339_v58 = vsub.f32 %v3949_v2, %v1335_v57  ;;  %v1465_v1 = vmul.f32 %v1355_v49, %v3930_v50  ;;  %v1543_v21 = vsub.f32 %v3649_v0, %v3966_v27  ;;  %v3969_v44 = vld [vmem:[#allocation9_spill] sm:$0xff]  ;;  %v3974_v27 = vld [vmem:[#allocation42_spill] sm:$0xff] }
 0x194   : > { %v1546_v61 = vadd.f32 %v1545_v18, %v3967_v54  ;;  %v1340_v52 = vsub.f32 %v3950_v46, %v1338_v53  ;;  %v3968_v31 = vsub.f32 %v3359_v29, %v3338_v35  ;;  %v1557_v14 = vmul.f32 %v3283_v11, %v3601_v62  ;;  %v3971_v18 = vld [vmem:[#allocation13_spill] sm:$0xff] }
 0x195   : > { %v1524_v8 = vadd.f32 %v3969_v44, %v1516_v10  ;;  %v1439_v2 = vmul.f32 %v1339_v58, %v3075_v41  ;;  %v1442_v63 = vmul.f32 %v1339_v58, %v3951_v59  ;;  %v1533_v39 = vmul.f32 %v1339_v58, %v3601_v62 }
 0x196   : > { %v1523_v16 = vadd.f32 %v3968_v31, %v1515_v37  ;;  %v1561_v57 = vmul.f32 %v1355_v49, %v3601_v62  ;;  %v1352_v0 = vadd.f32 1e-08, %v1340_v52  ;;  %v3970_v46 = vsub.f32 %v3549_v26, %v3559_v30  ;;  %v3972_v37 = vld [vmem:[#allocation26_spill] sm:$0xff] }
 0x197   : > { %v1532_v35 = vadd.f32 %v3575_v15, %v1524_v8  ;;  %v673_v29 = vmul.f32 %v3960_v22, %v672_v23  ;;  %v3973_v10 = vsub.f32 %v3971_v18, %v3972_v37  ;;  %v1408_v54 = vadd.f32 %v3974_v27, %v3509_v7  ;;  %v3976_v18 = vld [vmem:[#allocation35_spill] sm:$0xff] }
 0x198   : > { %v1531_v48 = vadd.f32 %v3970_v46, %v1523_v16  ;;  %v1417_v31 = vmul.f32 %v3961_v34, %v3006_v42  ;;  %v1421_v52 = vmul.f32 %v3962_v32, %v3006_v42  ;;  %v1440_v26 = vmul.f32 %v1352_v0, %v3951_v59  ;;  %v3977_v32 = vld [vmem:[#allocation12_spill] sm:$0xff]  ;;  %v3978_v27 = vld [vmem:[#allocation15_spill] sm:$0xff] }
 0x199   : > { %v1407_v53 = vadd.f32 %v3973_v10, %v3503_v24  ;;  %v1443_v30 = vmul.f32 %v1352_v0, %v3075_v41  ;;  %v1537_v22 = vmul.f32 %v1352_v0, %v3601_v62  ;;  %v678_v15 = vadd.f32 1e-05, %v673_v29  ;;  %v3975_v24 = vld [vmem:[#allocation40_spill] sm:$0xff] }
 0x19a   : > { %v679_v23 = vsub.f32 1e-05, %v673_v29  ;;  %v1416_v44 = vadd.f32 %v1414_v6, %v1408_v54  ;;  %v1419_v8 = vsub.f32 %v1417_v31, %v3975_v24  ;;  %v1422_v34 = vadd.f32 %v1421_v52, %v3976_v18  ;;  %v3980_v29 = vld [vmem:[#allocation18_spill] sm:$0xff]  ;;  %v3981_v6 = vld [vmem:[#allocation16_spill] sm:$0xff] }
 0x19b   : > { %v1415_v16 = vadd.f32 %v1411_v9, %v1407_v53  ;;  %v1558_v46 = vmul.f32 %v1355_v49, %v678_v15  ;;  %v1560_v7 = vmul.f32 %v3283_v11, %v678_v15  ;;  %v1441_v37 = vsub.f32 %v1439_v2, %v1440_v26  ;;  %v3982_v53 = vld [vmem:[#allocation29_spill] sm:$0xff] }
 0x19c   : > { %v1534_v10 = vmul.f32 %v1352_v0, %v679_v23  ;;  %v1536_v42 = vmul.f32 %v1339_v58, %v679_v23  ;;  %v3979_v51 = vsub.f32 %v3977_v32, %v3978_v27  ;;  %v1444_v55 = vadd.f32 %v1443_v30, %v1442_v63  ;;  %v3986_v26 = vld [vmem:[#allocation37_spill] sm:$0xff] }
 0x19d   : > { %v1559_v62 = vsub.f32 %v1557_v14, %v1558_v46  ;;  %v1562_v43 = vadd.f32 %v1561_v57, %v1560_v7  ;;  %v1430_v9 = vadd.f32 %v3980_v29, %v1422_v34  ;;  %v3983_v54 = vsub.f32 %v3981_v6, %v3982_v53 }
 0x19e   : > { %v1429_v13 = vadd.f32 %v3979_v51, %v1419_v8  ;;  %v3984_v49 = vsub.f32 %v3564_v38, %v3567_v28  ;;  %v1535_v52 = vsub.f32 %v1533_v39, %v1534_v10  ;;  %v1538_v2 = vadd.f32 %v1537_v22, %v1536_v42  ;;  %v3990_v8 = vld [vmem:[#allocation10_spill] sm:$0xff] }
 0x19f   : > { %v3985_v58 = vsub.f32 %v3547_v17, %v3557_v20  ;;  %v1460_v51 = vadd.f32 %v3596_v3, %v3986_v26  ;;  %v1438_v14 = vadd.f32 %v3571_v19, %v1430_v9  ;;  %v1461_v63 = vmul.f32 %v3283_v11, %v3930_v50 }
 0x1a0   : > { %v1459_v31 = vadd.f32 %v3984_v49, %v3983_v54  ;;  %v1464_v57 = vmul.f32 %v3283_v11, %v3932_v47  ;;  %v1469_v38 = vmul.f32 %v3114_v45, %v3075_v41  ;;  %v1539_v28 = vadd.f32 %v1535_v52, %v1531_v48 }
 0x1a1   : > { %v1437_v0 = vadd.f32 %v3985_v58, %v1429_v13  ;;  %v1540_v39 = vadd.f32 %v1538_v2, %v1532_v35  ;;  %v1472_v17 = vmul.f32 %v3114_v45, %v3951_v59  ;;  %v1446_v20 = vadd.f32 %v1444_v55, %v1438_v14 }
 0x1a2   : > { %v1463_v13 = vsub.f32 %v1461_v63, %v1462_v40  ;;  %v1466_v3 = vadd.f32 %v1465_v1, %v1464_v57  ;;  %v1471_v19 = vsub.f32 %v1469_v38, %v3620_v12  ;;  %v1547_v22 = vadd.f32 %v1543_v21, %v1539_v28  ;;  %v3989_v21 = vld [vmem:[#allocation11_spill] sm:$0xff] }
 0x1a3   : > { %v1445_v30 = vadd.f32 %v1441_v37, %v1437_v0  ;;  %v1548_v15 = vadd.f32 %v1546_v61, %v1540_v39  ;;  %v1474_v50 = vadd.f32 %v3623_v56, %v1472_v17  ;;  %v3987_v41 = vsub.f32 %v3593_v36, %v3616_v60 }
 0x1a4   : > { %v1467_v23 = vadd.f32 %v1463_v13, %v1459_v31  ;;  %v1468_v11 = vadd.f32 %v1466_v3, %v1460_v51  ;;  %v3988_v55 = vsub.f32 %v3628_v25, %v3625_v4 }
 0x1a5   : > { %v1555_v47 = vadd.f32 %v3987_v41, %v1547_v22  ;;  %v1556_v48 = vadd.f32 %v3632_v5, %v1548_v15  ;;  %v1983_v15 = vld [vmem:[%s2217_s15] sm:$0xff]  ;;  %v1985_v41 = vld [vmem:[%s2217_s15 + $0x8] sm:$0xff] }
 0x1a6   : > { %v1475_v35 = vadd.f32 %v1471_v19, %v1467_v23  ;;  %v1476_v24 = vadd.f32 %v1474_v50, %v1468_v11  ;;  %v1982_v19 = vld [vmem:[%s2212_s10] sm:$0xff]  ;;  %v1984_v23 = vld [vmem:[%s2212_s10 + $0x8] sm:$0xff] }
 0x1a7   : > { %v1563_v45 = vadd.f32 %v1559_v62, %v1555_v47  ;;  %v1564_v59 = vadd.f32 %v1562_v43, %v1556_v48  ;;  %v1986_v48 = vld [vmem:[%s2212_s10 + $0x10] sm:$0xff] }
 0x1a9   : > { %v1571_v12 = vadd.f32 %v3988_v55, %v1563_v45  ;;  %v1572_v40 = vadd.f32 %v3645_v33, %v1564_v59  ;;  %v1988_v59 = vld [vmem:[%s2212_s10 + $0x18] sm:$0xff]  ;;  %s2010_s10 = scalar_lea.hbm %s3813_s6, 16 }
 0x1aa   : > { %p2012_p2 = scmp.lt.s32.totalorder %s2010_s10, %s2006_s8 }
 0x1ab   : > { %v1573_v1 = vadd.f32 1e-08, %v1571_v12  ;;  %v1575_v56 = vmul.f32 %v1572_v40, %v1572_v40  ;;  %v1593_v61 = vmul.f32 %v1572_v40, %v3989_v21  ;;  %v1597_v46 = vmul.f32 %v1572_v40, %v3990_v8  ;;  %v1989_v12 = vld [vmem:[%s2217_s15 + $0x18] sm:$0xff] }
 0x1ac   : > { %v1607_v36 = vmul.f32 %v1572_v40, %v1416_v44  ;;  %v1611_v60 = vmul.f32 %v1572_v40, %v1415_v16  ;;  %v1623_v7 = vmul.f32 %v1572_v40, %v1446_v20  ;;  %v1627_v5 = vmul.f32 %v1572_v40, %v1445_v30  ;;  %p2013_p3 = por %p2012_p2, %p2011_p1 }
 0x1ad   : > { %v1574_v18 = vmul.f32 %v1573_v1, %v1573_v1  ;;  %v1592_v34 = vmul.f32 %v1573_v1, %v3990_v8  ;;  %v1596_v43 = vmul.f32 %v1573_v1, %v3989_v21  ;;  %v1606_v37 = vmul.f32 %v1573_v1, %v1415_v16 }
 0x1ae   : > { %v1610_v4 = vmul.f32 %v1573_v1, %v1416_v44  ;;  %v1622_v25 = vmul.f32 %v1573_v1, %v1445_v30  ;;  %v1626_v10 = vmul.f32 %v1573_v1, %v1446_v20  ;;  %v1638_v33 = vmul.f32 %v1573_v1, %v1475_v35  ;;  %p2014_p5 = pnand %p2013_p3, %p2009_p0 }
 0x1af   : > { %v1576_v42 = vadd.f32 %v1575_v56, %v1574_v18  ;;  %v1594_v32 = vadd.f32 %v1593_v61, %v1592_v34  ;;  %v1598_v27 = vsub.f32 %v1596_v43, %v1597_v46  ;;  %v1608_v62 = vadd.f32 %v1607_v36, %v1606_v37 }
 0x1b0   : > { %v1612_v29 = vsub.f32 %v1610_v4, %v1611_v60  ;;  %v1624_v9 = vadd.f32 %v1623_v7, %v1622_v25  ;;  %v1628_v6 = vsub.f32 %v1626_v10, %v1627_v5  ;;  %v1639_v53 = vmul.f32 %v1572_v40, %v1476_v24 }
 0x1b1   : > { %1980 = vrcp.f32 %v1576_v42  ;;  %v1642_v49 = vmul.f32 %v1573_v1, %v1476_v24  ;;  %v1643_v31 = vmul.f32 %v1572_v40, %v1475_v35  ;;  %v1588_v58 = vand.u32 2147483648, %v1576_v42  ;;  %v1987_v24 = vld [vmem:[%s2217_s15 + $0x10] sm:$0xff] }
 0x1b2   : > { %v1640_v54 = vadd.f32 %v1639_v53, %v1638_v33  ;;  %v1586_v26 = vand.u32 2147483647, %v1576_v42  ;;  %vm1582_vm1 = vweird.f32 %v1576_v42 }
 0x1b3   : > { %v1644_v52 = vsub.f32 %v1642_v49, %v1643_v31  ;;  %v1589_v14 = vor.u32 1.1754944e-38, %v1588_v58 }
 0x1b4   : > { %vm1587_vm3 = vcmp.eq.f32.partialorder %v1586_v26, 8.507059e+37 }
 0x1b7   : > { %v1981_v2 = vpop.eup %1980 }
 0x1b8   : > { %v1578_v16 = vmul.f32 %v1981_v2, %v1576_v42  ;;  %vm1583_vm0 = vweird.f32 %v1981_v2 }
 0x1b9   : > { %vm1584_vm2 = vmor %vm1582_vm1, %vm1583_vm0 }
 0x1ba   : > { %v1579_v44 = vsub.f32 1.0, %v1578_v16 }
 0x1bc   : > { %v1580_v0 = vmul.f32 %v1981_v2, %v1579_v44 }
 0x1be   : > { %v1581_v51 = vadd.f32 %v1981_v2, %v1580_v0 }
 0x1c0   : > { %v1585_v63 = vsel %vm1584_vm2, %v1981_v2, %v1581_v51 }
 0x1c1   : > { %v1590_v57 = vsel %vm1587_vm3, %v1589_v14, %v1585_v63 }
 0x1c2   : > { %v1595_v38 = vmul.f32 %v1594_v32, %v1590_v57  ;;  %v1599_v28 = vmul.f32 %v1598_v27, %v1590_v57  ;;  %v1609_v39 = vmul.f32 %v1608_v62, %v1590_v57  ;;  %v1613_v30 = vmul.f32 %v1612_v29, %v1590_v57 }
 0x1c3   : > { %v1625_v17 = vmul.f32 %v1624_v9, %v1590_v57  ;;  %v1629_v20 = vmul.f32 %v1628_v6, %v1590_v57  ;;  %v1641_v13 = vmul.f32 %v1640_v54, %v1590_v57  ;;  %v1645_v3 = vmul.f32 %v1644_v52, %v1590_v57 }
 0x1c4   : > { %v1600_v22 = vmul.f32 %v1982_v19, %v1595_v38  ;;  %v1601_v50 = vmul.f32 %v1983_v15, %v1599_v28  ;;  %v1614_v11 = vmul.f32 %v1984_v23, %v1609_v39  ;;  %v1615_v47 = vmul.f32 %v1985_v41, %v1613_v30 }
 0x1c5   : > { %v1630_v35 = vmul.f32 %v1986_v48, %v1625_v17  ;;  %v1631_v45 = vmul.f32 %v1987_v24, %v1629_v20  ;;  %v1646_v55 = vmul.f32 %v1988_v59, %v1641_v13  ;;  %v1647_v40 = vmul.f32 %v1989_v12, %v1645_v3 }
 0x1c6   : > { %v1602_v1 = vadd.f32 %v1601_v50, %v1600_v22  ;;  %v1616_v56 = vadd.f32 %v1615_v47, %v1614_v11  ;;  %v1603_v21 = vmul.f32 %v1983_v15, %v1595_v38  ;;  %v1604_v61 = vmul.f32 %v1982_v19, %v1599_v28 }
 0x1c7   : > { %v1632_v8 = vadd.f32 %v1631_v45, %v1630_v35  ;;  %v1648_v46 = vadd.f32 %v1647_v40, %v1646_v55  ;;  %v1617_v36 = vmul.f32 %v1985_v41, %v1609_v39  ;;  %v1618_v60 = vmul.f32 %v1984_v23, %v1613_v30 }
 0x1c8   : > { %v1620_v7 = vadd.f32 %v1616_v56, %v1602_v1  ;;  %v1605_v5 = vsub.f32 %v1603_v21, %v1604_v61  ;;  %v1633_v18 = vmul.f32 %v1987_v24, %v1625_v17  ;;  %v1634_v34 = vmul.f32 %v1986_v48, %v1629_v20 }
 0x1c9   : > { %v1619_v43 = vsub.f32 %v1617_v36, %v1618_v60  ;;  %v1649_v37 = vmul.f32 %v1989_v12, %v1641_v13  ;;  %v1650_v4 = vmul.f32 %v1988_v59, %v1645_v3 }
 0x1ca   : > { %v1636_v25 = vadd.f32 %v1632_v8, %v1620_v7  ;;  %v1635_v10 = vsub.f32 %v1633_v18, %v1634_v34 }
 0x1cb   : > { %v1621_v33 = vadd.f32 %v1619_v43, %v1605_v5  ;;  %v1651_v42 = vsub.f32 %v1649_v37, %v1650_v4 }
 0x1cc   : > { %v1652_v32 = vadd.f32 %v1648_v46, %v1636_v25 }
 0x1cd   : > { %v1637_v27 = vadd.f32 %v1635_v10, %v1621_v33 }
 0x1ce   : > { %1654 = vst [vmem:[%s406_s17] sm:$0xff] %v1652_v32 }
 0x1cf   : > { %2017 = shalt.err (!%p2014_p5)
}
 0x1d0   : > { %1908 = dma.vmem_to_hbm [thread:$0]  (%p2182_p4), %s1676_s18, 128, %s1678_s19, %s1657_s23   ;;  %v1653_v62 = vadd.f32 %v1651_v42, %v1637_v27 }
 0x1d1   : > { %s1662_s17 = scalar_lea.sflag [#allocation5], %s3730_s16  ;;  %s2032_s0 = sshra.s32 %s3758_s21, 4  ;;  %s2033_s0 = int_to_ptr.hbm [resolvable:$true] %s2032_s0 }
 0x1d2   : > { %1655 = vst [vmem:[%s413_s20] sm:$0xff] %v1653_v62  ;;  %s2034_s22 = scalar_lea.hbm %s2033_s0, 8  ;;  %s2038_s12 = scalar_lea.hbm %s3814_s7, 16 }
 0x1d3   : > { %p2035_p6 = scmp.ne.s32.totalorder %s2033_s0, %s2034_s22  ;;  %p2039_p10 = scmp.lt.s32.totalorder %s2033_s0, %s3814_s7 }
 0x1d4   : > { %p2040_p11 = scmp.lt.s32.totalorder %s2038_s12, %s2034_s22 }
 0x1d5   : > { %p2036_p7 = pnand %p2035_p6, %p2182_p4 }
 0x1d6   : > { %p2041_p12 = por %p2040_p11, %p2039_p10 }
 0x1d7   : > { %p2037_p9 = pneg %p2036_p7 }
 0x1d9   : > { %p2042_p13 = pnand %p2041_p12, %p2037_p9 }
 0x1db   : > { %2045 = shalt.err (!%p2042_p13)
}
 0x1dc   : > { %1909 = dma.vmem_to_hbm [thread:$0]  (%p2182_p4), %s3756_s27, 128, %s3758_s21, %s1662_s17  }
 0x1dd PF: > { %p1919_p0 = scmp.ge.s32.totalorder %s2100_s29, 2  ;;  %s1704_s16 = sand.u32 1, %s2080_s24  }
 0x1de   : > { %s1705_s18 = scalar_lea.sflag [#allocation3], %s1704_s16 }
 0x1df   : > { %p1913_p1 = pnand %p1919_p0, %p2189_p8 }
 0x1e1   : > { %p1914_p2 = pneg %p1913_p1 }
 0x1e3   : > { %2071 = dma.done.wait (%p1914_p2), %s1705_s18, 128  }
 0x1e4   : > { %2073 = vsyncadd (%p1914_p2), %s1705_s18, 4294967168  ;;  %s1715_s0 = scalar_lea.sflag [#allocation5], %s1704_s16 }
 0x1e5   : > { %2075 = dma.done.wait (%p1914_p2), %s1715_s0, 128  }
 0x1e6   : > { %2077 = vsyncadd (%p1914_p2), %s1715_s0, 4294967168  ;;  %s24_s29 = sadd.s32 1, %s2100_s29   ;;  %s3991_s11 = sld [smem:[#allocation8_spill]] }
 0x1e7   : > { %p21_p3 = scmp.ge.s32.totalorder %s24_s29, 4   ;;  %s3992_s24 = smov %s2084_s25 }
 0x1e8   : > { %s3993_s25 = smov %s2088_s26  ;;  %s3994_s26 = smov %s2195_s14 }
 0x1e9   : > { %s3995_s27 = smov %s2096_s28  ;;  %23 = sbr.rel (!%p21_p3) target bundleno = 8 (0x8), region = 117 }
 0x1ec   : > { %s3996_s28 = smov %s3991_s11 }
 0x1ee   :  { %1721 = vsyncpa [#allocation3], 1 }
 0x1ef   :  { %1723 = vsyncpa [#allocation3 + $0x1], 1 }
 0x1f0   :  { %1724 = vsyncpa [#allocation5], 1 }
 0x1f1   :  { %1726 = vsyncpa [#allocation5 + $0x1], 1 }

</bundles_post_ra>
